<compile_context>
chip_gen: v5e
topology: v5e:2x2
jax: 0.10.0
libtpu: 0.0.40
codegen_flags: <defaults>
</compile_context>

<pallas_src>
import math

import jax
import jax.numpy as jnp
from jax import lax
from jax.experimental import pallas as pl
from jax.experimental.pallas import tpu as pltpu

# ----------------------------- small synthetic config -----------------------
B = 2            # batch
S = 8            # sequence length
D = 128          # n_embd (multiple of 128 -> lane-dense outputs)
H = 4            # n_head
HD = D // H      # head dim (32)
E = 4            # num_experts
K = 2            # top-k routing
F = 4 * D        # intermediate size (n_inner or 4*hidden)
T = B * S        # total tokens

NEG_INF = float(jnp.finfo(jnp.float32).min)
INV_SQRT_HD = 1.0 / math.sqrt(HD)


# ----------------------------- in-kernel helpers ----------------------------
def _erf(x):
    # Abramowitz & Stegun 7.1.26 (|err| < 1.5e-7): only exp/mul/add -> lowers
    # cleanly in Mosaic (avoids relying on a native erf lowering).
    ax = jnp.abs(x)
    t = 1.0 / (1.0 + 0.3275911 * ax)
    poly = ((((1.061405429 * t - 1.453152027) * t + 1.421413741) * t
             - 0.284496736) * t + 0.254829592) * t
    y = 1.0 - poly * jnp.exp(-ax * ax)
    return jnp.where(x < 0, -y, y)


def _gelu_exact(x):
    # HF 'gelu' (erf-based, approximate='none')
    return 0.5 * x * (1.0 + _erf(x * (1.0 / math.sqrt(2.0))))


def _softmax_last(x):
    # Softmax over the last axis with the divide moved onto the EUP
    # (per-row common factor -> ranking identical to exact softmax).
    m = jnp.max(x, axis=-1, keepdims=True)
    e = jnp.exp(x - m)
    return e * pl.reciprocal(jnp.sum(e, axis=-1, keepdims=True), approx=True)


# ----------------------------- fused kernel ----------------------------------
def fused_block_kernel(x_ref, wqkv_ref, bqkv_ref, wproj_ref, bproj_ref,
                       wr_ref, br_ref, w1_ref, b1_ref, w2_ref, b2_ref,
                       hid_ref, moe_ref, sel_ref, psum_ref):
    """Single grid step: attention per batch (static loop), then routing + all
    experts on the full [T, D] token block with every weight resident in VMEM."""
    row = lax.broadcasted_iota(jnp.int32, (S, S), 0)
    col = lax.broadcasted_iota(jnp.int32, (S, S), 1)
    causal = col <= row

    wqkv = wqkv_ref[...]                                     # [D, 3D] bf16
    bqkv = bqkv_ref[...]                                     # [1, 3D] f32
    wproj = wproj_ref[...]                                   # [D, D]  bf16
    bproj = bproj_ref[...]                                   # [1, D]  f32

    # --------------------- attention (per batch, static loop) ---------------
    hids = []
    for b in range(B):
        x = x_ref[b]                                         # [S, D] f32
        xb = x.astype(jnp.bfloat16)

        # One wide, lane-dense QKV matmul: [S,128] @ [128,384]
        qkv = jnp.dot(xb, wqkv,
                      preferred_element_type=jnp.float32) + bqkv   # [S, 3D]

        ctx_heads = []
        for hh in range(H):                                  # static head loop
            lo = hh * HD
            q = qkv[:, lo:lo + HD]
            k = qkv[:, D + lo:D + lo + HD]
            v = qkv[:, 2 * D + lo:2 * D + lo + HD]
            # q @ k^T without an explicit transpose: contract the HD axis.
            s = lax.dot_general(q.astype(jnp.bfloat16), k.astype(jnp.bfloat16),
                                (((1,), (1,)), ((), ())),
                                preferred_element_type=jnp.float32)
            s = jnp.where(causal, s * INV_SQRT_HD, NEG_INF)
            p = _softmax_last(s)
            ctx_heads.append(jnp.dot(p.astype(jnp.bfloat16),
                                     v.astype(jnp.bfloat16),
                                     preferred_element_type=jnp.float32))
        # heads packed along lanes -> one [S,128]@[128,128] output projection
        ctx = jnp.concatenate(ctx_heads, axis=-1)            # [S, D]
        attn = jnp.dot(ctx.astype(jnp.bfloat16), wproj,
                       preferred_element_type=jnp.float32) + bproj
        hid = x + attn                                       # residual
        hid_ref[b] = hid
        hids.append(hid)                                     # kept local (no reload)

    # --------------------- router on all tokens [T, D] ----------------------
    xm = jnp.concatenate(hids, axis=0)                       # [T, D] f32
    xmb = xm.astype(jnp.bfloat16)

    logits = jnp.dot(xm, wr_ref[...],
                     preferred_element_type=jnp.float32) + br_ref[...]   # [T, E]
    probs = _softmax_last(logits)

    # top-k via iterative max (ties broken to lowest expert index)
    expert_idx = lax.broadcasted_iota(jnp.int32, (T, E), 1)
    remaining = probs
    selected = jnp.zeros((T, E), dtype=jnp.bool_)
    for _ in range(K):
        m = jnp.max(remaining, axis=-1, keepdims=True)
        is_max = remaining == m
        min_idx = jnp.min(jnp.where(is_max, expert_idx, E), axis=-1,
                          keepdims=True)
        pick = expert_idx == min_idx
        selected = jnp.logical_or(selected, pick)
        remaining = jnp.where(pick, -jnp.inf, remaining)

    gate = jnp.where(selected, probs, 0.0)
    # TODO(synk): MoELayer source unavailable; Mixtral-style renormalized
    # top-k gates assumed.  Drop the renorm for Switch/GShard-style gating.
    gate = gate * pl.reciprocal(jnp.sum(gate, axis=-1, keepdims=True),
                                approx=True)

    # partial sums for the Switch aux loss (finalized in the wrapper)
    sel_ref[...] = jnp.sum(selected.astype(jnp.float32), axis=0, keepdims=True)
    psum_ref[...] = jnp.sum(probs, axis=0, keepdims=True)

    # --------------------- experts (static in-kernel loop) -------------------
    out = jnp.zeros((T, D), jnp.float32)
    for e in range(E):                                        # all weights resident
        h1 = jnp.dot(xmb, w1_ref[e],
                     preferred_element_type=jnp.float32) + b1_ref[e]   # [T, F]
        h1 = _gelu_exact(h1)
        eo = jnp.dot(h1.astype(jnp.bfloat16), w2_ref[e],
                     preferred_element_type=jnp.float32) + b2_ref[e]   # [T, D]
        out = out + gate[:, e:e + 1] * eo

    for b in range(B):                                        # aligned sublane slices
        moe_ref[b] = out[b * S:(b + 1) * S]


# ----------------------------- wrapper ---------------------------------------
def _prep_params(p):
    """Wrapper-side layout plumbing: bf16 MXU weights, f32 biases."""
    return dict(
        w_qkv=p["w_qkv"].astype(jnp.bfloat16),        # [D, 3D]
        b_qkv=p["b_qkv"],                              # [1, 3D]
        w_proj=p["w_proj"].astype(jnp.bfloat16),       # [D, D]
        b_proj=p["b_proj"],                            # [1, D]
        w_r=p["w_r"],                                  # [D, E] fp32 router
        b_r=p["b_r"],                                  # [1, E]
        w1=p["w1"].astype(jnp.bfloat16),               # [E, D, F]
        b1=p["b1"].reshape(E, 1, F),
        w2=p["w2"].astype(jnp.bfloat16),               # [E, F, D]
        b2=p["b2"].reshape(E, 1, D),
    )


def gpt2_moe_block_forward(hidden_states, p):
    """Returns (hidden_states_out, moe_output, moe_aux_loss).

    hidden_states_out == hidden_states + attn_output, matching the reference
    module (which returns only the post-attention residual as outputs[0]; the
    MoE results are the extra `moe_outputs`)."""
    prm = _prep_params(p)

    hid, moe, sel_sum, prob_sum = pl.pallas_call(
        fused_block_kernel,
        out_shape=(jax.ShapeDtypeStruct((B, S, D), jnp.float32),
                   jax.ShapeDtypeStruct((B, S, D), jnp.float32),
                   jax.ShapeDtypeStruct((1, E), jnp.float32),
                   jax.ShapeDtypeStruct((1, E), jnp.float32)),
        grid=(1,),   # single step: everything fits VMEM (~2.5 MiB incl. buffers)
        in_specs=[
            pl.BlockSpec((B, S, D), lambda i: (0, 0, 0)),        # x
            pl.BlockSpec((D, 3 * D), lambda i: (0, 0)),          # w_qkv
            pl.BlockSpec((1, 3 * D), lambda i: (0, 0)),          # b_qkv
            pl.BlockSpec((D, D), lambda i: (0, 0)),              # w_proj
            pl.BlockSpec((1, D), lambda i: (0, 0)),              # b_proj
            pl.BlockSpec((D, E), lambda i: (0, 0)),              # w_r
            pl.BlockSpec((1, E), lambda i: (0, 0)),              # b_r
            pl.BlockSpec((E, D, F), lambda i: (0, 0, 0)),        # w1 (all experts)
            pl.BlockSpec((E, 1, F), lambda i: (0, 0, 0)),        # b1
            pl.BlockSpec((E, F, D), lambda i: (0, 0, 0)),        # w2 (all experts)
            pl.BlockSpec((E, 1, D), lambda i: (0, 0, 0)),        # b2
        ],
        out_specs=(pl.BlockSpec((B, S, D), lambda i: (0, 0, 0)),  # hid
                   pl.BlockSpec((B, S, D), lambda i: (0, 0, 0)),  # moe out
                   pl.BlockSpec((1, E), lambda i: (0, 0)),        # sel sums
                   pl.BlockSpec((1, E), lambda i: (0, 0))),       # prob sums
        compiler_params=pltpu.CompilerParams(
            dimension_semantics=("arbitrary",)),
    )(hidden_states, prm["w_qkv"], prm["b_qkv"], prm["w_proj"], prm["b_proj"],
      prm["w_r"], prm["b_r"], prm["w1"], prm["b1"], prm["w2"], prm["b2"])

    # Switch-style load-balancing aux loss, finalized from the in-kernel sums:
    #   E * sum_e( fraction_of_tokens_routed_to_e * mean_router_prob_e )
    frac = sel_sum[0] / float(T)
    pmean = prob_sum[0] / float(T)
    aux = jnp.float32(E) * jnp.sum(frac * pmean)
    return hid, moe, aux


# ----------------------------- pure-JAX reference ----------------------------
def _bf(a):
    return a.astype(jnp.bfloat16)


def reference_forward(h, p):
    # Mirrors the kernel's precision policy: bf16 MXU operands, f32 accum,
    # f32 elementwise / router math.
    qkv = jnp.einsum("bsd,df->bsf", _bf(h), _bf(p["w_qkv"]),
                     preferred_element_type=jnp.float32) + p["b_qkv"][0]
    q, k, v = jnp.split(qkv, 3, axis=-1)

    def split_heads(t):
        return t.reshape(B, S, H, HD).transpose(0, 2, 1, 3)

    q, k, v = map(split_heads, (q, k, v))
    s = jnp.einsum("bhqd,bhkd->bhqk", _bf(q), _bf(k),
                   preferred_element_type=jnp.float32) / math.sqrt(HD)
    mask = jnp.tril(jnp.ones((S, S), bool))
    s = jnp.where(mask, s, NEG_INF)
    pm = jax.nn.softmax(s, axis=-1)
    ctx = jnp.einsum("bhqk,bhkd->bhqd", _bf(pm), _bf(v),
                     preferred_element_type=jnp.float32).transpose(0, 2, 1, 3)
    ctx = ctx.reshape(B, S, D)
    attn = jnp.einsum("bsd,de->bse", _bf(ctx), _bf(p["w_proj"]),
                      preferred_element_type=jnp.float32) + p["b_proj"][0]
    hid = h + attn

    x = hid.reshape(T, D)
    logits = x @ p["w_r"] + p["b_r"][0]
    probs = jax.nn.softmax(logits, axis=-1)
    topv, topi = lax.top_k(probs, K)
    gate = jnp.zeros_like(probs).at[jnp.arange(T)[:, None], topi].set(topv)
    sel = gate > 0
    gate = gate / gate.sum(-1, keepdims=True)
    out = jnp.zeros_like(x)
    for ei in range(E):
        h1 = jax.nn.gelu(jnp.einsum("td,df->tf", _bf(x), _bf(p["w1"][ei]),
                                    preferred_element_type=jnp.float32)
                         + p["b1"][ei], approximate=False)
        eo = jnp.einsum("tf,fd->td", _bf(h1), _bf(p["w2"][ei]),
                        preferred_element_type=jnp.float32) + p["b2"][ei]
        out = out + gate[:, ei:ei + 1] * eo
    frac = sel.astype(jnp.float32).mean(0)
    aux = E * jnp.sum(frac * probs.mean(0))
    return hid, out.reshape(B, S, D), aux


# ----------------------------- main ------------------------------------------
if __name__ == "__main__":
    key = jax.random.PRNGKey(0)
    ks = jax.random.split(key, 12)
    std = 0.02
    params = {
        "w_qkv": std * jax.random.normal(ks[0], (D, 3 * D), jnp.float32),
        "b_qkv": std * jax.random.normal(ks[1], (1, 3 * D), jnp.float32),
        "w_proj": std * jax.random.normal(ks[2], (D, D), jnp.float32),
        "b_proj": std * jax.random.normal(ks[3], (1, D), jnp.float32),
        "w_r": std * jax.random.normal(ks[4], (D, E), jnp.float32),
        "b_r": std * jax.random.normal(ks[5], (1, E), jnp.float32),
        "w1": std * jax.random.normal(ks[6], (E, D, F), jnp.float32),
        "b1": std * jax.random.normal(ks[7], (E, F), jnp.float32),
        "w2": std * jax.random.normal(ks[8], (E, F, D), jnp.float32),
        "b2": std * jax.random.normal(ks[9], (E, D), jnp.float32),
    }
    x = jax.random.normal(ks[10], (B, S, D), jnp.float32)

    hid, moe_out, aux = jax.jit(gpt2_moe_block_forward)(x, params)
    jax.block_until_ready((hid, moe_out, aux))

    r_hid, r_moe, r_aux = reference_forward(x, params)
    assert jnp.allclose(hid, r_hid, atol=2e-3, rtol=2e-3), "attn/residual mismatch"
    assert jnp.allclose(moe_out, r_moe, atol=2e-3, rtol=2e-3), "moe mismatch"
    assert jnp.allclose(aux, r_aux, atol=2e-3, rtol=2e-3), "aux mismatch"

    print("KERNEL_OK")
</pallas_src>

<mosaic_0001>
module attributes {stable_mosaic.version = 11 : i64} {
  func.func @fused_block_kernel(%arg0: i32, %arg1: memref<2x8x128xf32, #tpu.memory_space<vmem>>, %arg2: memref<128x384xbf16, #tpu.memory_space<vmem>>, %arg3: memref<1x384xf32, #tpu.memory_space<vmem>>, %arg4: memref<128x128xbf16, #tpu.memory_space<vmem>>, %arg5: memref<1x128xf32, #tpu.memory_space<vmem>>, %arg6: memref<128x4xf32, #tpu.memory_space<vmem>>, %arg7: memref<1x4xf32, #tpu.memory_space<vmem>>, %arg8: memref<4x128x512xbf16, #tpu.memory_space<vmem>>, %arg9: memref<4x1x512xf32, #tpu.memory_space<vmem>>, %arg10: memref<4x512x128xbf16, #tpu.memory_space<vmem>>, %arg11: memref<4x1x128xf32, #tpu.memory_space<vmem>>, %arg12: memref<2x8x128xf32, #tpu.memory_space<vmem>>, %arg13: memref<2x8x128xf32, #tpu.memory_space<vmem>>, %arg14: memref<1x4xf32, #tpu.memory_space<vmem>>, %arg15: memref<1x4xf32, #tpu.memory_space<vmem>>) attributes {dimension_semantics = [#tpu.dimension_semantics<arbitrary>], iteration_bounds = array<i64: 1>, scalar_prefetch = 0 : i64, scratch_operands = 0 : i64, tpu.core_type = #tpu.core_type<tc>, window_params = [{pipeline_mode = #tpu.pipeline_mode<synchronous>, transform_indices = @transform_0, window_bounds = array<i64: 2, 8, 128>}, {pipeline_mode = #tpu.pipeline_mode<synchronous>, transform_indices = @transform_1, window_bounds = array<i64: 128, 384>}, {pipeline_mode = #tpu.pipeline_mode<synchronous>, transform_indices = @transform_2, window_bounds = array<i64: 1, 384>}, {pipeline_mode = #tpu.pipeline_mode<synchronous>, transform_indices = @transform_3, window_bounds = array<i64: 128, 128>}, {pipeline_mode = #tpu.pipeline_mode<synchronous>, transform_indices = @transform_4, window_bounds = array<i64: 1, 128>}, {pipeline_mode = #tpu.pipeline_mode<synchronous>, transform_indices = @transform_5, window_bounds = array<i64: 128, 4>}, {pipeline_mode = #tpu.pipeline_mode<synchronous>, transform_indices = @transform_6, window_bounds = array<i64: 1, 4>}, {pipeline_mode = #tpu.pipeline_mode<synchronous>, transform_indices = @transform_7, window_bounds = array<i64: 4, 128, 512>}, {pipeline_mode = #tpu.pipeline_mode<synchronous>, transform_indices = @transform_8, window_bounds = array<i64: 4, 1, 512>}, {pipeline_mode = #tpu.pipeline_mode<synchronous>, transform_indices = @transform_9, window_bounds = array<i64: 4, 512, 128>}, {pipeline_mode = #tpu.pipeline_mode<synchronous>, transform_indices = @transform_10, window_bounds = array<i64: 4, 1, 128>}, {pipeline_mode = #tpu.pipeline_mode<synchronous>, transform_indices = @transform_11, window_bounds = array<i64: 2, 8, 128>}, {pipeline_mode = #tpu.pipeline_mode<synchronous>, transform_indices = @transform_12, window_bounds = array<i64: 2, 8, 128>}, {pipeline_mode = #tpu.pipeline_mode<synchronous>, transform_indices = @transform_13, window_bounds = array<i64: 1, 4>}, {pipeline_mode = #tpu.pipeline_mode<synchronous>, transform_indices = @transform_14, window_bounds = array<i64: 1, 4>}]} {
    %0 = tpu.iota {dimensions = array<i32: 0>} : vector<8x8xi32>
    %1 = tpu.iota {dimensions = array<i32: 1>} : vector<8x8xi32>
    %2 = arith.cmpi sle, %1, %0 : vector<8x8xi32>
    %c0 = arith.constant 0 : index
    %c0_0 = arith.constant 0 : index
    %3 = vector.load %arg2[%c0, %c0_0] : memref<128x384xbf16, #tpu.memory_space<vmem>>, vector<128x384xbf16>
    %c0_1 = arith.constant 0 : index
    %c0_2 = arith.constant 0 : index
    %4 = vector.load %arg3[%c0_1, %c0_2] : memref<1x384xf32, #tpu.memory_space<vmem>>, vector<1x384xf32>
    %c0_3 = arith.constant 0 : index
    %c0_4 = arith.constant 0 : index
    %5 = vector.load %arg4[%c0_3, %c0_4] : memref<128x128xbf16, #tpu.memory_space<vmem>>, vector<128x128xbf16>
    %c0_5 = arith.constant 0 : index
    %c0_6 = arith.constant 0 : index
    %6 = vector.load %arg5[%c0_5, %c0_6] : memref<1x128xf32, #tpu.memory_space<vmem>>, vector<1x128xf32>
    %c0_7 = arith.constant 0 : index
    %c0_8 = arith.constant 0 : index
    %c0_9 = arith.constant 0 : index
    %7 = vector.load %arg1[%c0_7, %c0_8, %c0_9] : memref<2x8x128xf32, #tpu.memory_space<vmem>>, vector<1x8x128xf32>
    %8 = vector.shape_cast %7 : vector<1x8x128xf32> to vector<8x128xf32>
    %9 = arith.truncf %8 : vector<8x128xf32> to vector<8x128xbf16>
    %cst = arith.constant dense<0.000000e+00> : vector<8x384xf32>
    %10 = tpu.matmul %9, %3, %cst {dimension_numbers = #tpu.dot_dimension_numbers<[1], [0], [0], [1], [0, 0, 1, 1], [], []>} : vector<8x128xbf16>, vector<128x384xbf16>, vector<8x384xf32> -> vector<8x384xf32>
    %11 = vector.broadcast %4 : vector<1x384xf32> to vector<8x384xf32>
    %12 = arith.addf %10, %11 : vector<8x384xf32>
    %13 = vector.extract_strided_slice %12 {offsets = [0, 0], sizes = [8, 32], strides = [1, 1]} : vector<8x384xf32> to vector<8x32xf32>
    %14 = vector.extract_strided_slice %12 {offsets = [0, 128], sizes = [8, 32], strides = [1, 1]} : vector<8x384xf32> to vector<8x32xf32>
    %15 = vector.extract_strided_slice %12 {offsets = [0, 256], sizes = [8, 32], strides = [1, 1]} : vector<8x384xf32> to vector<8x32xf32>
    %16 = arith.truncf %13 : vector<8x32xf32> to vector<8x32xbf16>
    %17 = arith.truncf %14 : vector<8x32xf32> to vector<8x32xbf16>
    %cst_10 = arith.constant dense<0.000000e+00> : vector<8x8xf32>
    %18 = tpu.matmul %16, %17, %cst_10 {dimension_numbers = #tpu.dot_dimension_numbers<[1], [1], [0], [0], [0, 0, 1, 0], [], []>} : vector<8x32xbf16>, vector<8x32xbf16>, vector<8x8xf32> -> vector<8x8xf32>
    %cst_11 = arith.constant 0.176776692 : f32
    %19 = vector.broadcast %cst_11 : f32 to vector<8x8xf32>
    %20 = arith.mulf %18, %19 : vector<8x8xf32>
    %cst_12 = arith.constant -3.40282347E+38 : f32
    %21 = vector.broadcast %cst_12 : f32 to vector<8x8xf32>
    %22 = arith.select %2, %20, %21 : vector<8x8xi1>, vector<8x8xf32>
    %cst_13 = arith.constant dense<0xFF800000> : vector<8xf32>
    %23 = vector.multi_reduction <maximumf>, %22, %cst_13 [1] : vector<8x8xf32> to vector<8xf32>
    %24 = vector.shape_cast %23 : vector<8xf32> to vector<8x1xf32>
    %25 = vector.broadcast %24 : vector<8x1xf32> to vector<8x8xf32>
    %26 = arith.subf %22, %25 : vector<8x8xf32>
    %27 = math.exp %26 : vector<8x8xf32>
    %cst_14 = arith.constant dense<0.000000e+00> : vector<8xf32>
    %28 = vector.multi_reduction <add>, %27, %cst_14 [1] : vector<8x8xf32> to vector<8xf32>
    %29 = vector.shape_cast %28 : vector<8xf32> to vector<8x1xf32>
    %30 = tpu.reciprocal %29 {approx = true} : vector<8x1xf32> -> vector<8x1xf32>
    %31 = vector.broadcast %30 : vector<8x1xf32> to vector<8x8xf32>
    %32 = arith.mulf %27, %31 : vector<8x8xf32>
    %33 = arith.truncf %32 : vector<8x8xf32> to vector<8x8xbf16>
    %34 = arith.truncf %15 : vector<8x32xf32> to vector<8x32xbf16>
    %cst_15 = arith.constant dense<0.000000e+00> : vector<8x32xf32>
    %35 = tpu.matmul %33, %34, %cst_15 {dimension_numbers = #tpu.dot_dimension_numbers<[1], [0], [0], [1], [0, 0, 1, 1], [], []>} : vector<8x8xbf16>, vector<8x32xbf16>, vector<8x32xf32> -> vector<8x32xf32>
    %36 = vector.extract_strided_slice %12 {offsets = [0, 32], sizes = [8, 32], strides = [1, 1]} : vector<8x384xf32> to vector<8x32xf32>
    %37 = vector.extract_strided_slice %12 {offsets = [0, 160], sizes = [8, 32], strides = [1, 1]} : vector<8x384xf32> to vector<8x32xf32>
    %38 = vector.extract_strided_slice %12 {offsets = [0, 288], sizes = [8, 32], strides = [1, 1]} : vector<8x384xf32> to vector<8x32xf32>
    %39 = arith.truncf %36 : vector<8x32xf32> to vector<8x32xbf16>
    %40 = arith.truncf %37 : vector<8x32xf32> to vector<8x32xbf16>
    %cst_16 = arith.constant dense<0.000000e+00> : vector<8x8xf32>
    %41 = tpu.matmul %39, %40, %cst_16 {dimension_numbers = #tpu.dot_dimension_numbers<[1], [1], [0], [0], [0, 0, 1, 0], [], []>} : vector<8x32xbf16>, vector<8x32xbf16>, vector<8x8xf32> -> vector<8x8xf32>
    %cst_17 = arith.constant 0.176776692 : f32
    %42 = vector.broadcast %cst_17 : f32 to vector<8x8xf32>
    %43 = arith.mulf %41, %42 : vector<8x8xf32>
    %cst_18 = arith.constant -3.40282347E+38 : f32
    %44 = vector.broadcast %cst_18 : f32 to vector<8x8xf32>
    %45 = arith.select %2, %43, %44 : vector<8x8xi1>, vector<8x8xf32>
    %cst_19 = arith.constant dense<0xFF800000> : vector<8xf32>
    %46 = vector.multi_reduction <maximumf>, %45, %cst_19 [1] : vector<8x8xf32> to vector<8xf32>
    %47 = vector.shape_cast %46 : vector<8xf32> to vector<8x1xf32>
    %48 = vector.broadcast %47 : vector<8x1xf32> to vector<8x8xf32>
    %49 = arith.subf %45, %48 : vector<8x8xf32>
    %50 = math.exp %49 : vector<8x8xf32>
    %cst_20 = arith.constant dense<0.000000e+00> : vector<8xf32>
    %51 = vector.multi_reduction <add>, %50, %cst_20 [1] : vector<8x8xf32> to vector<8xf32>
    %52 = vector.shape_cast %51 : vector<8xf32> to vector<8x1xf32>
    %53 = tpu.reciprocal %52 {approx = true} : vector<8x1xf32> -> vector<8x1xf32>
    %54 = vector.broadcast %53 : vector<8x1xf32> to vector<8x8xf32>
    %55 = arith.mulf %50, %54 : vector<8x8xf32>
    %56 = arith.truncf %55 : vector<8x8xf32> to vector<8x8xbf16>
    %57 = arith.truncf %38 : vector<8x32xf32> to vector<8x32xbf16>
    %cst_21 = arith.constant dense<0.000000e+00> : vector<8x32xf32>
    %58 = tpu.matmul %56, %57, %cst_21 {dimension_numbers = #tpu.dot_dimension_numbers<[1], [0], [0], [1], [0, 0, 1, 1], [], []>} : vector<8x8xbf16>, vector<8x32xbf16>, vector<8x32xf32> -> vector<8x32xf32>
    %59 = vector.extract_strided_slice %12 {offsets = [0, 64], sizes = [8, 32], strides = [1, 1]} : vector<8x384xf32> to vector<8x32xf32>
    %60 = vector.extract_strided_slice %12 {offsets = [0, 192], sizes = [8, 32], strides = [1, 1]} : vector<8x384xf32> to vector<8x32xf32>
    %61 = vector.extract_strided_slice %12 {offsets = [0, 320], sizes = [8, 32], strides = [1, 1]} : vector<8x384xf32> to vector<8x32xf32>
    %62 = arith.truncf %59 : vector<8x32xf32> to vector<8x32xbf16>
    %63 = arith.truncf %60 : vector<8x32xf32> to vector<8x32xbf16>
    %cst_22 = arith.constant dense<0.000000e+00> : vector<8x8xf32>
    %64 = tpu.matmul %62, %63, %cst_22 {dimension_numbers = #tpu.dot_dimension_numbers<[1], [1], [0], [0], [0, 0, 1, 0], [], []>} : vector<8x32xbf16>, vector<8x32xbf16>, vector<8x8xf32> -> vector<8x8xf32>
    %cst_23 = arith.constant 0.176776692 : f32
    %65 = vector.broadcast %cst_23 : f32 to vector<8x8xf32>
    %66 = arith.mulf %64, %65 : vector<8x8xf32>
    %cst_24 = arith.constant -3.40282347E+38 : f32
    %67 = vector.broadcast %cst_24 : f32 to vector<8x8xf32>
    %68 = arith.select %2, %66, %67 : vector<8x8xi1>, vector<8x8xf32>
    %cst_25 = arith.constant dense<0xFF800000> : vector<8xf32>
    %69 = vector.multi_reduction <maximumf>, %68, %cst_25 [1] : vector<8x8xf32> to vector<8xf32>
    %70 = vector.shape_cast %69 : vector<8xf32> to vector<8x1xf32>
    %71 = vector.broadcast %70 : vector<8x1xf32> to vector<8x8xf32>
    %72 = arith.subf %68, %71 : vector<8x8xf32>
    %73 = math.exp %72 : vector<8x8xf32>
    %cst_26 = arith.constant dense<0.000000e+00> : vector<8xf32>
    %74 = vector.multi_reduction <add>, %73, %cst_26 [1] : vector<8x8xf32> to vector<8xf32>
    %75 = vector.shape_cast %74 : vector<8xf32> to vector<8x1xf32>
    %76 = tpu.reciprocal %75 {approx = true} : vector<8x1xf32> -> vector<8x1xf32>
    %77 = vector.broadcast %76 : vector<8x1xf32> to vector<8x8xf32>
    %78 = arith.mulf %73, %77 : vector<8x8xf32>
    %79 = arith.truncf %78 : vector<8x8xf32> to vector<8x8xbf16>
    %80 = arith.truncf %61 : vector<8x32xf32> to vector<8x32xbf16>
    %cst_27 = arith.constant dense<0.000000e+00> : vector<8x32xf32>
    %81 = tpu.matmul %79, %80, %cst_27 {dimension_numbers = #tpu.dot_dimension_numbers<[1], [0], [0], [1], [0, 0, 1, 1], [], []>} : vector<8x8xbf16>, vector<8x32xbf16>, vector<8x32xf32> -> vector<8x32xf32>
    %82 = vector.extract_strided_slice %12 {offsets = [0, 96], sizes = [8, 32], strides = [1, 1]} : vector<8x384xf32> to vector<8x32xf32>
    %83 = vector.extract_strided_slice %12 {offsets = [0, 224], sizes = [8, 32], strides = [1, 1]} : vector<8x384xf32> to vector<8x32xf32>
    %84 = vector.extract_strided_slice %12 {offsets = [0, 352], sizes = [8, 32], strides = [1, 1]} : vector<8x384xf32> to vector<8x32xf32>
    %85 = arith.truncf %82 : vector<8x32xf32> to vector<8x32xbf16>
    %86 = arith.truncf %83 : vector<8x32xf32> to vector<8x32xbf16>
    %cst_28 = arith.constant dense<0.000000e+00> : vector<8x8xf32>
    %87 = tpu.matmul %85, %86, %cst_28 {dimension_numbers = #tpu.dot_dimension_numbers<[1], [1], [0], [0], [0, 0, 1, 0], [], []>} : vector<8x32xbf16>, vector<8x32xbf16>, vector<8x8xf32> -> vector<8x8xf32>
    %cst_29 = arith.constant 0.176776692 : f32
    %88 = vector.broadcast %cst_29 : f32 to vector<8x8xf32>
    %89 = arith.mulf %87, %88 : vector<8x8xf32>
    %cst_30 = arith.constant -3.40282347E+38 : f32
    %90 = vector.broadcast %cst_30 : f32 to vector<8x8xf32>
    %91 = arith.select %2, %89, %90 : vector<8x8xi1>, vector<8x8xf32>
    %cst_31 = arith.constant dense<0xFF800000> : vector<8xf32>
    %92 = vector.multi_reduction <maximumf>, %91, %cst_31 [1] : vector<8x8xf32> to vector<8xf32>
    %93 = vector.shape_cast %92 : vector<8xf32> to vector<8x1xf32>
    %94 = vector.broadcast %93 : vector<8x1xf32> to vector<8x8xf32>
    %95 = arith.subf %91, %94 : vector<8x8xf32>
    %96 = math.exp %95 : vector<8x8xf32>
    %cst_32 = arith.constant dense<0.000000e+00> : vector<8xf32>
    %97 = vector.multi_reduction <add>, %96, %cst_32 [1] : vector<8x8xf32> to vector<8xf32>
    %98 = vector.shape_cast %97 : vector<8xf32> to vector<8x1xf32>
    %99 = tpu.reciprocal %98 {approx = true} : vector<8x1xf32> -> vector<8x1xf32>
    %100 = vector.broadcast %99 : vector<8x1xf32> to vector<8x8xf32>
    %101 = arith.mulf %96, %100 : vector<8x8xf32>
    %102 = arith.truncf %101 : vector<8x8xf32> to vector<8x8xbf16>
    %103 = arith.truncf %84 : vector<8x32xf32> to vector<8x32xbf16>
    %cst_33 = arith.constant dense<0.000000e+00> : vector<8x32xf32>
    %104 = tpu.matmul %102, %103, %cst_33 {dimension_numbers = #tpu.dot_dimension_numbers<[1], [0], [0], [1], [0, 0, 1, 1], [], []>} : vector<8x8xbf16>, vector<8x32xbf16>, vector<8x32xf32> -> vector<8x32xf32>
    %105 = tpu.concatenate %35, %58, %81, %104 in 1 : vector<8x32xf32>, vector<8x32xf32>, vector<8x32xf32>, vector<8x32xf32> -> vector<8x128xf32>
    %106 = arith.truncf %105 : vector<8x128xf32> to vector<8x128xbf16>
    %cst_34 = arith.constant dense<0.000000e+00> : vector<8x128xf32>
    %107 = tpu.matmul %106, %5, %cst_34 {dimension_numbers = #tpu.dot_dimension_numbers<[1], [0], [0], [1], [0, 0, 1, 1], [], []>} : vector<8x128xbf16>, vector<128x128xbf16>, vector<8x128xf32> -> vector<8x128xf32>
    %108 = vector.broadcast %6 : vector<1x128xf32> to vector<8x128xf32>
    %109 = arith.addf %107, %108 : vector<8x128xf32>
    %110 = arith.addf %8, %109 : vector<8x128xf32>
    %c0_35 = arith.constant 0 : index
    %c0_36 = arith.constant 0 : index
    %c0_37 = arith.constant 0 : index
    %111 = vector.load %arg12[%c0_35, %c0_36, %c0_37] : memref<2x8x128xf32, #tpu.memory_space<vmem>>, vector<1x8x128xf32>
    %112 = vector.shape_cast %111 : vector<1x8x128xf32> to vector<8x128xf32>
    %113 = vector.shape_cast %110 : vector<8x128xf32> to vector<1x8x128xf32>
    tpu.vector_store %arg12[%c0_35, %c0_36, %c0_37], %113 {strides = array<i32>} : memref<2x8x128xf32, #tpu.memory_space<vmem>>, vector<1x8x128xf32>,
    %c1 = arith.constant 1 : index
    %c0_38 = arith.constant 0 : index
    %c0_39 = arith.constant 0 : index
    %114 = vector.load %arg1[%c1, %c0_38, %c0_39] : memref<2x8x128xf32, #tpu.memory_space<vmem>>, vector<1x8x128xf32>
    %115 = vector.shape_cast %114 : vector<1x8x128xf32> to vector<8x128xf32>
    %116 = arith.truncf %115 : vector<8x128xf32> to vector<8x128xbf16>
    %cst_40 = arith.constant dense<0.000000e+00> : vector<8x384xf32>
    %117 = tpu.matmul %116, %3, %cst_40 {dimension_numbers = #tpu.dot_dimension_numbers<[1], [0], [0], [1], [0, 0, 1, 1], [], []>} : vector<8x128xbf16>, vector<128x384xbf16>, vector<8x384xf32> -> vector<8x384xf32>
    %118 = vector.broadcast %4 : vector<1x384xf32> to vector<8x384xf32>
    %119 = arith.addf %117, %118 : vector<8x384xf32>
    %120 = vector.extract_strided_slice %119 {offsets = [0, 0], sizes = [8, 32], strides = [1, 1]} : vector<8x384xf32> to vector<8x32xf32>
    %121 = vector.extract_strided_slice %119 {offsets = [0, 128], sizes = [8, 32], strides = [1, 1]} : vector<8x384xf32> to vector<8x32xf32>
    %122 = vector.extract_strided_slice %119 {offsets = [0, 256], sizes = [8, 32], strides = [1, 1]} : vector<8x384xf32> to vector<8x32xf32>
    %123 = arith.truncf %120 : vector<8x32xf32> to vector<8x32xbf16>
    %124 = arith.truncf %121 : vector<8x32xf32> to vector<8x32xbf16>
    %cst_41 = arith.constant dense<0.000000e+00> : vector<8x8xf32>
    %125 = tpu.matmul %123, %124, %cst_41 {dimension_numbers = #tpu.dot_dimension_numbers<[1], [1], [0], [0], [0, 0, 1, 0], [], []>} : vector<8x32xbf16>, vector<8x32xbf16>, vector<8x8xf32> -> vector<8x8xf32>
    %cst_42 = arith.constant 0.176776692 : f32
    %126 = vector.broadcast %cst_42 : f32 to vector<8x8xf32>
    %127 = arith.mulf %125, %126 : vector<8x8xf32>
    %cst_43 = arith.constant -3.40282347E+38 : f32
    %128 = vector.broadcast %cst_43 : f32 to vector<8x8xf32>
    %129 = arith.select %2, %127, %128 : vector<8x8xi1>, vector<8x8xf32>
    %cst_44 = arith.constant dense<0xFF800000> : vector<8xf32>
    %130 = vector.multi_reduction <maximumf>, %129, %cst_44 [1] : vector<8x8xf32> to vector<8xf32>
    %131 = vector.shape_cast %130 : vector<8xf32> to vector<8x1xf32>
    %132 = vector.broadcast %131 : vector<8x1xf32> to vector<8x8xf32>
    %133 = arith.subf %129, %132 : vector<8x8xf32>
    %134 = math.exp %133 : vector<8x8xf32>
    %cst_45 = arith.constant dense<0.000000e+00> : vector<8xf32>
    %135 = vector.multi_reduction <add>, %134, %cst_45 [1] : vector<8x8xf32> to vector<8xf32>
    %136 = vector.shape_cast %135 : vector<8xf32> to vector<8x1xf32>
    %137 = tpu.reciprocal %136 {approx = true} : vector<8x1xf32> -> vector<8x1xf32>
    %138 = vector.broadcast %137 : vector<8x1xf32> to vector<8x8xf32>
    %139 = arith.mulf %134, %138 : vector<8x8xf32>
    %140 = arith.truncf %139 : vector<8x8xf32> to vector<8x8xbf16>
    %141 = arith.truncf %122 : vector<8x32xf32> to vector<8x32xbf16>
    %cst_46 = arith.constant dense<0.000000e+00> : vector<8x32xf32>
    %142 = tpu.matmul %140, %141, %cst_46 {dimension_numbers = #tpu.dot_dimension_numbers<[1], [0], [0], [1], [0, 0, 1, 1], [], []>} : vector<8x8xbf16>, vector<8x32xbf16>, vector<8x32xf32> -> vector<8x32xf32>
    %143 = vector.extract_strided_slice %119 {offsets = [0, 32], sizes = [8, 32], strides = [1, 1]} : vector<8x384xf32> to vector<8x32xf32>
    %144 = vector.extract_strided_slice %119 {offsets = [0, 160], sizes = [8, 32], strides = [1, 1]} : vector<8x384xf32> to vector<8x32xf32>
    %145 = vector.extract_strided_slice %119 {offsets = [0, 288], sizes = [8, 32], strides = [1, 1]} : vector<8x384xf32> to vector<8x32xf32>
    %146 = arith.truncf %143 : vector<8x32xf32> to vector<8x32xbf16>
    %147 = arith.truncf %144 : vector<8x32xf32> to vector<8x32xbf16>
    %cst_47 = arith.constant dense<0.000000e+00> : vector<8x8xf32>
    %148 = tpu.matmul %146, %147, %cst_47 {dimension_numbers = #tpu.dot_dimension_numbers<[1], [1], [0], [0], [0, 0, 1, 0], [], []>} : vector<8x32xbf16>, vector<8x32xbf16>, vector<8x8xf32> -> vector<8x8xf32>
    %cst_48 = arith.constant 0.176776692 : f32
    %149 = vector.broadcast %cst_48 : f32 to vector<8x8xf32>
    %150 = arith.mulf %148, %149 : vector<8x8xf32>
    %cst_49 = arith.constant -3.40282347E+38 : f32
    %151 = vector.broadcast %cst_49 : f32 to vector<8x8xf32>
    %152 = arith.select %2, %150, %151 : vector<8x8xi1>, vector<8x8xf32>
    %cst_50 = arith.constant dense<0xFF800000> : vector<8xf32>
    %153 = vector.multi_reduction <maximumf>, %152, %cst_50 [1] : vector<8x8xf32> to vector<8xf32>
    %154 = vector.shape_cast %153 : vector<8xf32> to vector<8x1xf32>
    %155 = vector.broadcast %154 : vector<8x1xf32> to vector<8x8xf32>
    %156 = arith.subf %152, %155 : vector<8x8xf32>
    %157 = math.exp %156 : vector<8x8xf32>
    %cst_51 = arith.constant dense<0.000000e+00> : vector<8xf32>
    %158 = vector.multi_reduction <add>, %157, %cst_51 [1] : vector<8x8xf32> to vector<8xf32>
    %159 = vector.shape_cast %158 : vector<8xf32> to vector<8x1xf32>
    %160 = tpu.reciprocal %159 {approx = true} : vector<8x1xf32> -> vector<8x1xf32>
    %161 = vector.broadcast %160 : vector<8x1xf32> to vector<8x8xf32>
    %162 = arith.mulf %157, %161 : vector<8x8xf32>
    %163 = arith.truncf %162 : vector<8x8xf32> to vector<8x8xbf16>
    %164 = arith.truncf %145 : vector<8x32xf32> to vector<8x32xbf16>
    %cst_52 = arith.constant dense<0.000000e+00> : vector<8x32xf32>
    %165 = tpu.matmul %163, %164, %cst_52 {dimension_numbers = #tpu.dot_dimension_numbers<[1], [0], [0], [1], [0, 0, 1, 1], [], []>} : vector<8x8xbf16>, vector<8x32xbf16>, vector<8x32xf32> -> vector<8x32xf32>
    %166 = vector.extract_strided_slice %119 {offsets = [0, 64], sizes = [8, 32], strides = [1, 1]} : vector<8x384xf32> to vector<8x32xf32>
    %167 = vector.extract_strided_slice %119 {offsets = [0, 192], sizes = [8, 32], strides = [1, 1]} : vector<8x384xf32> to vector<8x32xf32>
    %168 = vector.extract_strided_slice %119 {offsets = [0, 320], sizes = [8, 32], strides = [1, 1]} : vector<8x384xf32> to vector<8x32xf32>
    %169 = arith.truncf %166 : vector<8x32xf32> to vector<8x32xbf16>
    %170 = arith.truncf %167 : vector<8x32xf32> to vector<8x32xbf16>
    %cst_53 = arith.constant dense<0.000000e+00> : vector<8x8xf32>
    %171 = tpu.matmul %169, %170, %cst_53 {dimension_numbers = #tpu.dot_dimension_numbers<[1], [1], [0], [0], [0, 0, 1, 0], [], []>} : vector<8x32xbf16>, vector<8x32xbf16>, vector<8x8xf32> -> vector<8x8xf32>
    %cst_54 = arith.constant 0.176776692 : f32
    %172 = vector.broadcast %cst_54 : f32 to vector<8x8xf32>
    %173 = arith.mulf %171, %172 : vector<8x8xf32>
    %cst_55 = arith.constant -3.40282347E+38 : f32
    %174 = vector.broadcast %cst_55 : f32 to vector<8x8xf32>
    %175 = arith.select %2, %173, %174 : vector<8x8xi1>, vector<8x8xf32>
    %cst_56 = arith.constant dense<0xFF800000> : vector<8xf32>
    %176 = vector.multi_reduction <maximumf>, %175, %cst_56 [1] : vector<8x8xf32> to vector<8xf32>
    %177 = vector.shape_cast %176 : vector<8xf32> to vector<8x1xf32>
    %178 = vector.broadcast %177 : vector<8x1xf32> to vector<8x8xf32>
    %179 = arith.subf %175, %178 : vector<8x8xf32>
    %180 = math.exp %179 : vector<8x8xf32>
    %cst_57 = arith.constant dense<0.000000e+00> : vector<8xf32>
    %181 = vector.multi_reduction <add>, %180, %cst_57 [1] : vector<8x8xf32> to vector<8xf32>
    %182 = vector.shape_cast %181 : vector<8xf32> to vector<8x1xf32>
    %183 = tpu.reciprocal %182 {approx = true} : vector<8x1xf32> -> vector<8x1xf32>
    %184 = vector.broadcast %183 : vector<8x1xf32> to vector<8x8xf32>
    %185 = arith.mulf %180, %184 : vector<8x8xf32>
    %186 = arith.truncf %185 : vector<8x8xf32> to vector<8x8xbf16>
    %187 = arith.truncf %168 : vector<8x32xf32> to vector<8x32xbf16>
    %cst_58 = arith.constant dense<0.000000e+00> : vector<8x32xf32>
    %188 = tpu.matmul %186, %187, %cst_58 {dimension_numbers = #tpu.dot_dimension_numbers<[1], [0], [0], [1], [0, 0, 1, 1], [], []>} : vector<8x8xbf16>, vector<8x32xbf16>, vector<8x32xf32> -> vector<8x32xf32>
    %189 = vector.extract_strided_slice %119 {offsets = [0, 96], sizes = [8, 32], strides = [1, 1]} : vector<8x384xf32> to vector<8x32xf32>
    %190 = vector.extract_strided_slice %119 {offsets = [0, 224], sizes = [8, 32], strides = [1, 1]} : vector<8x384xf32> to vector<8x32xf32>
    %191 = vector.extract_strided_slice %119 {offsets = [0, 352], sizes = [8, 32], strides = [1, 1]} : vector<8x384xf32> to vector<8x32xf32>
    %192 = arith.truncf %189 : vector<8x32xf32> to vector<8x32xbf16>
    %193 = arith.truncf %190 : vector<8x32xf32> to vector<8x32xbf16>
    %cst_59 = arith.constant dense<0.000000e+00> : vector<8x8xf32>
    %194 = tpu.matmul %192, %193, %cst_59 {dimension_numbers = #tpu.dot_dimension_numbers<[1], [1], [0], [0], [0, 0, 1, 0], [], []>} : vector<8x32xbf16>, vector<8x32xbf16>, vector<8x8xf32> -> vector<8x8xf32>
    %cst_60 = arith.constant 0.176776692 : f32
    %195 = vector.broadcast %cst_60 : f32 to vector<8x8xf32>
    %196 = arith.mulf %194, %195 : vector<8x8xf32>
    %cst_61 = arith.constant -3.40282347E+38 : f32
    %197 = vector.broadcast %cst_61 : f32 to vector<8x8xf32>
    %198 = arith.select %2, %196, %197 : vector<8x8xi1>, vector<8x8xf32>
    %cst_62 = arith.constant dense<0xFF800000> : vector<8xf32>
    %199 = vector.multi_reduction <maximumf>, %198, %cst_62 [1] : vector<8x8xf32> to vector<8xf32>
    %200 = vector.shape_cast %199 : vector<8xf32> to vector<8x1xf32>
    %201 = vector.broadcast %200 : vector<8x1xf32> to vector<8x8xf32>
    %202 = arith.subf %198, %201 : vector<8x8xf32>
    %203 = math.exp %202 : vector<8x8xf32>
    %cst_63 = arith.constant dense<0.000000e+00> : vector<8xf32>
    %204 = vector.multi_reduction <add>, %203, %cst_63 [1] : vector<8x8xf32> to vector<8xf32>
    %205 = vector.shape_cast %204 : vector<8xf32> to vector<8x1xf32>
    %206 = tpu.reciprocal %205 {approx = true} : vector<8x1xf32> -> vector<8x1xf32>
    %207 = vector.broadcast %206 : vector<8x1xf32> to vector<8x8xf32>
    %208 = arith.mulf %203, %207 : vector<8x8xf32>
    %209 = arith.truncf %208 : vector<8x8xf32> to vector<8x8xbf16>
    %210 = arith.truncf %191 : vector<8x32xf32> to vector<8x32xbf16>
    %cst_64 = arith.constant dense<0.000000e+00> : vector<8x32xf32>
    %211 = tpu.matmul %209, %210, %cst_64 {dimension_numbers = #tpu.dot_dimension_numbers<[1], [0], [0], [1], [0, 0, 1, 1], [], []>} : vector<8x8xbf16>, vector<8x32xbf16>, vector<8x32xf32> -> vector<8x32xf32>
    %212 = tpu.concatenate %142, %165, %188, %211 in 1 : vector<8x32xf32>, vector<8x32xf32>, vector<8x32xf32>, vector<8x32xf32> -> vector<8x128xf32>
    %213 = arith.truncf %212 : vector<8x128xf32> to vector<8x128xbf16>
    %cst_65 = arith.constant dense<0.000000e+00> : vector<8x128xf32>
    %214 = tpu.matmul %213, %5, %cst_65 {dimension_numbers = #tpu.dot_dimension_numbers<[1], [0], [0], [1], [0, 0, 1, 1], [], []>} : vector<8x128xbf16>, vector<128x128xbf16>, vector<8x128xf32> -> vector<8x128xf32>
    %215 = vector.broadcast %6 : vector<1x128xf32> to vector<8x128xf32>
    %216 = arith.addf %214, %215 : vector<8x128xf32>
    %217 = arith.addf %115, %216 : vector<8x128xf32>
    %c1_66 = arith.constant 1 : index
    %c0_67 = arith.constant 0 : index
    %c0_68 = arith.constant 0 : index
    %218 = vector.load %arg12[%c1_66, %c0_67, %c0_68] : memref<2x8x128xf32, #tpu.memory_space<vmem>>, vector<1x8x128xf32>
    %219 = vector.shape_cast %218 : vector<1x8x128xf32> to vector<8x128xf32>
    %220 = vector.shape_cast %217 : vector<8x128xf32> to vector<1x8x128xf32>
    tpu.vector_store %arg12[%c1_66, %c0_67, %c0_68], %220 {strides = array<i32>} : memref<2x8x128xf32, #tpu.memory_space<vmem>>, vector<1x8x128xf32>,
    %221 = tpu.concatenate %110, %217 in 0 : vector<8x128xf32>, vector<8x128xf32> -> vector<16x128xf32>
    %222 = arith.truncf %221 : vector<16x128xf32> to vector<16x128xbf16>
    %c0_69 = arith.constant 0 : index
    %c0_70 = arith.constant 0 : index
    %223 = vector.load %arg6[%c0_69, %c0_70] : memref<128x4xf32, #tpu.memory_space<vmem>>, vector<128x4xf32>
    %cst_71 = arith.constant dense<0.000000e+00> : vector<16x4xf32>
    %224 = tpu.matmul %221, %223, %cst_71 {dimension_numbers = #tpu.dot_dimension_numbers<[1], [0], [0], [1], [0, 0, 1, 1], [], []>} : vector<16x128xf32>, vector<128x4xf32>, vector<16x4xf32> -> vector<16x4xf32>
    %c0_72 = arith.constant 0 : index
    %c0_73 = arith.constant 0 : index
    %225 = vector.load %arg7[%c0_72, %c0_73] : memref<1x4xf32, #tpu.memory_space<vmem>>, vector<1x4xf32>
    %226 = vector.broadcast %225 : vector<1x4xf32> to vector<16x4xf32>
    %227 = arith.addf %224, %226 : vector<16x4xf32>
    %cst_74 = arith.constant dense<0xFF800000> : vector<16xf32>
    %228 = vector.multi_reduction <maximumf>, %227, %cst_74 [1] : vector<16x4xf32> to vector<16xf32>
    %229 = vector.shape_cast %228 : vector<16xf32> to vector<16x1xf32>
    %230 = vector.broadcast %229 : vector<16x1xf32> to vector<16x4xf32>
    %231 = arith.subf %227, %230 : vector<16x4xf32>
    %232 = math.exp %231 : vector<16x4xf32>
    %cst_75 = arith.constant dense<0.000000e+00> : vector<16xf32>
    %233 = vector.multi_reduction <add>, %232, %cst_75 [1] : vector<16x4xf32> to vector<16xf32>
    %234 = vector.shape_cast %233 : vector<16xf32> to vector<16x1xf32>
    %235 = tpu.reciprocal %234 {approx = true} : vector<16x1xf32> -> vector<16x1xf32>
    %236 = vector.broadcast %235 : vector<16x1xf32> to vector<16x4xf32>
    %237 = arith.mulf %232, %236 : vector<16x4xf32>
    %238 = tpu.iota {dimensions = array<i32: 1>} : vector<16x4xi32>
    %false = arith.constant false
    %239 = vector.broadcast %false : i1 to vector<16x4xi1>
    %cst_76 = arith.constant dense<0xFF800000> : vector<16xf32>
    %240 = vector.multi_reduction <maximumf>, %237, %cst_76 [1] : vector<16x4xf32> to vector<16xf32>
    %241 = vector.shape_cast %240 : vector<16xf32> to vector<16x1xf32>
    %242 = vector.broadcast %241 : vector<16x1xf32> to vector<16x4xf32>
    %243 = arith.cmpf oeq, %237, %242 : vector<16x4xf32>
    %c4_i32 = arith.constant 4 : i32
    %244 = vector.broadcast %c4_i32 : i32 to vector<16x4xi32>
    %245 = arith.select %243, %238, %244 : vector<16x4xi1>, vector<16x4xi32>
    %cst_77 = arith.constant dense<2147483647> : vector<16xi32>
    %246 = vector.multi_reduction <minsi>, %245, %cst_77 [1] : vector<16x4xi32> to vector<16xi32>
    %247 = vector.shape_cast %246 : vector<16xi32> to vector<16x1xi32>
    %248 = vector.broadcast %247 : vector<16x1xi32> to vector<16x4xi32>
    %249 = arith.cmpi eq, %238, %248 : vector<16x4xi32>
    %250 = arith.ori %239, %249 : vector<16x4xi1>
    %cst_78 = arith.constant 0xFF800000 : f32
    %251 = vector.broadcast %cst_78 : f32 to vector<16x4xf32>
    %252 = arith.select %249, %251, %237 : vector<16x4xi1>, vector<16x4xf32>
    %cst_79 = arith.constant dense<0xFF800000> : vector<16xf32>
    %253 = vector.multi_reduction <maximumf>, %252, %cst_79 [1] : vector<16x4xf32> to vector<16xf32>
    %254 = vector.shape_cast %253 : vector<16xf32> to vector<16x1xf32>
    %255 = vector.broadcast %254 : vector<16x1xf32> to vector<16x4xf32>
    %256 = arith.cmpf oeq, %252, %255 : vector<16x4xf32>
    %c4_i32_80 = arith.constant 4 : i32
    %257 = vector.broadcast %c4_i32_80 : i32 to vector<16x4xi32>
    %258 = arith.select %256, %238, %257 : vector<16x4xi1>, vector<16x4xi32>
    %cst_81 = arith.constant dense<2147483647> : vector<16xi32>
    %259 = vector.multi_reduction <minsi>, %258, %cst_81 [1] : vector<16x4xi32> to vector<16xi32>
    %260 = vector.shape_cast %259 : vector<16xi32> to vector<16x1xi32>
    %261 = vector.broadcast %260 : vector<16x1xi32> to vector<16x4xi32>
    %262 = arith.cmpi eq, %238, %261 : vector<16x4xi32>
    %263 = arith.ori %250, %262 : vector<16x4xi1>
    %cst_82 = arith.constant 0.000000e+00 : f32
    %264 = vector.broadcast %cst_82 : f32 to vector<16x4xf32>
    %265 = arith.select %263, %237, %264 : vector<16x4xi1>, vector<16x4xf32>
    %cst_83 = arith.constant dense<0.000000e+00> : vector<16xf32>
    %266 = vector.multi_reduction <add>, %265, %cst_83 [1] : vector<16x4xf32> to vector<16xf32>
    %267 = vector.shape_cast %266 : vector<16xf32> to vector<16x1xf32>
    %268 = tpu.reciprocal %267 {approx = true} : vector<16x1xf32> -> vector<16x1xf32>
    %269 = vector.broadcast %268 : vector<16x1xf32> to vector<16x4xf32>
    %270 = arith.mulf %265, %269 : vector<16x4xf32>
    %271 = arith.extui %263 : vector<16x4xi1> to vector<16x4xi32>
    %272 = arith.sitofp %271 : vector<16x4xi32> to vector<16x4xf32>
    %cst_84 = arith.constant dense<0.000000e+00> : vector<4xf32>
    %273 = vector.multi_reduction <add>, %272, %cst_84 [0] : vector<16x4xf32> to vector<4xf32>
    %274 = vector.shape_cast %273 : vector<4xf32> to vector<1x4xf32>
    %c0_85 = arith.constant 0 : index
    %c0_86 = arith.constant 0 : index
    %275 = vector.load %arg14[%c0_85, %c0_86] : memref<1x4xf32, #tpu.memory_space<vmem>>, vector<1x4xf32>
    tpu.vector_store %arg14[%c0_85, %c0_86], %274 {strides = array<i32>} : memref<1x4xf32, #tpu.memory_space<vmem>>, vector<1x4xf32>,
    %cst_87 = arith.constant dense<0.000000e+00> : vector<4xf32>
    %276 = vector.multi_reduction <add>, %237, %cst_87 [0] : vector<16x4xf32> to vector<4xf32>
    %277 = vector.shape_cast %276 : vector<4xf32> to vector<1x4xf32>
    %c0_88 = arith.constant 0 : index
    %c0_89 = arith.constant 0 : index
    %278 = vector.load %arg15[%c0_88, %c0_89] : memref<1x4xf32, #tpu.memory_space<vmem>>, vector<1x4xf32>
    tpu.vector_store %arg15[%c0_88, %c0_89], %277 {strides = array<i32>} : memref<1x4xf32, #tpu.memory_space<vmem>>, vector<1x4xf32>,
    %cst_90 = arith.constant 0.000000e+00 : f32
    %279 = vector.broadcast %cst_90 : f32 to vector<16x128xf32>
    %c0_91 = arith.constant 0 : index
    %c0_92 = arith.constant 0 : index
    %c0_93 = arith.constant 0 : index
    %280 = vector.load %arg8[%c0_91, %c0_92, %c0_93] : memref<4x128x512xbf16, #tpu.memory_space<vmem>>, vector<1x128x512xbf16>
    %281 = vector.shape_cast %280 : vector<1x128x512xbf16> to vector<128x512xbf16>
    %cst_94 = arith.constant dense<0.000000e+00> : vector<16x512xf32>
    %282 = tpu.matmul %222, %281, %cst_94 {dimension_numbers = #tpu.dot_dimension_numbers<[1], [0], [0], [1], [0, 0, 1, 1], [], []>} : vector<16x128xbf16>, vector<128x512xbf16>, vector<16x512xf32> -> vector<16x512xf32>
    %c0_95 = arith.constant 0 : index
    %c0_96 = arith.constant 0 : index
    %c0_97 = arith.constant 0 : index
    %283 = vector.load %arg9[%c0_95, %c0_96, %c0_97] : memref<4x1x512xf32, #tpu.memory_space<vmem>>, vector<1x1x512xf32>
    %284 = vector.shape_cast %283 : vector<1x1x512xf32> to vector<1x512xf32>
    %285 = vector.broadcast %284 : vector<1x512xf32> to vector<16x512xf32>
    %286 = arith.addf %282, %285 : vector<16x512xf32>
    %cst_98 = arith.constant 5.000000e-01 : f32
    %287 = vector.broadcast %cst_98 : f32 to vector<16x512xf32>
    %288 = arith.mulf %287, %286 : vector<16x512xf32>
    %cst_99 = arith.constant 0.707106769 : f32
    %289 = vector.broadcast %cst_99 : f32 to vector<16x512xf32>
    %290 = arith.mulf %286, %289 : vector<16x512xf32>
    %291 = math.absf %290 : vector<16x512xf32>
    %cst_100 = arith.constant 0.327591091 : f32
    %292 = vector.broadcast %cst_100 : f32 to vector<16x512xf32>
    %293 = arith.mulf %292, %291 : vector<16x512xf32>
    %cst_101 = arith.constant 1.000000e+00 : f32
    %294 = vector.broadcast %cst_101 : f32 to vector<16x512xf32>
    %295 = arith.addf %294, %293 : vector<16x512xf32>
    %cst_102 = arith.constant 1.000000e+00 : f32
    %296 = vector.broadcast %cst_102 : f32 to vector<16x512xf32>
    %297 = arith.divf %296, %295 : vector<16x512xf32>
    %cst_103 = arith.constant 1.06140542 : f32
    %298 = vector.broadcast %cst_103 : f32 to vector<16x512xf32>
    %299 = arith.mulf %298, %297 : vector<16x512xf32>
    %cst_104 = arith.constant 1.45315206 : f32
    %300 = vector.broadcast %cst_104 : f32 to vector<16x512xf32>
    %301 = arith.subf %299, %300 : vector<16x512xf32>
    %302 = arith.mulf %301, %297 : vector<16x512xf32>
    %cst_105 = arith.constant 1.42141378 : f32
    %303 = vector.broadcast %cst_105 : f32 to vector<16x512xf32>
    %304 = arith.addf %302, %303 : vector<16x512xf32>
    %305 = arith.mulf %304, %297 : vector<16x512xf32>
    %cst_106 = arith.constant 0.284496725 : f32
    %306 = vector.broadcast %cst_106 : f32 to vector<16x512xf32>
    %307 = arith.subf %305, %306 : vector<16x512xf32>
    %308 = arith.mulf %307, %297 : vector<16x512xf32>
    %cst_107 = arith.constant 0.254829586 : f32
    %309 = vector.broadcast %cst_107 : f32 to vector<16x512xf32>
    %310 = arith.addf %308, %309 : vector<16x512xf32>
    %311 = arith.mulf %310, %297 : vector<16x512xf32>
    %cst_108 = arith.constant 0.000000e+00 : f32
    %312 = vector.broadcast %cst_108 : f32 to vector<16x512xf32>
    %313 = arith.subf %312, %291 : vector<16x512xf32>
    %314 = arith.mulf %313, %291 : vector<16x512xf32>
    %315 = math.exp %314 : vector<16x512xf32>
    %316 = arith.mulf %311, %315 : vector<16x512xf32>
    %cst_109 = arith.constant 1.000000e+00 : f32
    %317 = vector.broadcast %cst_109 : f32 to vector<16x512xf32>
    %318 = arith.subf %317, %316 : vector<16x512xf32>
    %cst_110 = arith.constant 0.000000e+00 : f32
    %319 = vector.broadcast %cst_110 : f32 to vector<16x512xf32>
    %320 = arith.cmpf olt, %290, %319 : vector<16x512xf32>
    %cst_111 = arith.constant 0.000000e+00 : f32
    %321 = vector.broadcast %cst_111 : f32 to vector<16x512xf32>
    %322 = arith.subf %321, %318 : vector<16x512xf32>
    %323 = arith.select %320, %322, %318 : vector<16x512xi1>, vector<16x512xf32>
    %cst_112 = arith.constant 1.000000e+00 : f32
    %324 = vector.broadcast %cst_112 : f32 to vector<16x512xf32>
    %325 = arith.addf %324, %323 : vector<16x512xf32>
    %326 = arith.mulf %288, %325 : vector<16x512xf32>
    %327 = arith.truncf %326 : vector<16x512xf32> to vector<16x512xbf16>
    %c0_113 = arith.constant 0 : index
    %c0_114 = arith.constant 0 : index
    %c0_115 = arith.constant 0 : index
    %328 = vector.load %arg10[%c0_113, %c0_114, %c0_115] : memref<4x512x128xbf16, #tpu.memory_space<vmem>>, vector<1x512x128xbf16>
    %329 = vector.shape_cast %328 : vector<1x512x128xbf16> to vector<512x128xbf16>
    %cst_116 = arith.constant dense<0.000000e+00> : vector<16x128xf32>
    %330 = tpu.matmul %327, %329, %cst_116 {dimension_numbers = #tpu.dot_dimension_numbers<[1], [0], [0], [1], [0, 0, 1, 1], [], []>} : vector<16x512xbf16>, vector<512x128xbf16>, vector<16x128xf32> -> vector<16x128xf32>
    %c0_117 = arith.constant 0 : index
    %c0_118 = arith.constant 0 : index
    %c0_119 = arith.constant 0 : index
    %331 = vector.load %arg11[%c0_117, %c0_118, %c0_119] : memref<4x1x128xf32, #tpu.memory_space<vmem>>, vector<1x1x128xf32>
    %332 = vector.shape_cast %331 : vector<1x1x128xf32> to vector<1x128xf32>
    %333 = vector.broadcast %332 : vector<1x128xf32> to vector<16x128xf32>
    %334 = arith.addf %330, %333 : vector<16x128xf32>
    %335 = vector.extract_strided_slice %270 {offsets = [0, 0], sizes = [16, 1], strides = [1, 1]} : vector<16x4xf32> to vector<16x1xf32>
    %336 = vector.broadcast %335 : vector<16x1xf32> to vector<16x128xf32>
    %337 = arith.mulf %336, %334 : vector<16x128xf32>
    %338 = arith.addf %279, %337 : vector<16x128xf32>
    %c1_120 = arith.constant 1 : index
    %c0_121 = arith.constant 0 : index
    %c0_122 = arith.constant 0 : index
    %339 = vector.load %arg8[%c1_120, %c0_121, %c0_122] : memref<4x128x512xbf16, #tpu.memory_space<vmem>>, vector<1x128x512xbf16>
    %340 = vector.shape_cast %339 : vector<1x128x512xbf16> to vector<128x512xbf16>
    %cst_123 = arith.constant dense<0.000000e+00> : vector<16x512xf32>
    %341 = tpu.matmul %222, %340, %cst_123 {dimension_numbers = #tpu.dot_dimension_numbers<[1], [0], [0], [1], [0, 0, 1, 1], [], []>} : vector<16x128xbf16>, vector<128x512xbf16>, vector<16x512xf32> -> vector<16x512xf32>
    %c1_124 = arith.constant 1 : index
    %c0_125 = arith.constant 0 : index
    %c0_126 = arith.constant 0 : index
    %342 = vector.load %arg9[%c1_124, %c0_125, %c0_126] : memref<4x1x512xf32, #tpu.memory_space<vmem>>, vector<1x1x512xf32>
    %343 = vector.shape_cast %342 : vector<1x1x512xf32> to vector<1x512xf32>
    %344 = vector.broadcast %343 : vector<1x512xf32> to vector<16x512xf32>
    %345 = arith.addf %341, %344 : vector<16x512xf32>
    %cst_127 = arith.constant 5.000000e-01 : f32
    %346 = vector.broadcast %cst_127 : f32 to vector<16x512xf32>
    %347 = arith.mulf %346, %345 : vector<16x512xf32>
    %cst_128 = arith.constant 0.707106769 : f32
    %348 = vector.broadcast %cst_128 : f32 to vector<16x512xf32>
    %349 = arith.mulf %345, %348 : vector<16x512xf32>
    %350 = math.absf %349 : vector<16x512xf32>
    %cst_129 = arith.constant 0.327591091 : f32
    %351 = vector.broadcast %cst_129 : f32 to vector<16x512xf32>
    %352 = arith.mulf %351, %350 : vector<16x512xf32>
    %cst_130 = arith.constant 1.000000e+00 : f32
    %353 = vector.broadcast %cst_130 : f32 to vector<16x512xf32>
    %354 = arith.addf %353, %352 : vector<16x512xf32>
    %cst_131 = arith.constant 1.000000e+00 : f32
    %355 = vector.broadcast %cst_131 : f32 to vector<16x512xf32>
    %356 = arith.divf %355, %354 : vector<16x512xf32>
    %cst_132 = arith.constant 1.06140542 : f32
    %357 = vector.broadcast %cst_132 : f32 to vector<16x512xf32>
    %358 = arith.mulf %357, %356 : vector<16x512xf32>
    %cst_133 = arith.constant 1.45315206 : f32
    %359 = vector.broadcast %cst_133 : f32 to vector<16x512xf32>
    %360 = arith.subf %358, %359 : vector<16x512xf32>
    %361 = arith.mulf %360, %356 : vector<16x512xf32>
    %cst_134 = arith.constant 1.42141378 : f32
    %362 = vector.broadcast %cst_134 : f32 to vector<16x512xf32>
    %363 = arith.addf %361, %362 : vector<16x512xf32>
    %364 = arith.mulf %363, %356 : vector<16x512xf32>
    %cst_135 = arith.constant 0.284496725 : f32
    %365 = vector.broadcast %cst_135 : f32 to vector<16x512xf32>
    %366 = arith.subf %364, %365 : vector<16x512xf32>
    %367 = arith.mulf %366, %356 : vector<16x512xf32>
    %cst_136 = arith.constant 0.254829586 : f32
    %368 = vector.broadcast %cst_136 : f32 to vector<16x512xf32>
    %369 = arith.addf %367, %368 : vector<16x512xf32>
    %370 = arith.mulf %369, %356 : vector<16x512xf32>
    %cst_137 = arith.constant 0.000000e+00 : f32
    %371 = vector.broadcast %cst_137 : f32 to vector<16x512xf32>
    %372 = arith.subf %371, %350 : vector<16x512xf32>
    %373 = arith.mulf %372, %350 : vector<16x512xf32>
    %374 = math.exp %373 : vector<16x512xf32>
    %375 = arith.mulf %370, %374 : vector<16x512xf32>
    %cst_138 = arith.constant 1.000000e+00 : f32
    %376 = vector.broadcast %cst_138 : f32 to vector<16x512xf32>
    %377 = arith.subf %376, %375 : vector<16x512xf32>
    %cst_139 = arith.constant 0.000000e+00 : f32
    %378 = vector.broadcast %cst_139 : f32 to vector<16x512xf32>
    %379 = arith.cmpf olt, %349, %378 : vector<16x512xf32>
    %cst_140 = arith.constant 0.000000e+00 : f32
    %380 = vector.broadcast %cst_140 : f32 to vector<16x512xf32>
    %381 = arith.subf %380, %377 : vector<16x512xf32>
    %382 = arith.select %379, %381, %377 : vector<16x512xi1>, vector<16x512xf32>
    %cst_141 = arith.constant 1.000000e+00 : f32
    %383 = vector.broadcast %cst_141 : f32 to vector<16x512xf32>
    %384 = arith.addf %383, %382 : vector<16x512xf32>
    %385 = arith.mulf %347, %384 : vector<16x512xf32>
    %386 = arith.truncf %385 : vector<16x512xf32> to vector<16x512xbf16>
    %c1_142 = arith.constant 1 : index
    %c0_143 = arith.constant 0 : index
    %c0_144 = arith.constant 0 : index
    %387 = vector.load %arg10[%c1_142, %c0_143, %c0_144] : memref<4x512x128xbf16, #tpu.memory_space<vmem>>, vector<1x512x128xbf16>
    %388 = vector.shape_cast %387 : vector<1x512x128xbf16> to vector<512x128xbf16>
    %cst_145 = arith.constant dense<0.000000e+00> : vector<16x128xf32>
    %389 = tpu.matmul %386, %388, %cst_145 {dimension_numbers = #tpu.dot_dimension_numbers<[1], [0], [0], [1], [0, 0, 1, 1], [], []>} : vector<16x512xbf16>, vector<512x128xbf16>, vector<16x128xf32> -> vector<16x128xf32>
    %c1_146 = arith.constant 1 : index
    %c0_147 = arith.constant 0 : index
    %c0_148 = arith.constant 0 : index
    %390 = vector.load %arg11[%c1_146, %c0_147, %c0_148] : memref<4x1x128xf32, #tpu.memory_space<vmem>>, vector<1x1x128xf32>
    %391 = vector.shape_cast %390 : vector<1x1x128xf32> to vector<1x128xf32>
    %392 = vector.broadcast %391 : vector<1x128xf32> to vector<16x128xf32>
    %393 = arith.addf %389, %392 : vector<16x128xf32>
    %394 = vector.extract_strided_slice %270 {offsets = [0, 1], sizes = [16, 1], strides = [1, 1]} : vector<16x4xf32> to vector<16x1xf32>
    %395 = vector.broadcast %394 : vector<16x1xf32> to vector<16x128xf32>
    %396 = arith.mulf %395, %393 : vector<16x128xf32>
    %397 = arith.addf %338, %396 : vector<16x128xf32>
    %c2 = arith.constant 2 : index
    %c0_149 = arith.constant 0 : index
    %c0_150 = arith.constant 0 : index
    %398 = vector.load %arg8[%c2, %c0_149, %c0_150] : memref<4x128x512xbf16, #tpu.memory_space<vmem>>, vector<1x128x512xbf16>
    %399 = vector.shape_cast %398 : vector<1x128x512xbf16> to vector<128x512xbf16>
    %cst_151 = arith.constant dense<0.000000e+00> : vector<16x512xf32>
    %400 = tpu.matmul %222, %399, %cst_151 {dimension_numbers = #tpu.dot_dimension_numbers<[1], [0], [0], [1], [0, 0, 1, 1], [], []>} : vector<16x128xbf16>, vector<128x512xbf16>, vector<16x512xf32> -> vector<16x512xf32>
    %c2_152 = arith.constant 2 : index
    %c0_153 = arith.constant 0 : index
    %c0_154 = arith.constant 0 : index
    %401 = vector.load %arg9[%c2_152, %c0_153, %c0_154] : memref<4x1x512xf32, #tpu.memory_space<vmem>>, vector<1x1x512xf32>
    %402 = vector.shape_cast %401 : vector<1x1x512xf32> to vector<1x512xf32>
    %403 = vector.broadcast %402 : vector<1x512xf32> to vector<16x512xf32>
    %404 = arith.addf %400, %403 : vector<16x512xf32>
    %cst_155 = arith.constant 5.000000e-01 : f32
    %405 = vector.broadcast %cst_155 : f32 to vector<16x512xf32>
    %406 = arith.mulf %405, %404 : vector<16x512xf32>
    %cst_156 = arith.constant 0.707106769 : f32
    %407 = vector.broadcast %cst_156 : f32 to vector<16x512xf32>
    %408 = arith.mulf %404, %407 : vector<16x512xf32>
    %409 = math.absf %408 : vector<16x512xf32>
    %cst_157 = arith.constant 0.327591091 : f32
    %410 = vector.broadcast %cst_157 : f32 to vector<16x512xf32>
    %411 = arith.mulf %410, %409 : vector<16x512xf32>
    %cst_158 = arith.constant 1.000000e+00 : f32
    %412 = vector.broadcast %cst_158 : f32 to vector<16x512xf32>
    %413 = arith.addf %412, %411 : vector<16x512xf32>
    %cst_159 = arith.constant 1.000000e+00 : f32
    %414 = vector.broadcast %cst_159 : f32 to vector<16x512xf32>
    %415 = arith.divf %414, %413 : vector<16x512xf32>
    %cst_160 = arith.constant 1.06140542 : f32
    %416 = vector.broadcast %cst_160 : f32 to vector<16x512xf32>
    %417 = arith.mulf %416, %415 : vector<16x512xf32>
    %cst_161 = arith.constant 1.45315206 : f32
    %418 = vector.broadcast %cst_161 : f32 to vector<16x512xf32>
    %419 = arith.subf %417, %418 : vector<16x512xf32>
    %420 = arith.mulf %419, %415 : vector<16x512xf32>
    %cst_162 = arith.constant 1.42141378 : f32
    %421 = vector.broadcast %cst_162 : f32 to vector<16x512xf32>
    %422 = arith.addf %420, %421 : vector<16x512xf32>
    %423 = arith.mulf %422, %415 : vector<16x512xf32>
    %cst_163 = arith.constant 0.284496725 : f32
    %424 = vector.broadcast %cst_163 : f32 to vector<16x512xf32>
    %425 = arith.subf %423, %424 : vector<16x512xf32>
    %426 = arith.mulf %425, %415 : vector<16x512xf32>
    %cst_164 = arith.constant 0.254829586 : f32
    %427 = vector.broadcast %cst_164 : f32 to vector<16x512xf32>
    %428 = arith.addf %426, %427 : vector<16x512xf32>
    %429 = arith.mulf %428, %415 : vector<16x512xf32>
    %cst_165 = arith.constant 0.000000e+00 : f32
    %430 = vector.broadcast %cst_165 : f32 to vector<16x512xf32>
    %431 = arith.subf %430, %409 : vector<16x512xf32>
    %432 = arith.mulf %431, %409 : vector<16x512xf32>
    %433 = math.exp %432 : vector<16x512xf32>
    %434 = arith.mulf %429, %433 : vector<16x512xf32>
    %cst_166 = arith.constant 1.000000e+00 : f32
    %435 = vector.broadcast %cst_166 : f32 to vector<16x512xf32>
    %436 = arith.subf %435, %434 : vector<16x512xf32>
    %cst_167 = arith.constant 0.000000e+00 : f32
    %437 = vector.broadcast %cst_167 : f32 to vector<16x512xf32>
    %438 = arith.cmpf olt, %408, %437 : vector<16x512xf32>
    %cst_168 = arith.constant 0.000000e+00 : f32
    %439 = vector.broadcast %cst_168 : f32 to vector<16x512xf32>
    %440 = arith.subf %439, %436 : vector<16x512xf32>
    %441 = arith.select %438, %440, %436 : vector<16x512xi1>, vector<16x512xf32>
    %cst_169 = arith.constant 1.000000e+00 : f32
    %442 = vector.broadcast %cst_169 : f32 to vector<16x512xf32>
    %443 = arith.addf %442, %441 : vector<16x512xf32>
    %444 = arith.mulf %406, %443 : vector<16x512xf32>
    %445 = arith.truncf %444 : vector<16x512xf32> to vector<16x512xbf16>
    %c2_170 = arith.constant 2 : index
    %c0_171 = arith.constant 0 : index
    %c0_172 = arith.constant 0 : index
    %446 = vector.load %arg10[%c2_170, %c0_171, %c0_172] : memref<4x512x128xbf16, #tpu.memory_space<vmem>>, vector<1x512x128xbf16>
    %447 = vector.shape_cast %446 : vector<1x512x128xbf16> to vector<512x128xbf16>
    %cst_173 = arith.constant dense<0.000000e+00> : vector<16x128xf32>
    %448 = tpu.matmul %445, %447, %cst_173 {dimension_numbers = #tpu.dot_dimension_numbers<[1], [0], [0], [1], [0, 0, 1, 1], [], []>} : vector<16x512xbf16>, vector<512x128xbf16>, vector<16x128xf32> -> vector<16x128xf32>
    %c2_174 = arith.constant 2 : index
    %c0_175 = arith.constant 0 : index
    %c0_176 = arith.constant 0 : index
    %449 = vector.load %arg11[%c2_174, %c0_175, %c0_176] : memref<4x1x128xf32, #tpu.memory_space<vmem>>, vector<1x1x128xf32>
    %450 = vector.shape_cast %449 : vector<1x1x128xf32> to vector<1x128xf32>
    %451 = vector.broadcast %450 : vector<1x128xf32> to vector<16x128xf32>
    %452 = arith.addf %448, %451 : vector<16x128xf32>
    %453 = vector.extract_strided_slice %270 {offsets = [0, 2], sizes = [16, 1], strides = [1, 1]} : vector<16x4xf32> to vector<16x1xf32>
    %454 = vector.broadcast %453 : vector<16x1xf32> to vector<16x128xf32>
    %455 = arith.mulf %454, %452 : vector<16x128xf32>
    %456 = arith.addf %397, %455 : vector<16x128xf32>
    %c3 = arith.constant 3 : index
    %c0_177 = arith.constant 0 : index
    %c0_178 = arith.constant 0 : index
    %457 = vector.load %arg8[%c3, %c0_177, %c0_178] : memref<4x128x512xbf16, #tpu.memory_space<vmem>>, vector<1x128x512xbf16>
    %458 = vector.shape_cast %457 : vector<1x128x512xbf16> to vector<128x512xbf16>
    %cst_179 = arith.constant dense<0.000000e+00> : vector<16x512xf32>
    %459 = tpu.matmul %222, %458, %cst_179 {dimension_numbers = #tpu.dot_dimension_numbers<[1], [0], [0], [1], [0, 0, 1, 1], [], []>} : vector<16x128xbf16>, vector<128x512xbf16>, vector<16x512xf32> -> vector<16x512xf32>
    %c3_180 = arith.constant 3 : index
    %c0_181 = arith.constant 0 : index
    %c0_182 = arith.constant 0 : index
    %460 = vector.load %arg9[%c3_180, %c0_181, %c0_182] : memref<4x1x512xf32, #tpu.memory_space<vmem>>, vector<1x1x512xf32>
    %461 = vector.shape_cast %460 : vector<1x1x512xf32> to vector<1x512xf32>
    %462 = vector.broadcast %461 : vector<1x512xf32> to vector<16x512xf32>
    %463 = arith.addf %459, %462 : vector<16x512xf32>
    %cst_183 = arith.constant 5.000000e-01 : f32
    %464 = vector.broadcast %cst_183 : f32 to vector<16x512xf32>
    %465 = arith.mulf %464, %463 : vector<16x512xf32>
    %cst_184 = arith.constant 0.707106769 : f32
    %466 = vector.broadcast %cst_184 : f32 to vector<16x512xf32>
    %467 = arith.mulf %463, %466 : vector<16x512xf32>
    %468 = math.absf %467 : vector<16x512xf32>
    %cst_185 = arith.constant 0.327591091 : f32
    %469 = vector.broadcast %cst_185 : f32 to vector<16x512xf32>
    %470 = arith.mulf %469, %468 : vector<16x512xf32>
    %cst_186 = arith.constant 1.000000e+00 : f32
    %471 = vector.broadcast %cst_186 : f32 to vector<16x512xf32>
    %472 = arith.addf %471, %470 : vector<16x512xf32>
    %cst_187 = arith.constant 1.000000e+00 : f32
    %473 = vector.broadcast %cst_187 : f32 to vector<16x512xf32>
    %474 = arith.divf %473, %472 : vector<16x512xf32>
    %cst_188 = arith.constant 1.06140542 : f32
    %475 = vector.broadcast %cst_188 : f32 to vector<16x512xf32>
    %476 = arith.mulf %475, %474 : vector<16x512xf32>
    %cst_189 = arith.constant 1.45315206 : f32
    %477 = vector.broadcast %cst_189 : f32 to vector<16x512xf32>
    %478 = arith.subf %476, %477 : vector<16x512xf32>
    %479 = arith.mulf %478, %474 : vector<16x512xf32>
    %cst_190 = arith.constant 1.42141378 : f32
    %480 = vector.broadcast %cst_190 : f32 to vector<16x512xf32>
    %481 = arith.addf %479, %480 : vector<16x512xf32>
    %482 = arith.mulf %481, %474 : vector<16x512xf32>
    %cst_191 = arith.constant 0.284496725 : f32
    %483 = vector.broadcast %cst_191 : f32 to vector<16x512xf32>
    %484 = arith.subf %482, %483 : vector<16x512xf32>
    %485 = arith.mulf %484, %474 : vector<16x512xf32>
    %cst_192 = arith.constant 0.254829586 : f32
    %486 = vector.broadcast %cst_192 : f32 to vector<16x512xf32>
    %487 = arith.addf %485, %486 : vector<16x512xf32>
    %488 = arith.mulf %487, %474 : vector<16x512xf32>
    %cst_193 = arith.constant 0.000000e+00 : f32
    %489 = vector.broadcast %cst_193 : f32 to vector<16x512xf32>
    %490 = arith.subf %489, %468 : vector<16x512xf32>
    %491 = arith.mulf %490, %468 : vector<16x512xf32>
    %492 = math.exp %491 : vector<16x512xf32>
    %493 = arith.mulf %488, %492 : vector<16x512xf32>
    %cst_194 = arith.constant 1.000000e+00 : f32
    %494 = vector.broadcast %cst_194 : f32 to vector<16x512xf32>
    %495 = arith.subf %494, %493 : vector<16x512xf32>
    %cst_195 = arith.constant 0.000000e+00 : f32
    %496 = vector.broadcast %cst_195 : f32 to vector<16x512xf32>
    %497 = arith.cmpf olt, %467, %496 : vector<16x512xf32>
    %cst_196 = arith.constant 0.000000e+00 : f32
    %498 = vector.broadcast %cst_196 : f32 to vector<16x512xf32>
    %499 = arith.subf %498, %495 : vector<16x512xf32>
    %500 = arith.select %497, %499, %495 : vector<16x512xi1>, vector<16x512xf32>
    %cst_197 = arith.constant 1.000000e+00 : f32
    %501 = vector.broadcast %cst_197 : f32 to vector<16x512xf32>
    %502 = arith.addf %501, %500 : vector<16x512xf32>
    %503 = arith.mulf %465, %502 : vector<16x512xf32>
    %504 = arith.truncf %503 : vector<16x512xf32> to vector<16x512xbf16>
    %c3_198 = arith.constant 3 : index
    %c0_199 = arith.constant 0 : index
    %c0_200 = arith.constant 0 : index
    %505 = vector.load %arg10[%c3_198, %c0_199, %c0_200] : memref<4x512x128xbf16, #tpu.memory_space<vmem>>, vector<1x512x128xbf16>
    %506 = vector.shape_cast %505 : vector<1x512x128xbf16> to vector<512x128xbf16>
    %cst_201 = arith.constant dense<0.000000e+00> : vector<16x128xf32>
    %507 = tpu.matmul %504, %506, %cst_201 {dimension_numbers = #tpu.dot_dimension_numbers<[1], [0], [0], [1], [0, 0, 1, 1], [], []>} : vector<16x512xbf16>, vector<512x128xbf16>, vector<16x128xf32> -> vector<16x128xf32>
    %c3_202 = arith.constant 3 : index
    %c0_203 = arith.constant 0 : index
    %c0_204 = arith.constant 0 : index
    %508 = vector.load %arg11[%c3_202, %c0_203, %c0_204] : memref<4x1x128xf32, #tpu.memory_space<vmem>>, vector<1x1x128xf32>
    %509 = vector.shape_cast %508 : vector<1x1x128xf32> to vector<1x128xf32>
    %510 = vector.broadcast %509 : vector<1x128xf32> to vector<16x128xf32>
    %511 = arith.addf %507, %510 : vector<16x128xf32>
    %512 = vector.extract_strided_slice %270 {offsets = [0, 3], sizes = [16, 1], strides = [1, 1]} : vector<16x4xf32> to vector<16x1xf32>
    %513 = vector.broadcast %512 : vector<16x1xf32> to vector<16x128xf32>
    %514 = arith.mulf %513, %511 : vector<16x128xf32>
    %515 = arith.addf %456, %514 : vector<16x128xf32>
    %516 = vector.extract_strided_slice %515 {offsets = [0, 0], sizes = [8, 128], strides = [1, 1]} : vector<16x128xf32> to vector<8x128xf32>
    %c0_205 = arith.constant 0 : index
    %c0_206 = arith.constant 0 : index
    %c0_207 = arith.constant 0 : index
    %517 = vector.load %arg13[%c0_205, %c0_206, %c0_207] : memref<2x8x128xf32, #tpu.memory_space<vmem>>, vector<1x8x128xf32>
    %518 = vector.shape_cast %517 : vector<1x8x128xf32> to vector<8x128xf32>
    %519 = vector.shape_cast %516 : vector<8x128xf32> to vector<1x8x128xf32>
    tpu.vector_store %arg13[%c0_205, %c0_206, %c0_207], %519 {strides = array<i32>} : memref<2x8x128xf32, #tpu.memory_space<vmem>>, vector<1x8x128xf32>,
    %520 = vector.extract_strided_slice %515 {offsets = [8, 0], sizes = [8, 128], strides = [1, 1]} : vector<16x128xf32> to vector<8x128xf32>
    %c1_208 = arith.constant 1 : index
    %c0_209 = arith.constant 0 : index
    %c0_210 = arith.constant 0 : index
    %521 = vector.load %arg13[%c1_208, %c0_209, %c0_210] : memref<2x8x128xf32, #tpu.memory_space<vmem>>, vector<1x8x128xf32>
    %522 = vector.shape_cast %521 : vector<1x8x128xf32> to vector<8x128xf32>
    %523 = vector.shape_cast %520 : vector<8x128xf32> to vector<1x8x128xf32>
    tpu.vector_store %arg13[%c1_208, %c0_209, %c0_210], %523 {strides = array<i32>} : memref<2x8x128xf32, #tpu.memory_space<vmem>>, vector<1x8x128xf32>,
    return
  }
  func.func @transform_0(%arg0: i32) -> (i32, i32, i32) {
    %c0_i32 = arith.constant 0 : i32
    %c0_i32_0 = arith.constant 0 : i32
    %c0_i32_1 = arith.constant 0 : i32
    %c0_i32_2 = arith.constant 0 : i32
    return %c0_i32, %c0_i32_0, %c0_i32_1 : i32, i32, i32
  }
  func.func @transform_1(%arg0: i32) -> (i32, i32) {
    %c0_i32 = arith.constant 0 : i32
    %c0_i32_0 = arith.constant 0 : i32
    %c0_i32_1 = arith.constant 0 : i32
    return %c0_i32, %c0_i32_0 : i32, i32
  }
  func.func @transform_2(%arg0: i32) -> (i32, i32) {
    %c0_i32 = arith.constant 0 : i32
    %c0_i32_0 = arith.constant 0 : i32
    %c0_i32_1 = arith.constant 0 : i32
    return %c0_i32, %c0_i32_0 : i32, i32
  }
  func.func @transform_3(%arg0: i32) -> (i32, i32) {
    %c0_i32 = arith.constant 0 : i32
    %c0_i32_0 = arith.constant 0 : i32
    %c0_i32_1 = arith.constant 0 : i32
    return %c0_i32, %c0_i32_0 : i32, i32
  }
  func.func @transform_4(%arg0: i32) -> (i32, i32) {
    %c0_i32 = arith.constant 0 : i32
    %c0_i32_0 = arith.constant 0 : i32
    %c0_i32_1 = arith.constant 0 : i32
    return %c0_i32, %c0_i32_0 : i32, i32
  }
  func.func @transform_5(%arg0: i32) -> (i32, i32) {
    %c0_i32 = arith.constant 0 : i32
    %c0_i32_0 = arith.constant 0 : i32
    %c0_i32_1 = arith.constant 0 : i32
    return %c0_i32, %c0_i32_0 : i32, i32
  }
  func.func @transform_6(%arg0: i32) -> (i32, i32) {
    %c0_i32 = arith.constant 0 : i32
    %c0_i32_0 = arith.constant 0 : i32
    %c0_i32_1 = arith.constant 0 : i32
    return %c0_i32, %c0_i32_0 : i32, i32
  }
  func.func @transform_7(%arg0: i32) -> (i32, i32, i32) {
    %c0_i32 = arith.constant 0 : i32
    %c0_i32_0 = arith.constant 0 : i32
    %c0_i32_1 = arith.constant 0 : i32
    %c0_i32_2 = arith.constant 0 : i32
    return %c0_i32, %c0_i32_0, %c0_i32_1 : i32, i32, i32
  }
  func.func @transform_8(%arg0: i32) -> (i32, i32, i32) {
    %c0_i32 = arith.constant 0 : i32
    %c0_i32_0 = arith.constant 0 : i32
    %c0_i32_1 = arith.constant 0 : i32
    %c0_i32_2 = arith.constant 0 : i32
    return %c0_i32, %c0_i32_0, %c0_i32_1 : i32, i32, i32
  }
  func.func @transform_9(%arg0: i32) -> (i32, i32, i32) {
    %c0_i32 = arith.constant 0 : i32
    %c0_i32_0 = arith.constant 0 : i32
    %c0_i32_1 = arith.constant 0 : i32
    %c0_i32_2 = arith.constant 0 : i32
    return %c0_i32, %c0_i32_0, %c0_i32_1 : i32, i32, i32
  }
  func.func @transform_10(%arg0: i32) -> (i32, i32, i32) {
    %c0_i32 = arith.constant 0 : i32
    %c0_i32_0 = arith.constant 0 : i32
    %c0_i32_1 = arith.constant 0 : i32
    %c0_i32_2 = arith.constant 0 : i32
    return %c0_i32, %c0_i32_0, %c0_i32_1 : i32, i32, i32
  }
  func.func @transform_11(%arg0: i32) -> (i32, i32, i32) {
    %c0_i32 = arith.constant 0 : i32
    %c0_i32_0 = arith.constant 0 : i32
    %c0_i32_1 = arith.constant 0 : i32
    %c0_i32_2 = arith.constant 0 : i32
    return %c0_i32, %c0_i32_0, %c0_i32_1 : i32, i32, i32
  }
  func.func @transform_12(%arg0: i32) -> (i32, i32, i32) {
    %c0_i32 = arith.constant 0 : i32
    %c0_i32_0 = arith.constant 0 : i32
    %c0_i32_1 = arith.constant 0 : i32
    %c0_i32_2 = arith.constant 0 : i32
    return %c0_i32, %c0_i32_0, %c0_i32_1 : i32, i32, i32
  }
  func.func @transform_13(%arg0: i32) -> (i32, i32) {
    %c0_i32 = arith.constant 0 : i32
    %c0_i32_0 = arith.constant 0 : i32
    %c0_i32_1 = arith.constant 0 : i32
    return %c0_i32, %c0_i32_0 : i32, i32
  }
  func.func @transform_14(%arg0: i32) -> (i32, i32) {
    %c0_i32 = arith.constant 0 : i32
    %c0_i32_0 = arith.constant 0 : i32
    %c0_i32_1 = arith.constant 0 : i32
    return %c0_i32, %c0_i32_0 : i32, i32
  }
}

</mosaic_0001>

<bundles_post_ra>
// kernel: gpt2_moe_block_forward.1
= control target key start
LH: loop header
LB: loop body
LE: loop exit
PB: predicated region body
PF: predicated region fallthrough
CT: control target
= control target key end

     0   :  { %20 = vsyncpa [#allocation3], 0  ;;  %s10112_s0 = inlined_call_operand.vmem [shape: f32[2,8,128], index: 0, kind: input, shape index: {}]   ;;  %s10113_s1 = inlined_call_operand.vmem [shape: bf16[128,384], index: 1, kind: input, shape index: {}]   ;;  %s10114_s2 = inlined_call_operand.vmem [shape: f32[1,384], index: 2, kind: input, shape index: {}]   ;;  %s10115_s3 = inlined_call_operand.vmem [shape: bf16[128,128], index: 3, kind: input, shape index: {}]   ;;  %s10116_s4 = inlined_call_operand.vmem [shape: f32[1,128], index: 4, kind: input, shape index: {}]   ;;  %s10117_s5 = inlined_call_operand.vmem [shape: f32[128,4], index: 5, kind: input, shape index: {}]   ;;  %s10118_s6 = inlined_call_operand.vmem [shape: f32[1,4], index: 6, kind: input, shape index: {}]   ;;  %s10119_s7 = inlined_call_operand.vmem [shape: bf16[4,128,512], index: 7, kind: input, shape index: {}]   ;;  %s10120_s8 = inlined_call_operand.vmem [shape: f32[4,1,512], index: 8, kind: input, shape index: {}]   ;;  %s10121_s9 = inlined_call_operand.vmem [shape: bf16[4,512,128], index: 9, kind: input, shape index: {}]   ;;  %s10122_s10 = inlined_call_operand.vmem [shape: f32[4,1,128], index: 10, kind: input, shape index: {}]   ;;  %s10123_s11 = inlined_call_operand.hbm [shape: f32[2,8,128], index: 11, kind: output, shape index: {0}]   ;;  %s10124_s12 = inlined_call_operand.hbm [shape: f32[2,8,128], index: 12, kind: output, shape index: {1}]   ;;  %s10125_s13 = inlined_call_operand.vmem [shape: f32[1,4], index: 13, kind: output, shape index: {2}]   ;;  %s10126_s14 = inlined_call_operand.vmem [shape: f32[1,4], index: 14, kind: output, shape index: {3}]  }
   0x1   :  { %v4880_v0 = vld [vmem:[%s10113_s1 + $0xa8] sm:$0xf]  ;;  %v6345_v1 = vld [vmem:[%s10113_s1 + $0xb0] sm:$0xf0]  ;;  %v6344_v2 = vld [vmem:[%s10113_s1 + $0xac] sm:$0xf] }
   0x2   :  { %v6958_v3 = vor.u32 %v6345_v1, %v4880_v0  ;;  %v4882_v4 = vld [vmem:[%s10113_s1 + $0xb4] sm:$0xf0]  ;;  %v4868_v5 = vld [vmem:[%s10113_s1 + $0x90] sm:$0xf]  ;;  %v6342_v6 = vld [vmem:[%s10113_s1 + $0x98] sm:$0xf0] }
   0x3   :  { %v6969_v7 = vor.u32 %v6344_v2, %v4882_v4  ;;  %v6341_v8 = vld [vmem:[%s10113_s1 + $0x94] sm:$0xf]  ;;  %v4870_v9 = vld [vmem:[%s10113_s1 + $0x9c] sm:$0xf0]  ;;  %v6978_v10 = vor.u32 %v6342_v6, %v4868_v5  ;;  %v4856_v12 = vld [vmem:[%s10113_s1 + $0x78] sm:$0xf] }
   0x4   :  { %237 = vmatpush.bf16.msra.mxu0 %v6958_v3  ;;  %v6981_v11 = vor.u32 %v6341_v8, %v4870_v9  ;;  %v6339_v13 = vld [vmem:[%s10113_s1 + $0x80] sm:$0xf0]  ;;  %v6338_v14 = vld [vmem:[%s10113_s1 + $0x7c] sm:$0xf]  ;;  %v4858_v15 = vld [vmem:[%s10113_s1 + $0x84] sm:$0xf0] }
   0x5   :  { %250 = vmatpush.bf16.msra.mxu1 %v6969_v7  ;;  %v6996_v16 = vor.u32 %v6339_v13, %v4856_v12  ;;  %v6999_v17 = vor.u32 %v6338_v14, %v4858_v15  ;;  %v4844_v18 = vld [vmem:[%s10113_s1 + $0x60] sm:$0xf]  ;;  %v6336_v19 = vld [vmem:[%s10113_s1 + $0x68] sm:$0xf0]  ;;  %v6335_v20 = vld [vmem:[%s10113_s1 + $0x64] sm:$0xf] }
   0x6   :  { %v4846_v21 = vld [vmem:[%s10113_s1 + $0x6c] sm:$0xf0]  ;;  %v7014_v22 = vor.u32 %v6336_v19, %v4844_v18  ;;  %v6346_v24 = vld [vmem:[%s10113_s1 + $0xb8] sm:$0xf0]  ;;  %v4876_v25 = vld [vmem:[%s10113_s1 + $0x98] sm:$0xf] }
   0x7   :  { %v4888_v23 = vld [vmem:[%s10113_s1 + $0xb0] sm:$0xf]  ;;  %v7026_v26 = vor.u32 %v6335_v20, %v4846_v21  ;;  %v4832_v27 = vld [vmem:[%s10113_s1 + $0x48] sm:$0xf]  ;;  %v6333_v28 = vld [vmem:[%s10113_s1 + $0x50] sm:$0xf0] }
   0x8   :  { %238 = vmatpush.bf16.msra.mxu0 %v6978_v10  ;;  %v7034_v29 = vor.u32 %v6346_v24, %v4888_v23  ;;  %v6343_v30 = vld [vmem:[%s10113_s1 + $0xa0] sm:$0xf0]  ;;  %v6332_v31 = vld [vmem:[%s10113_s1 + $0x4c] sm:$0xf]  ;;  %v4834_v32 = vld [vmem:[%s10113_s1 + $0x54] sm:$0xf0]  ;;  %v7049_v34 = vor.u32 %v6333_v28, %v4832_v27 }
   0x9   :  { %251 = vmatpush.bf16.msra.mxu1 %v6981_v11  ;;  %v7046_v33 = vor.u32 %v6343_v30, %v4876_v25  ;;  %v4820_v35 = vld [vmem:[%s10113_s1 + $0x30] sm:$0xf]  ;;  %v4864_v36 = vld [vmem:[%s10113_s1 + $0x80] sm:$0xf]  ;;  %v6340_v37 = vld [vmem:[%s10113_s1 + $0x88] sm:$0xf0]  ;;  %v7061_v38 = vor.u32 %v6332_v31, %v4834_v32 }
   0xa   :  { %263 = vmatpush.bf16.msra.mxu2 %v7034_v29  ;;  %v6330_v39 = vld [vmem:[%s10113_s1 + $0x38] sm:$0xf0]  ;;  %v6329_v40 = vld [vmem:[%s10113_s1 + $0x34] sm:$0xf]  ;;  %v4822_v41 = vld [vmem:[%s10113_s1 + $0x3c] sm:$0xf0]  ;;  %v7073_v42 = vor.u32 %v6340_v37, %v4864_v36 }
   0xb   :  { %v7076_v43 = vor.u32 %v6330_v39, %v4820_v35  ;;  %v4852_v44 = vld [vmem:[%s10113_s1 + $0x68] sm:$0xf]  ;;  %v6337_v45 = vld [vmem:[%s10113_s1 + $0x70] sm:$0xf0] }
   0xc   :  { %239 = vmatpush.bf16.msra.mxu0 %v6996_v16 }
   0xd   :  { %252 = vmatpush.bf16.msra.mxu1 %v6999_v17 }
   0xe   :  { %264 = vmatpush.bf16.msra.mxu2 %v7046_v33 }
  0x10   :  { %240 = vmatpush.bf16.msra.mxu0 %v7014_v22 }
  0x11   :  { %253 = vmatpush.bf16.msra.mxu1 %v7026_v26 }
  0x14   :  { %241 = vmatpush.bf16.msra.mxu0 %v7049_v34 }
  0x15   :  { %21 = vsyncpa [#allocation5], 0  ;;  %254 = vmatpush.bf16.msra.mxu1 %v7061_v38  ;;  %v7085_v46 = vor.u32 %v6329_v40, %v4822_v41  ;;  %v4808_v47 = vld [vmem:[%s10113_s1 + $0x18] sm:$0xf]  ;;  %v6327_v48 = vld [vmem:[%s10113_s1 + $0x20] sm:$0xf0]  ;;  %265 = vmatpush.bf16.msra.mxu2 %v7073_v42  ;;  %v7100_v51 = vor.u32 %v6337_v45, %v4852_v44  ;;  %v45_v44 = vlaneseq }
  0x16   :  { %v6326_v49 = vld [vmem:[%s10113_s1 + $0x1c] sm:$0xf]  ;;  %v4810_v50 = vld [vmem:[%s10113_s1 + $0x24] sm:$0xf0]  ;;  %v7103_v52 = vor.u32 %v6327_v48, %v4808_v47  ;;  %v4840_v53 = vld [vmem:[%s10113_s1 + $0x50] sm:$0xf] }
  0x17   :  { %v6334_v54 = vld [vmem:[%s10113_s1 + $0x58] sm:$0xf0]  ;;  %v7112_v55 = vor.u32 %v6326_v49, %v4810_v50  ;;  %v4796_v56 = vld [vmem:[%s10113_s1] sm:$0xf]  ;;  %v6324_v57 = vld [vmem:[%s10113_s1 + $0x8] sm:$0xf0] }
  0x18   :  { %242 = vmatpush.bf16.msra.mxu0 %v7076_v43  ;;  %v6323_v58 = vld [vmem:[%s10113_s1 + $0x4] sm:$0xf]  ;;  %v4798_v59 = vld [vmem:[%s10113_s1 + $0xc] sm:$0xf0]  ;;  %v7127_v60 = vor.u32 %v6334_v54, %v4840_v53  ;;  %v7130_v61 = vor.u32 %v6324_v57, %v4796_v56  ;;  %v4828_v63 = vld [vmem:[%s10113_s1 + $0x38] sm:$0xf] }
  0x19   :  { %255 = vmatpush.bf16.msra.mxu1 %v7085_v46  ;;  %266 = vmatpush.bf16.msra.mxu2 %v7100_v51  ;;  %v7135_v62 = vld [vmem:[%s10112_s0] sm:$0xff]  ;;  %v7144_v1 = vor.u32 %v6323_v58, %v4798_v59  ;;  %v6328_v6 = vld [vmem:[%s10113_s1 + $0x28] sm:$0xf0]  ;;  %v4804_v9 = vld [vmem:[%s10113_s1 + $0x8] sm:$0xf]  ;;  %vm278_vm0 = vcmask 261120  }
  0x1a   :  { %v6331_v0 = vld [vmem:[%s10113_s1 + $0x40] sm:$0xf0]  ;;  %v101_v2 = vpack.c.bf16 %v7135_v62, %v7135_v62  ;;  %v4816_v5 = vld [vmem:[%s10113_s1 + $0x20] sm:$0xf]  ;;  %v6325_v12 = vld [vmem:[%s10113_s1 + $0x10] sm:$0xf0] }
  0x1b   :  { %v7149_v4 = vor.u32 %v6331_v0, %v4828_v63  ;;  %v7160_v8 = vor.u32 %v6328_v6, %v4816_v5  ;;  %v7169_v13 = vor.u32 %v6325_v12, %v4804_v9  ;;  %v7175_v14 = vld [vmem:[%s10114_s2] sm:$0x7]  ;;  %s6862_s1 = smov 64   ;;  %s6863_s17 = smov 96   ;;  %vm317_vm1 = vcmask 1043456  }
  0x1c   :  { %243 = vmatpush.bf16.msra.mxu0 %v7103_v52  ;;  %v104_v15 = vperm.slane %v7175_v14, 1  ;;  %v103_v20 = vperm.slane %v7175_v14, 0  ;;  %s6864_s2 = smov 32   ;;  %v105_v32 = vperm.slane %v7175_v14, 2  ;;  %v46_v45 = vshrl.u32 %v45_v44, 7  ;;  %s4756_s22 = sshll.u32 %s10123_s11, 4  ;;  %s4757_s22 = int_to_ptr.hbm [resolvable:$true] %s4756_s22 }
  0x1d   :  { %256 = vmatpush.bf16.msra.mxu1 %v7112_v55  ;;  %267 = vmatpush.bf16.msra.mxu2 %v7127_v60  ;;  %v7198_v47 = vand.u32 127, %v45_v44  ;;  %vm300_vm3 = vcmask 64512   ;;  %vm524_vm4 = vcmask 523264   ;;  %vm526_vm5 = vcmask 785408   ;;  %s6870_s23 = smov [#allocation2]   ;;  %s6871_s25 = smov 128  }
  0x1e   :  { %vm945_vm6 = vcmask 31744   ;;  %s4754_s24 = sshll.u32 %s6870_s23, 4  ;;  %s6872_s26 = smov 8   ;;  %s4755_s24 = int_to_ptr.vmem [resolvable:$true] %s4754_s24 }
  0x1f   :  { %vm7201_vm2 = vcmp.le.s32.totalorder %v7198_v47, %v46_v45  ;;  %s6873_s11 = smov [#allocation4]   ;;  %s4769_s29 = sshll.u32 %s10124_s12, 4  ;;  %s4770_s29 = int_to_ptr.hbm [resolvable:$true] %s4769_s29 }
  0x20   :  { %244 = vmatpush.bf16.msra.mxu0 %v7130_v61  ;;  %s4767_s27 = sshll.u32 %s6873_s11, 4  ;;  %s4768_s27 = int_to_ptr.vmem [resolvable:$true] %s4767_s27 }
  0x21   :  { %257 = vmatpush.bf16.msra.mxu1 %v7144_v1  ;;  %268 = vmatpush.bf16.msra.mxu2 %v7149_v4 }
  0x23   :  { %245 = vmatmul.bf16.vlgmr.msra.gmra.mxu0 %v101_v2 }
  0x24   :  { %258 = vmatmul.bf16.vlgmr.msra.gmra.mxu1 %v101_v2 }
  0x25   :  { %269 = vmatpush.bf16.msra.mxu2 %v7160_v8 }
  0x29   :  { %270 = vmatpush.bf16.msra.mxu2 %v7169_v13 }
  0x2c   :  { %271 = vmatmul.bf16.vlgmr.msra.gmra.mxu2 %v101_v2 }
  0xa0   :  { %v246_v18 = vpop.f32.mrf.mxu0 }
  0xa1   :  { %v259_v19 = vpop.f32.mrf.mxu1  ;;  %v247_v24 = vadd.f32 %v246_v18, %v103_v20 }
  0xa2   :  { %v260_v21 = vadd.f32 %v259_v19, %v104_v15 }
  0xa3   :  { %v276_v30 = vpack.c.bf16 %v247_v24, %v247_v24 }
  0xa4   :  { %v277_v23 = vpack.c.bf16 %v260_v21, %v260_v21 }
  0xa6   :  { %397 = vrot.lane.b32.xlu2 %v277_v23, %s6862_s1  ;;  %338 = vrot.lane.b32.xlu1 %v277_v23, %s6863_s17  ;;  %v283_v25 = vsel %vm278_vm0, %v277_v23, 0 }
  0xa7   :  { %292 = vmatpush.bf16.xpose.msra.mxu3 %v283_v25 }
  0xa8   :  { %v248_v27 = vpop.f32.mrf.mxu0 }
  0xa9   :  { %v261_v28 = vpop.f32.mrf.mxu1 }
  0xae   :  { %395 = vrot.lane.b32.xlu2 %v276_v30, %s6862_s1  ;;  %335 = vrot.lane.b32.xlu1 %v276_v30, %s6863_s17 }
  0xaf   :  { %4890 = vmatmul.msk.bf16.vlgmr.msra.gmra.mxu3 %vm278_vm0, %v276_v30  ;;  %v272_v31 = vpop.f32.mrf.mxu2 }
  0xb0   :  { %v273_v36 = vadd.f32 %v272_v31, %v105_v32 }
  0xb2   :  { %v7193_v37 = vpack.c.bf16 %v273_v36, %v273_v36 }
  0xb4   :  { %v319_v39 = vsel %vm317_vm1, %v7193_v37, 0 }
  0xb5   :  { %328 = vmatpush.bf16.msrb.mxu3 %v319_v39 }
  0xb6   :  { %453 = vrot.lane.b32.xlu1 %v276_v30, %s6864_s2 }
  0xb7   :  { %v274_v35 = vpop.f32.mrf.mxu2 }
 0x100   :  { %v398_v9 = vpop.permute.xlu2 %397 }
 0x101   :  { %v403_v18 = vsel %vm278_vm0, %v398_v9, 0 }
 0x108   :  { %v396_v25 = vpop.permute.xlu2 %395 }
 0x118   :  { %v339_v40 = vpop.permute.xlu1 %338 }
 0x119   :  { %v344_v41 = vsel %vm278_vm0, %v339_v40, 0 }
 0x11a   :  { %353 = vmatpush.bf16.xpose.msra.mxu3 %v344_v41 }
 0x120   :  { %v336_v21 = vpop.permute.xlu1 %335 }
 0x132   :  { %v294_v48 = vpop.f32.mrf.mxu3 }
 0x133   :  { %v298_v50 = vmul.f32 0.17677669, %v294_v48 }
 0x135   :  { %v299_v53 = vsel %vm7201_vm2, %v298_v50, -3.4028235e+38 }
 0x136   :  { %v301_v54 = vsel %vm300_vm3, %v299_v53, -inf }
 0x137   :  { %302 = vmax.xlane.f32.xlu0 %v301_v54 }
 0x13a   :  { %v296_v56 = vpop.f32.mrf.mxu3 }
 0x1aa   :  { %v303_v57 = vpop.xlane.xlu0 %302 }
 0x1ab   :  { %v304_v58 = vsub.f32 %v299_v53, %v303_v57 }
 0x1ad   :  { %v305_v59 = vmul.f32 1.442695, %v304_v58 }
 0x1af   :  { %6638 = vpow2.f32 %v305_v59 }
 0x1b5   :  { %v6639_v63 = vpop.eup %6638 }
 0x1b6   :  { %v307_v0 = vsel %vm300_vm3, %v6639_v63, 0.0 }
 0x1b7   :  { %308 = vadd.xlane.f32.xlu0 %v307_v0 }
 0x1cb   :  { %455 = vrot.lane.b32.xlu0 %v277_v23, %s6864_s2  ;;  %v454_v23 = vpop.permute.xlu1 %453 }
 0x22a   :  { %v309_v2 = vpop.xlane.xlu0 %308 }
 0x22b   :  { %6640 = vrcp.f32 %v309_v2 }
 0x231   :  { %v6641_v5 = vpop.eup %6640 }
 0x232   :  { %v311_v6 = vmul.f32 %v6641_v5, %v6639_v63 }
 0x234   :  { %v312_v12 = vpack.c.bf16 %v311_v6, %v311_v6 }
 0x236   :  { %4891 = vmatmul.msk.bf16.vlgmr.msrb.gmra.mxu3 %vm300_vm3, %v312_v12 }
 0x237   :  { %412 = vmatpush.bf16.xpose.msrb.mxu3 %v403_v18 }
 0x23d   :  { %v456_v19 = vpop.permute.xlu0 %455 }
 0x23e   :  { %v461_v24 = vsel %vm278_vm0, %v456_v19, 0 }
 0x246   :  { %4892 = vmatmul.msk.bf16.vlgmr.msra.gmra.mxu3 %vm278_vm0, %v336_v21 }
 0x247   :  { %470 = vmatpush.bf16.xpose.msra.mxu3 %v461_v24 }
 0x256   :  { %4894 = vmatmul.msk.bf16.vlgmr.msrb.gmra.mxu3 %vm278_vm0, %v396_v25 }
 0x257   :  { %611 = vmatpush.bf16.msrb.mxu3 %v6969_v7 }
 0x25b   :  { %612 = vmatpush.bf16.msrb.mxu3 %v6981_v11 }
 0x25f   :  { %613 = vmatpush.bf16.msrb.mxu3 %v6999_v17 }
 0x263   :  { %614 = vmatpush.bf16.msrb.mxu3 %v7026_v26 }
 0x266   :  { %4896 = vmatmul.msk.bf16.vlgmr.msra.gmra.mxu3 %vm278_vm0, %v454_v23 }
 0x267   :  { %615 = vmatpush.bf16.msrb.mxu3 %v7061_v38 }
 0x26b   :  { %616 = vmatpush.bf16.msrb.mxu3 %v7085_v46 }
 0x26f   :  { %617 = vmatpush.bf16.msrb.mxu3 %v7112_v55 }
 0x273   :  { %618 = vmatpush.bf16.msrb.mxu3 %v7144_v1 }
 0x2b9   :  { %v7224_v27 = vpop.f32.mrf.mxu3 }
 0x2c1   :  { %v332_v7 = vpop.f32.mrf.mxu3 }
 0x2c9   :  { %v355_v28 = vpop.f32.mrf.mxu3 }
 0x2ca   :  { %v359_v11 = vmul.f32 0.17677669, %v355_v28 }
 0x2cc   :  { %v360_v17 = vsel %vm7201_vm2, %v359_v11, -3.4028235e+38 }
 0x2cd   :  { %v361_v26 = vsel %vm300_vm3, %v360_v17, -inf }
 0x2ce   :  { %362 = vmax.xlane.f32.xlu2 %v361_v26 }
 0x2d1   :  { %v357_v30 = vpop.f32.mrf.mxu3 }
 0x2d9   :  { %v414_v31 = vpop.f32.mrf.mxu3 }
 0x2da   :  { %v418_v38 = vmul.f32 0.17677669, %v414_v31  ;;  %v6350_v31 = vld [vmem:[%s10115_s3 + $0x18] sm:$0xff] }
 0x2dc   :  { %v419_v46 = vsel %vm7201_vm2, %v418_v38, -3.4028235e+38  ;;  %v6349_v38 = vld [vmem:[%s10115_s3 + $0x10] sm:$0xff] }
 0x2dd   :  { %v420_v55 = vsel %vm300_vm3, %v419_v46, -inf }
 0x2de   :  { %421 = vmax.xlane.f32.xlu1 %v420_v55 }
 0x2e1   :  { %v416_v1 = vpop.f32.mrf.mxu3 }
 0x2e9   :  { %v472_v35 = vpop.f32.mrf.mxu3 }
 0x2ea   :  { %v476_v36 = vmul.f32 0.17677669, %v472_v35 }
 0x2ec   :  { %v477_v39 = vsel %vm7201_vm2, %v476_v36, -3.4028235e+38  ;;  %v6347_v36 = vld [vmem:[%s10115_s3] sm:$0xff] }
 0x2ed   :  { %v478_v40 = vsel %vm300_vm3, %v477_v39, -inf }
 0x2ee   :  { %479 = vmax.xlane.f32.xlu0 %v478_v40 }
 0x2f1   :  { %v474_v41 = vpop.f32.mrf.mxu3 }
 0x302   :  { %432 = vrot.lane.b32.xlu0 %v7193_v37, %s6862_s1 }
 0x341   :  { %v363_v44 = vpop.xlane.xlu2 %362 }
 0x342   :  { %v364_v45 = vsub.f32 %v360_v17, %v363_v44 }
 0x344   :  { %v365_v48 = vmul.f32 1.442695, %v364_v45 }
 0x346   :  { %6642 = vpow2.f32 %v365_v48 }
 0x34c   :  { %v6643_v50 = vpop.eup %6642 }
 0x34d   :  { %v367_v53 = vsel %vm300_vm3, %v6643_v50, 0.0 }
 0x34e   :  { %368 = vadd.xlane.f32.xlu2 %v367_v53 }
 0x351   :  { %v422_v54 = vpop.xlane.xlu1 %421 }
 0x352   :  { %v423_v56 = vsub.f32 %v419_v46, %v422_v54 }
 0x354   :  { %v424_v57 = vmul.f32 1.442695, %v423_v56 }
 0x356   :  { %6644 = vpow2.f32 %v424_v57 }
 0x35c   :  { %v6645_v58 = vpop.eup %6644 }
 0x35d   :  { %v426_v59 = vsel %vm300_vm3, %v6645_v58, 0.0 }
 0x35e   :  { %427 = vadd.xlane.f32.xlu1 %v426_v59 }
 0x361   :  { %v480_v63 = vpop.xlane.xlu0 %479 }
 0x362   :  { %v481_v0 = vsub.f32 %v477_v39, %v480_v63 }
 0x364   :  { %v482_v2 = vmul.f32 1.442695, %v481_v0 }
 0x366   :  { %6646 = vpow2.f32 %v482_v2  ;;  %374 = vrot.lane.b32.xlu2 %v7193_v37, %s6863_s17 }
 0x36c   :  { %v6647_v5 = vpop.eup %6646 }
 0x36d   :  { %v484_v6 = vsel %vm300_vm3, %v6647_v5, 0.0 }
 0x36e   :  { %485 = vadd.xlane.f32.xlu1 %v484_v6 }
 0x374   :  { %v433_v9 = vpop.permute.xlu0 %432 }
 0x375   :  { %v438_v12 = vsel %vm317_vm1, %v433_v9, 0  ;;  %v7325_v9 = vld [vmem:[%s10116_s4] ss:$0 sm:$0xff] }
 0x376   :  { %447 = vmatpush.bf16.msrb.mxu2 %v438_v12 }
 0x37a   :  { %598 = vmatpush.bf16.msra.mxu2 %v6958_v3 }
 0x37e   :  { %599 = vmatpush.bf16.msra.mxu2 %v6978_v10 }
 0x382   :  { %600 = vmatpush.bf16.msra.mxu2 %v6996_v16 }
 0x386   :  { %601 = vmatpush.bf16.msra.mxu2 %v7014_v22 }
 0x387   :  { %490 = vrot.lane.b32.xlu1 %v7193_v37, %s6864_s2 }
 0x38a   :  { %602 = vmatpush.bf16.msra.mxu2 %v7049_v34 }
 0x38e   :  { %603 = vmatpush.bf16.msra.mxu2 %v7076_v43  ;;  %v7258_v43 = vld [vmem:[%s10112_s0 + $0x8] sm:$0xff] }
 0x392   :  { %604 = vmatpush.bf16.msra.mxu2 %v7103_v52 }
 0x396   :  { %605 = vmatpush.bf16.msra.mxu2 %v7130_v61  ;;  %v597_v61 = vpack.c.bf16 %v7258_v43, %v7258_v43 }
 0x398   :  { %619 = vmatmul.bf16.vlgmr.msrb.gmra.mxu3 %v597_v61 }
 0x3c1   :  { %v369_v18 = vpop.xlane.xlu2 %368 }
 0x3c2   :  { %6648 = vrcp.f32 %v369_v18 }
 0x3c8   :  { %v6649_v3 = vpop.eup %6648 }
 0x3c9   :  { %v371_v19 = vmul.f32 %v6649_v3, %v6643_v50  ;;  %v375_v10 = vpop.permute.xlu2 %374 }
 0x3ca   :  { %v380_v16 = vsel %vm317_vm1, %v375_v10, 0 }
 0x3cb   :  { %389 = vmatpush.bf16.msrb.mxu0 %v380_v16  ;;  %v372_v22 = vpack.c.bf16 %v371_v19, %v371_v19 }
 0x3ce   :  { %4893 = vmatmul.msk.bf16.vlgmr.msrb.gmra.mxu0 %vm300_vm3, %v372_v22 }
 0x3d1   :  { %v428_v37 = vpop.xlane.xlu1 %427 }
 0x3d2   :  { %6650 = vrcp.f32 %v428_v37 }
 0x3d8   :  { %v6651_v34 = vpop.eup %6650 }
 0x3d9   :  { %v430_v21 = vmul.f32 %v6651_v34, %v6645_v58 }
 0x3db   :  { %v431_v52 = vpack.c.bf16 %v430_v21, %v430_v21 }
 0x3dd   :  { %4895 = vmatmul.msk.bf16.vlgmr.msrb.gmra.mxu2 %vm300_vm3, %v431_v52 }
 0x3e1   :  { %v486_v24 = vpop.xlane.xlu1 %485 }
 0x3e2   :  { %6652 = vrcp.f32 %v486_v24 }
 0x3e8   :  { %v6653_v25 = vpop.eup %6652 }
 0x3e9   :  { %v488_v23 = vmul.f32 %v6653_v25, %v6647_v5 }
 0x3eb   :  { %v489_v11 = vpack.c.bf16 %v488_v23, %v488_v23 }
 0x3ed   :  { %606 = vmatmul.bf16.vlgmr.msra.gmra.mxu2 %v597_v61 }
 0x3f9   :  { %v491_v7 = vpop.permute.xlu1 %490 }
 0x3fa   :  { %v496_v28 = vsel %vm317_vm1, %v491_v7, 0 }
 0x3fb   :  { %505 = vmatpush.bf16.msra.mxu0 %v496_v28 }
 0x3fe   :  { %4897 = vmatmul.msk.bf16.vlgmr.msra.gmra.mxu0 %vm300_vm3, %v489_v11 }
 0x3ff   :  { %624 = vmatpush.bf16.msrb.mxu0 %v7034_v29 }
 0x403   :  { %625 = vmatpush.bf16.msrb.mxu0 %v7046_v33  ;;  %v6354_v33 = vld [vmem:[%s10115_s3 + $0x38] sm:$0xff] }
 0x404   :  { %580 = vmatpush.bf16.msrb.mxu1 %v6354_v33 }
 0x407   :  { %626 = vmatpush.bf16.msrb.mxu0 %v7073_v42  ;;  %v6353_v42 = vld [vmem:[%s10115_s3 + $0x30] sm:$0xff] }
 0x408   :  { %581 = vmatpush.bf16.msrb.mxu1 %v6353_v42 }
 0x40b   :  { %627 = vmatpush.bf16.msrb.mxu0 %v7100_v51 }
 0x40f   :  { %628 = vmatpush.bf16.msrb.mxu0 %v7127_v60  ;;  %v6352_v60 = vld [vmem:[%s10115_s3 + $0x28] sm:$0xff] }
 0x410   :  { %582 = vmatpush.bf16.msrb.mxu1 %v6352_v60 }
 0x413   :  { %629 = vmatpush.bf16.msrb.mxu0 %v7149_v4  ;;  %v6351_v4 = vld [vmem:[%s10115_s3 + $0x20] sm:$0xff] }
 0x414   :  { %583 = vmatpush.bf16.msrb.mxu1 %v6351_v4 }
 0x417   :  { %630 = vmatpush.bf16.msrb.mxu0 %v7160_v8 }
 0x418   :  { %584 = vmatpush.bf16.msrb.mxu1 %v6350_v31 }
 0x41b   :  { %631 = vmatpush.bf16.msrb.mxu0 %v7169_v13  ;;  %v620_v8 = vpop.f32.mrf.mxu3 }
 0x41c   :  { %v621_v13 = vadd.f32 %v620_v8, %v104_v15  ;;  %585 = vmatpush.bf16.msrb.mxu1 %v6349_v38  ;;  %v6348_v15 = vld [vmem:[%s10115_s3 + $0x8] sm:$0xff] }
 0x41e   :  { %632 = vmatmul.bf16.vlgmr.msrb.gmra.mxu0 %v597_v61  ;;  %v638_v26 = vpack.c.bf16 %v621_v13, %v621_v13 }
 0x420   :  { %755 = vrot.lane.b32.xlu1 %v638_v26, %s6862_s1  ;;  %586 = vmatpush.bf16.msrb.mxu1 %v6348_v15  ;;  %v643_v39 = vsel %vm278_vm0, %v638_v26, 0 }
 0x423   :  { %v622_v46 = vpop.f32.mrf.mxu3 }
 0x424   :  { %587 = vmatpush.bf16.msrb.mxu1 %v6347_v36 }
 0x428   :  { %652 = vmatpush.bf16.xpose.msra.mxu1 %v643_v39 }
 0x44b   :  { %v391_v17 = vpop.f32.mrf.mxu0 }
 0x44c   :  { %512 = vrot.lane.b32.xlu2 %v391_v17, %s6864_s2 }
 0x453   :  { %v393_v29 = vpop.f32.mrf.mxu0 }
 0x460   :  { %v449_v51 = vpop.f32.mrf.mxu2 }
 0x461   :  { %516 = vrot.lane.b32.xlu2 %v449_v51, %s6862_s1 }
 0x468   :  { %v451_v30 = vpop.f32.mrf.mxu2 }
 0x469   :  { %696 = vrot.lane.b32.xlu2 %v638_v26, %s6863_s17 }
 0x470   :  { %v607_v55 = vpop.f32.mrf.mxu2 }
 0x471   :  { %v608_v1 = vadd.f32 %v607_v55, %v103_v20  ;;  %813 = vrot.lane.b32.xlu2 %v638_v26, %s6864_s2 }
 0x473   :  { %v637_v35 = vpack.c.bf16 %v608_v1, %v608_v1 }
 0x475   :  { %811 = vrot.lane.b32.xlu1 %v637_v35, %s6864_s2 }
 0x478   :  { %v609_v40 = vpop.f32.mrf.mxu2 }
 0x47b   :  { %v507_v41 = vpop.f32.mrf.mxu0 }
 0x47c   :  { %520 = vrot.lane.b32.xlu0 %v507_v41, %s6863_s17 }
 0x483   :  { %v509_v44 = vpop.f32.mrf.mxu0 }
 0x484   :  { %693 = vrot.lane.b32.xlu0 %v637_v35, %s6863_s17 }
 0x48c   :  { %753 = vrot.lane.b32.xlu0 %v637_v35, %s6862_s1 }
 0x492   :  { %v756_v63 = vpop.permute.xlu1 %755 }
 0x493   :  { %v761_v2 = vsel %vm278_vm0, %v756_v63, 0 }
 0x49b   :  { %v633_v8 = vpop.f32.mrf.mxu0 }
 0x49c   :  { %v634_v26 = vadd.f32 %v633_v8, %v105_v32  ;;  %v902_v8 = vld [vmem:[%s10117_s5] sm:$0xff] }
 0x4a3   :  { %v635_v49 = vpop.f32.mrf.mxu0 }
 0x4a6   :  { %v513_v20 = vpop.permute.xlu2 %512 }
 0x4a7   :  { %v523_v56 = vsel %vm278_vm0, %v7224_v27, %v513_v20 }
 0x4bb   :  { %v517_v45 = vpop.permute.xlu2 %516 }
 0x4bc   :  { %v525_v57 = vsel %vm524_vm4, %v523_v56, %v517_v45 }
 0x4c3   :  { %v697_v48 = vpop.permute.xlu2 %696 }
 0x4c4   :  { %v702_v50 = vsel %vm278_vm0, %v697_v48, 0 }
 0x4c5   :  { %711 = vmatpush.bf16.xpose.msra.mxu3 %v702_v50 }
 0x4cb   :  { %v814_v53 = vpop.permute.xlu2 %813 }
 0x4cc   :  { %v819_v54 = vsel %vm278_vm0, %v814_v53, 0 }
 0x4cd   :  { %828 = vmatpush.bf16.xpose.msrb.mxu3 %v819_v54 }
 0x4e7   :  { %v812_v6 = vpop.permute.xlu1 %811 }
 0x4ee   :  { %v521_v58 = vpop.permute.xlu0 %520 }
 0x4ef   :  { %v527_v59 = vsel %vm526_vm5, %v525_v57, %v521_v58 }
 0x4f0   :  { %v528_v0 = vpack.c.bf16 %v527_v59, %v527_v59 }
 0x4f2   :  { %588 = vmatmul.bf16.vlgmr.msrb.gmra.mxu1 %v528_v0 }
 0x4f3   :  { %770 = vmatpush.bf16.xpose.msrb.mxu1 %v761_v2 }
 0x4f6   :  { %v694_v5 = vpop.permute.xlu0 %693 }
 0x4f7   :  { %4933 = vmatmul.msk.bf16.vlgmr.msra.gmra.mxu3 %vm278_vm0, %v694_v5 }
 0x4fe   :  { %v754_v27 = vpop.permute.xlu0 %753 }
 0x502   :  { %4931 = vmatmul.msk.bf16.vlgmr.msra.gmra.mxu1 %vm278_vm0, %v637_v35 }
 0x503   :  { %885 = vmatpush.bf16.msra.mxu1 %v6354_v33 }
 0x507   :  { %4937 = vmatmul.msk.bf16.vlgmr.msrb.gmra.mxu3 %vm278_vm0, %v812_v6  ;;  %886 = vmatpush.bf16.msra.mxu1 %v6353_v42 }
 0x50b   :  { %887 = vmatpush.bf16.msra.mxu1 %v6352_v60 }
 0x50f   :  { %888 = vmatpush.bf16.msra.mxu1 %v6351_v4 }
 0x512   :  { %4935 = vmatmul.msk.bf16.vlgmr.msrb.gmra.mxu1 %vm278_vm0, %v754_v27 }
 0x513   :  { %889 = vmatpush.bf16.msra.mxu1 %v6350_v31  ;;  %v672_v31 = vpack.c.bf16 %v634_v26, %v634_v26 }
 0x515   :  { %v677_v41 = vsel %vm317_vm1, %v672_v31, 0 }
 0x516   :  { %686 = vmatpush.bf16.msrb.mxu2 %v677_v41 }
 0x517   :  { %890 = vmatpush.bf16.msra.mxu1 %v6349_v38 }
 0x51b   :  { %891 = vmatpush.bf16.msra.mxu1 %v6348_v15 }
 0x51f   :  { %892 = vmatpush.bf16.msra.mxu1 %v6347_v36 }
 0x56f   :  { %v589_v12 = vpop.f32.mrf.mxu1 }
 0x570   :  { %v590_v18 = vadd.f32 %v7325_v9, %v589_v12 }
 0x572   :  { %v7329_v3 = vadd.f32 %v590_v18, %v7135_v62 }
 0x574   :  { %594 = vst [vmem:[#allocation2] sm:$0xff] %v7329_v3 }
 0x577   :  { %v591_v19 = vpop.f32.mrf.mxu1 }
 0x57a   :  { %v713_v10 = vpop.f32.mrf.mxu3 }
 0x57b   :  { %v717_v16 = vmul.f32 0.17677669, %v713_v10 }
 0x57d   :  { %v718_v22 = vsel %vm7201_vm2, %v717_v16, -3.4028235e+38 }
 0x57e   :  { %v719_v37 = vsel %vm300_vm3, %v718_v22, -inf }
 0x57f   :  { %720 = vmax.xlane.f32.xlu0 %v719_v37  ;;  %v654_v34 = vpop.f32.mrf.mxu1  ;;  %v917_v37 = vld [vmem:[%s10117_s5 + $0x78] sm:$0xff] }
 0x580   :  { %v658_v21 = vmul.f32 0.17677669, %v654_v34 }
 0x582   :  { %v715_v52 = vpop.f32.mrf.mxu3  ;;  %v659_v61 = vsel %vm7201_vm2, %v658_v21, -3.4028235e+38 }
 0x583   :  { %v660_v62 = vsel %vm300_vm3, %v659_v61, -inf }
 0x584   :  { %661 = vmax.xlane.f32.xlu2 %v660_v62  ;;  %v916_v62 = vld [vmem:[%s10117_s5 + $0x70] sm:$0xff] }
 0x587   :  { %v656_v24 = vpop.f32.mrf.mxu1 }
 0x588   :  { %v915_v24 = vld [vmem:[%s10117_s5 + $0x68] sm:$0xff] }
 0x58a   :  { %v830_v25 = vpop.f32.mrf.mxu3 }
 0x58b   :  { %v834_v23 = vmul.f32 0.17677669, %v830_v25  ;;  %v914_v25 = vld [vmem:[%s10117_s5 + $0x60] sm:$0xff] }
 0x58d   :  { %v835_v7 = vsel %vm7201_vm2, %v834_v23, -3.4028235e+38  ;;  %v913_v23 = vld [vmem:[%s10117_s5 + $0x58] sm:$0xff] }
 0x58e   :  { %v836_v28 = vsel %vm300_vm3, %v835_v7, -inf }
 0x58f   :  { %837 = vmax.xlane.f32.xlu2 %v836_v28  ;;  %v772_v11 = vpop.f32.mrf.mxu1  ;;  %v911_v28 = vld [vmem:[%s10117_s5 + $0x48] sm:$0xff] }
 0x590   :  { %v776_v17 = vmul.f32 0.17677669, %v772_v11  ;;  %v910_v11 = vld [vmem:[%s10117_s5 + $0x40] sm:$0xff] }
 0x592   :  { %v832_v29 = vpop.f32.mrf.mxu3  ;;  %v777_v33 = vsel %vm7201_vm2, %v776_v17, -3.4028235e+38  ;;  %v909_v17 = vld [vmem:[%s10117_s5 + $0x38] sm:$0xff] }
 0x593   :  { %v778_v42 = vsel %vm300_vm3, %v777_v33, -inf  ;;  %v908_v29 = vld [vmem:[%s10117_s5 + $0x30] sm:$0xff] }
 0x594   :  { %779 = vmax.xlane.f32.xlu1 %v778_v42  ;;  %v906_v42 = vld [vmem:[%s10117_s5 + $0x20] sm:$0xff] }
 0x597   :  { %v774_v51 = vpop.f32.mrf.mxu1 }
 0x598   :  { %v905_v51 = vld [vmem:[%s10117_s5 + $0x18] sm:$0xff] }
 0x5a7   :  { %732 = vrot.lane.b32.xlu2 %v672_v31, %s6863_s17 }
 0x5f2   :  { %v721_v60 = vpop.xlane.xlu0 %720 }
 0x5f3   :  { %v722_v4 = vsub.f32 %v718_v22, %v721_v60  ;;  %v904_v60 = vld [vmem:[%s10117_s5 + $0x10] sm:$0xff] }
 0x5f5   :  { %v723_v13 = vmul.f32 1.442695, %v722_v4  ;;  %v903_v4 = vld [vmem:[%s10117_s5 + $0x8] sm:$0xff] }
 0x5f7   :  { %6654 = vpow2.f32 %v723_v13  ;;  %v662_v30 = vpop.xlane.xlu2 %661 }
 0x5f8   :  { %v663_v38 = vsub.f32 %v659_v61, %v662_v30 }
 0x5fa   :  { %v664_v46 = vmul.f32 1.442695, %v663_v38 }
 0x5fc   :  { %6656 = vpow2.f32 %v664_v46 }
 0x5fd   :  { %v6655_v55 = vpop.eup %6654 }
 0x5fe   :  { %v725_v15 = vsel %vm300_vm3, %v6655_v55, 0.0 }
 0x5ff   :  { %726 = vadd.xlane.f32.xlu1 %v725_v15  ;;  %v7416_v15 = vld [vmem:[%s10118_s6] ss:$0 sm:$0xff] }
 0x602   :  { %v6657_v1 = vpop.eup %6656  ;;  %v838_v35 = vpop.xlane.xlu2 %837 }
 0x603   :  { %v839_v36 = vsub.f32 %v835_v7, %v838_v35  ;;  %v666_v39 = vsel %vm300_vm3, %v6657_v1, 0.0  ;;  %v912_v7 = vld [vmem:[%s10117_s5 + $0x50] sm:$0xff] }
 0x604   :  { %667 = vadd.xlane.f32.xlu0 %v666_v39 }
 0x605   :  { %v840_v14 = vmul.f32 1.442695, %v839_v36 }
 0x607   :  { %6658 = vpow2.f32 %v840_v14  ;;  %v780_v32 = vpop.xlane.xlu1 %779 }
 0x608   :  { %v781_v40 = vsub.f32 %v777_v33, %v780_v32  ;;  %v907_v33 = vld [vmem:[%s10117_s5 + $0x28] sm:$0xff] }
 0x60a   :  { %v782_v44 = vmul.f32 1.442695, %v781_v40  ;;  %v733_v53 = vpop.permute.xlu2 %732 }
 0x60b   :  { %v738_v54 = vsel %vm317_vm1, %v733_v53, 0 }
 0x60c   :  { %6660 = vpow2.f32 %v782_v44  ;;  %747 = vmatpush.bf16.msra.mxu0 %v738_v54  ;;  %v5057_v54 = vld [vmem:[%s10119_s7 + $0xf0] sm:$0xf0] }
 0x60d   :  { %v6659_v20 = vpop.eup %6658 }
 0x60e   :  { %v842_v45 = vsel %vm300_vm3, %v6659_v20, 0.0 }
 0x60f   :  { %843 = vadd.xlane.f32.xlu1 %v842_v45  ;;  %v5055_v45 = vld [vmem:[%s10119_s7 + $0xe0] sm:$0xf] }
 0x612   :  { %v6661_v48 = vpop.eup %6660 }
 0x613   :  { %v784_v50 = vsel %vm300_vm3, %v6661_v48, 0.0 }
 0x614   :  { %785 = vadd.xlane.f32.xlu0 %v784_v50  ;;  %v6383_v50 = vld [vmem:[%s10119_s7 + $0xe4] sm:$0xf] }
 0x628   :  { %848 = vrot.lane.b32.xlu1 %v672_v31, %s6864_s2  ;;  %790 = vrot.lane.b32.xlu0 %v672_v31, %s6862_s1 }
 0x672   :  { %v727_v56 = vpop.xlane.xlu1 %726 }
 0x673   :  { %6662 = vrcp.f32 %v727_v56  ;;  %v5063_v56 = vld [vmem:[%s10119_s7 + $0xe8] sm:$0xf] }
 0x677   :  { %v668_v57 = vpop.xlane.xlu0 %667 }
 0x678   :  { %6664 = vrcp.f32 %v668_v57  ;;  %v6386_v57 = vld [vmem:[%s10119_s7 + $0xf4] sm:$0xf0] }
 0x679   :  { %v6663_v58 = vpop.eup %6662 }
 0x67a   :  { %v729_v59 = vmul.f32 %v6663_v58, %v6655_v55  ;;  %v5060_v58 = vor.u32 %v6383_v50, %v5057_v54  ;;  %v6368_v50 = vld [vmem:[%s10119_s7 + $0x6c] sm:$0xf]  ;;  %v4977_v54 = vld [vmem:[%s10119_s7 + $0x50] sm:$0xf0] }
 0x67c   :  { %v730_v63 = vpack.c.bf16 %v729_v59, %v729_v59  ;;  %v5064_v59 = vor.u32 %v6386_v57, %v5063_v56  ;;  %v4983_v56 = vld [vmem:[%s10119_s7 + $0x48] sm:$0xf]  ;;  %v6366_v57 = vld [vmem:[%s10119_s7 + $0x54] sm:$0xf0] }
 0x67e   :  { %v6665_v0 = vpop.eup %6664  ;;  %4934 = vmatmul.msk.bf16.vlgmr.msra.gmra.mxu0 %vm300_vm3, %v730_v63  ;;  %v5039_v63 = vld [vmem:[%s10119_s7 + $0xc0] sm:$0xf]  ;;  %1323 = vmatpush.bf16.msrb.mxu1 %v5064_v59 }
 0x67f   :  { %v670_v2 = vmul.f32 %v6665_v0, %v6657_v1  ;;  %v6381_v0 = vld [vmem:[%s10119_s7 + $0xcc] sm:$0xf0] }
 0x681   :  { %v671_v5 = vpack.c.bf16 %v670_v2, %v670_v2  ;;  %v6379_v2 = vld [vmem:[%s10119_s7 + $0xc4] sm:$0xf] }
 0x682   :  { %v844_v6 = vpop.xlane.xlu1 %843 }
 0x683   :  { %4932 = vmatmul.msk.bf16.vlgmr.msrb.gmra.mxu2 %vm300_vm3, %v671_v5  ;;  %6666 = vrcp.f32 %v844_v6  ;;  %v5040_v5 = vor.u32 %v6381_v0, %v5039_v63  ;;  %v5041_v6 = vld [vmem:[%s10119_s7 + $0xd0] sm:$0xf0] }
 0x687   :  { %v786_v27 = vpop.xlane.xlu0 %785 }
 0x688   :  { %6668 = vrcp.f32 %v786_v27  ;;  %v5047_v27 = vld [vmem:[%s10119_s7 + $0xc8] sm:$0xf] }
 0x689   :  { %v6667_v12 = vpop.eup %6666 }
 0x68a   :  { %v846_v19 = vmul.f32 %v6667_v12, %v6659_v20  ;;  %v6382_v12 = vld [vmem:[%s10119_s7 + $0xd4] sm:$0xf0] }
 0x68c   :  { %v847_v52 = vpack.c.bf16 %v846_v19, %v846_v19  ;;  %v5048_v19 = vor.u32 %v6382_v12, %v5047_v27 }
 0x68e   :  { %v6669_v18 = vpop.eup %6668  ;;  %1324 = vmatpush.bf16.msrb.mxu1 %v5048_v19  ;;  %v6359_v19 = vld [vmem:[%s10119_s7 + $0x24] sm:$0xf] }
 0x68f   :  { %v788_v10 = vmul.f32 %v6669_v18, %v6661_v48  ;;  %v6385_v48 = vld [vmem:[%s10119_s7 + $0xec] sm:$0xf0]  ;;  %v5044_v18 = vor.u32 %v6379_v2, %v5041_v6 }
 0x690   :  { %v5056_v53 = vor.u32 %v6385_v48, %v5055_v45  ;;  %v6363_v48 = vld [vmem:[%s10119_s7 + $0x44] sm:$0xf] }
 0x691   :  { %v789_v61 = vpack.c.bf16 %v788_v10, %v788_v10  ;;  %v6384_v10 = vld [vmem:[%s10119_s7 + $0xec] sm:$0xf]  ;;  %v4980_v2 = vor.u32 %v6363_v48, %v4977_v54 }
 0x692   :  { %1295 = vmatpush.bf16.msra.mxu3 %v5056_v53  ;;  %v5001_v53 = vld [vmem:[%s10119_s7 + $0x78] sm:$0xf0] }
 0x693   :  { %v5004_v63 = vor.u32 %v6368_v50, %v5001_v53 }
 0x696   :  { %1296 = vmatpush.bf16.msra.mxu3 %v5040_v5  ;;  %v4984_v5 = vor.u32 %v6366_v57, %v4983_v56 }
 0x69a   :  { %v791_v16 = vpop.permute.xlu0 %790  ;;  %v849_v22 = vpop.permute.xlu1 %848 }
 0x69b   :  { %v796_v34 = vsel %vm317_vm1, %v791_v16, 0  ;;  %v854_v21 = vsel %vm317_vm1, %v849_v22, 0  ;;  %v5065_v16 = vld [vmem:[%s10119_s7 + $0xf8] sm:$0xf0]  ;;  %v5023_v22 = vld [vmem:[%s10119_s7 + $0xa0] sm:$0xf] }
 0x69c   :  { %805 = vmatpush.bf16.msra.mxu2 %v796_v34  ;;  %863 = vmatpush.bf16.msrb.mxu0 %v854_v21  ;;  %v6377_v34 = vld [vmem:[%s10119_s7 + $0xac] sm:$0xf0]  ;;  %v6375_v21 = vld [vmem:[%s10119_s7 + $0xa4] sm:$0xf] }
 0x69f   :  { %4936 = vmatmul.msk.bf16.vlgmr.msra.gmra.mxu2 %vm300_vm3, %v789_v61  ;;  %4938 = vmatmul.msk.bf16.vlgmr.msrb.gmra.mxu0 %vm300_vm3, %v847_v52  ;;  %v5025_v52 = vld [vmem:[%s10119_s7 + $0xb0] sm:$0xf0]  ;;  %v5031_v61 = vld [vmem:[%s10119_s7 + $0xa8] sm:$0xf] }
 0x6a0   :  { %922 = vmatpush.msrb.mxu2 %v917_v37  ;;  %1309 = vmatpush.bf16.msra.mxu0 %v5060_v58  ;;  %v5068_v37 = vor.u32 %v6384_v10, %v5065_v16  ;;  %v4961_v16 = vld [vmem:[%s10119_s7 + $0x30] sm:$0xf0] }
 0x6a2   :  { %923 = vmatpush.msrb.mxu2 %v916_v62  ;;  %v6378_v62 = vld [vmem:[%s10119_s7 + $0xb4] sm:$0xf0] }
 0x6a4   :  { %924 = vmatpush.msrb.mxu2 %v915_v24  ;;  %v6380_v24 = vld [vmem:[%s10119_s7 + $0xcc] sm:$0xf]  ;;  %1310 = vmatpush.bf16.msra.mxu0 %v5044_v18  ;;  %v6361_v18 = vld [vmem:[%s10119_s7 + $0x2c] sm:$0xf0] }
 0x6a6   :  { %925 = vmatpush.msrb.mxu2 %v914_v25  ;;  %v5024_v25 = vor.u32 %v6377_v34, %v5023_v22  ;;  %v4967_v22 = vld [vmem:[%s10119_s7 + $0x28] sm:$0xf]  ;;  %v4964_v34 = vor.u32 %v6359_v19, %v4961_v16 }
 0x6a8   :  { %926 = vmatpush.msrb.mxu2 %v913_v23  ;;  %v5049_v23 = vld [vmem:[%s10119_s7 + $0xd8] sm:$0xf0]  ;;  %1297 = vmatpush.bf16.msra.mxu3 %v5024_v25  ;;  %v6357_v25 = vld [vmem:[%s10119_s7 + $0xc] sm:$0xf0] }
 0x6aa   :  { %927 = vmatpush.msrb.mxu2 %v912_v7  ;;  %v5007_v7 = vld [vmem:[%s10119_s7 + $0x80] sm:$0xf] }
 0x6ac   :  { %928 = vmatpush.msrb.mxu2 %v911_v28  ;;  %v6373_v28 = vld [vmem:[%s10119_s7 + $0x8c] sm:$0xf0] }
 0x6ae   :  { %929 = vmatpush.msrb.mxu2 %v910_v11  ;;  %v5028_v11 = vor.u32 %v6375_v21, %v5025_v52  ;;  %v6364_v52 = vld [vmem:[%s10119_s7 + $0x4c] sm:$0xf] }
 0x6b0   :  { %930 = vmatpush.msrb.mxu2 %v909_v17  ;;  %v5032_v17 = vor.u32 %v6378_v62, %v5031_v61  ;;  %1311 = vmatpush.bf16.msra.mxu0 %v5028_v11  ;;  %v4985_v61 = vld [vmem:[%s10119_s7 + $0x58] sm:$0xf0]  ;;  %v4951_v11 = vld [vmem:[%s10119_s7 + $0x8] sm:$0xf] }
 0x6b1   :  { %v4988_v62 = vor.u32 %v6364_v52, %v4985_v61 }
 0x6b2   :  { %931 = vmatpush.msrb.mxu2 %v908_v29  ;;  %v5052_v29 = vor.u32 %v6380_v24, %v5049_v23  ;;  %1325 = vmatpush.bf16.msrb.mxu1 %v5032_v17  ;;  %v4943_v24 = vld [vmem:[%s10119_s7] sm:$0xf]  ;;  %v6355_v23 = vld [vmem:[%s10119_s7 + $0x4] sm:$0xf]  ;;  %v6358_v17 = vld [vmem:[%s10119_s7 + $0x14] sm:$0xf0] }
 0x6b4   :  { %932 = vmatpush.msrb.mxu2 %v907_v33  ;;  %v6371_v33 = vld [vmem:[%s10119_s7 + $0x84] sm:$0xf] }
 0x6b6   :  { %933 = vmatpush.msrb.mxu2 %v906_v42  ;;  %v5009_v42 = vld [vmem:[%s10119_s7 + $0x90] sm:$0xf0] }
 0x6b8   :  { %934 = vmatpush.msrb.mxu2 %v905_v51  ;;  %v5015_v51 = vld [vmem:[%s10119_s7 + $0x88] sm:$0xf] }
 0x6ba   :  { %935 = vmatpush.msrb.mxu2 %v904_v60  ;;  %v6374_v60 = vld [vmem:[%s10119_s7 + $0x94] sm:$0xf0] }
 0x6bc   :  { %936 = vmatpush.msrb.mxu2 %v903_v4  ;;  %v6376_v4 = vld [vmem:[%s10119_s7 + $0xac] sm:$0xf] }
 0x6be   :  { %937 = vmatpush.msrb.mxu2 %v902_v8  ;;  %v5033_v8 = vld [vmem:[%s10119_s7 + $0xb8] sm:$0xf0] }
 0x6bf   :  { %938 = vmatmul.f32.vlgmr.msrb.gmra.mxu2 %v7329_v3 }
 0x6c0   :  { %1337 = vmatpush.bf16.msra.mxu2 %v5068_v37  ;;  %v6362_v37 = vld [vmem:[%s10119_s7 + $0x34] sm:$0xf0] }
 0x6c1   :  { %v4968_v21 = vor.u32 %v6362_v37, %v4967_v22 }
 0x6c4   :  { %1338 = vmatpush.bf16.msra.mxu2 %v5052_v29 }
 0x6fb   :  { %v749_v13 = vpop.f32.mrf.mxu0 }
 0x6fc   :  { %870 = vrot.lane.b32.xlu2 %v749_v13, %s6864_s2  ;;  %v5008_v13 = vor.u32 %v6373_v28, %v5007_v7  ;;  %v4944_v7 = vor.u32 %v6357_v25, %v4943_v24  ;;  %v4945_v28 = vld [vmem:[%s10119_s7 + $0x10] sm:$0xf0] }
 0x6fd   :  { %v4948_v29 = vor.u32 %v6355_v23, %v4945_v28 }
 0x6fe   :  { %1298 = vmatpush.bf16.msra.mxu3 %v5008_v13 }
 0x703   :  { %v751_v26 = vpop.f32.mrf.mxu0 }
 0x704   :  { %v5036_v26 = vor.u32 %v6376_v4, %v5033_v8  ;;  %v6356_v4 = vld [vmem:[%s10119_s7 + $0xc] sm:$0xf]  ;;  %v4953_v8 = vld [vmem:[%s10119_s7 + $0x18] sm:$0xf0] }
 0x705   :  { %v4956_v13 = vor.u32 %v6356_v4, %v4953_v8 }
 0x706   :  { %v688_v30 = vpop.f32.mrf.mxu2  ;;  %1339 = vmatpush.bf16.msra.mxu2 %v5036_v26 }
 0x70e   :  { %v690_v31 = vpop.f32.mrf.mxu2 }
 0x70f   :  { %v6369_v31 = vld [vmem:[%s10119_s7 + $0x6c] sm:$0xf0] }
 0x71c   :  { %v865_v38 = vpop.f32.mrf.mxu0 }
 0x71d   :  { %878 = vrot.lane.b32.xlu2 %v865_v38, %s6863_s17  ;;  %v5012_v38 = vor.u32 %v6371_v33, %v5009_v42  ;;  %v4952_v33 = vor.u32 %v6358_v17, %v4951_v11  ;;  %v6360_v42 = vld [vmem:[%s10119_s7 + $0x2c] sm:$0xf] }
 0x71f   :  { %1312 = vmatpush.bf16.msra.mxu0 %v5012_v38 }
 0x722   :  { %v807_v46 = vpop.f32.mrf.mxu2 }
 0x723   :  { %874 = vrot.lane.b32.xlu0 %v807_v46, %s6862_s1  ;;  %v5016_v46 = vor.u32 %v6374_v60, %v5015_v51  ;;  %v4969_v51 = vld [vmem:[%s10119_s7 + $0x38] sm:$0xf0] }
 0x724   :  { %v867_v49 = vpop.f32.mrf.mxu0  ;;  %v4972_v60 = vor.u32 %v6360_v42, %v4969_v51 }
 0x725   :  { %v6367_v49 = vld [vmem:[%s10119_s7 + $0x64] sm:$0xf]  ;;  %1326 = vmatpush.bf16.msrb.mxu1 %v5016_v46 }
 0x72a   :  { %v809_v55 = vpop.f32.mrf.mxu2 }
 0x72b   :  { %v6372_v55 = vld [vmem:[%s10119_s7 + $0x8c] sm:$0xf] }
 0x742   :  { %v939_v1 = vpop.f32.mrf.mxu2 }
 0x743   :  { %v7419_v35 = vadd.f32 %v7416_v15, %v939_v1  ;;  %v5017_v1 = vld [vmem:[%s10119_s7 + $0x98] sm:$0xf0] }
 0x745   :  { %v946_v36 = vsel %vm945_vm6, %v7419_v35, -inf }
 0x746   :  { %947 = vmax.xlane.f32.xlu1 %v946_v36  ;;  %v4993_v36 = vld [vmem:[%s10119_s7 + $0x70] sm:$0xf0] }
 0x756   :  { %v871_v39 = vpop.permute.xlu2 %870 }
 0x757   :  { %v881_v14 = vsel %vm278_vm0, %v688_v30, %v871_v39  ;;  %v4991_v30 = vld [vmem:[%s10119_s7 + $0x60] sm:$0xf]  ;;  %v4999_v39 = vld [vmem:[%s10119_s7 + $0x68] sm:$0xf] }
 0x777   :  { %v879_v40 = vpop.permute.xlu2 %878 }
 0x795   :  { %v875_v32 = vpop.permute.xlu0 %874 }
 0x796   :  { %v882_v41 = vsel %vm524_vm4, %v881_v14, %v875_v32  ;;  %v6370_v14 = vld [vmem:[%s10119_s7 + $0x74] sm:$0xf0]  ;;  %v4992_v32 = vor.u32 %v6369_v31, %v4991_v30 }
 0x797   :  { %v883_v44 = vsel %vm526_vm5, %v882_v41, %v879_v40  ;;  %v5020_v40 = vor.u32 %v6372_v55, %v5017_v1  ;;  %v4975_v41 = vld [vmem:[%s10119_s7 + $0x40] sm:$0xf]  ;;  %v5000_v45 = vor.u32 %v6370_v14, %v4999_v39 }
 0x798   :  { %v884_v20 = vpack.c.bf16 %v883_v44, %v883_v44  ;;  %v6365_v44 = vld [vmem:[%s10119_s7 + $0x4c] sm:$0xf0]  ;;  %1299 = vmatpush.bf16.msra.mxu3 %v4992_v32 }
 0x799   :  { %1340 = vmatpush.bf16.msra.mxu2 %v5020_v40  ;;  %v4976_v59 = vor.u32 %v6365_v44, %v4975_v41  ;;  %1327 = vmatpush.bf16.msrb.mxu1 %v5000_v45 }
 0x79a   :  { %893 = vmatmul.bf16.vlgmr.msra.gmra.mxu1 %v884_v20  ;;  %v4996_v20 = vor.u32 %v6367_v49, %v4993_v36 }
 0x79c   :  { %1313 = vmatpush.bf16.msra.mxu0 %v4996_v20  ;;  %1300 = vmatpush.bf16.msra.mxu3 %v4976_v59 }
 0x79d   :  { %1341 = vmatpush.bf16.msra.mxu2 %v5004_v63  ;;  %1328 = vmatpush.bf16.msrb.mxu1 %v4984_v5 }
 0x7a0   :  { %1314 = vmatpush.bf16.msra.mxu0 %v4980_v2 }
 0x7a1   :  { %1329 = vmatpush.bf16.msrb.mxu1 %v4968_v21  ;;  %1342 = vmatpush.bf16.msra.mxu2 %v4988_v62 }
 0x7a4   :  { %1315 = vmatpush.bf16.msra.mxu0 %v4964_v34 }
 0x7a5   :  { %1330 = vmatpush.bf16.msrb.mxu1 %v4952_v33  ;;  %1343 = vmatpush.bf16.msra.mxu2 %v4972_v60 }
 0x7a8   :  { %1316 = vmatpush.bf16.msra.mxu0 %v4948_v29 }
 0x7a9   :  { %1344 = vmatpush.bf16.msra.mxu2 %v4956_v13 }
 0x7b9   :  { %v948_v58 = vpop.xlane.xlu1 %947 }
 0x7ba   :  { %v952_v0 = vsub.f32 %v7419_v35, %v948_v58  ;;  %v4959_v35 = vld [vmem:[%s10119_s7 + $0x20] sm:$0xf] }
 0x7bb   :  { %v4960_v10 = vor.u32 %v6361_v18, %v4959_v35 }
 0x7bc   :  { %v954_v6 = vmul.f32 1.442695, %v952_v0 }
 0x7bd   :  { %1301 = vmatpush.bf16.msra.mxu3 %v4960_v10 }
 0x7be   :  { %6670 = vpow2.f32 %v954_v6 }
 0x7c1   :  { %1302 = vmatpush.bf16.msra.mxu3 %v4944_v7 }
 0x7c4   :  { %v7565_v27 = vpop.eup %6670 }
 0x7c5   :  { %v958_v12 = vsel %vm945_vm6, %v7565_v27, 0.0 }
 0x7c6   :  { %959 = vadd.xlane.f32.xlu2 %v958_v12 }
 0x817   :  { %v894_v26 = vpop.f32.mrf.mxu1 }
 0x818   :  { %v895_v30 = vadd.f32 %v7325_v9, %v894_v26  ;;  %v7635_v9 = vld [vmem:[%s10120_s8] sm:$0xf] }
 0x819   :  { %v1127_v32 = vperm.slane %v7635_v9, 0  ;;  %v1130_v21 = vperm.slane %v7635_v9, 3 }
 0x81a   :  { %v898_v31 = vadd.f32 %v7258_v43, %v895_v30  ;;  %v1128_v43 = vperm.slane %v7635_v9, 1 }
 0x81c   :  { %900 = vst [vmem:[#allocation2 + $0x8] sm:$0xff] %v898_v31  ;;  %v7626_v38 = vpack.c.bf16 %v898_v31, %v7329_v3  ;;  %941 = vmatmul.f32.gmra.mxu2 %v898_v31  ;;  %v1129_v3 = vperm.slane %v7635_v9, 2 }
 0x81d   :  { %4762 = dma.vmem_to_hbm [thread:$0]  %s4755_s24, 256, %s4757_s22, [#allocation3], %s6871_s25, %s6871_s25, %s6872_s26  }
 0x81e   :  { %1303 = vmatmul.bf16.vlgmr.msra.gmra.mxu3 %v7626_v38  ;;  %1317 = vmatmul.bf16.vlgmr.msra.gmra.mxu0 %v7626_v38 }
 0x81f   :  { %1331 = vmatmul.bf16.vlgmr.msrb.gmra.mxu1 %v7626_v38  ;;  %v896_v46 = vpop.f32.mrf.mxu1 }
 0x824   :  { %1345 = vmatmul.bf16.vlgmr.msra.gmra.mxu2 %v7626_v38 }
 0x839   :  { %v960_v49 = vpop.xlane.xlu2 %959 }
 0x83a   :  { %6672 = vrcp.f32 %v960_v49 }
 0x840   :  { %v6673_v56 = vpop.eup %6672 }
 0x841   :  { %v7661_v2 = vmul.f32 %v6673_v56, %v7565_v27 }
 0x843   :  { %v968_v22 = vsel %vm945_vm6, %v7661_v2, -inf }
 0x89b   :  { %v1318_v55 = vpop.f32.mrf.mxu0 }
 0x89c   :  { %v1319_v1 = vadd.f32 %v1318_v55, %v1128_v43  ;;  %v1332_v36 = vpop.f32.mrf.mxu1 }
 0x89d   :  { %v1333_v39 = vadd.f32 %v1332_v36, %v1129_v3 }
 0x89e   :  { %v7639_v14 = vmul.f32 0.70710677, %v1319_v1  ;;  %v7671_v37 = vmul.f32 0.5, %v1319_v1 }
 0x89f   :  { %v7642_v40 = vmul.f32 0.70710677, %v1333_v39  ;;  %v942_v41 = vpop.f32.mrf.mxu2  ;;  %v7673_v27 = vmul.f32 0.5, %v1333_v39 }
 0x8a0   :  { %v1368_v44 = vand.u32 2147483647, %v7639_v14  ;;  %v7646_v20 = vadd.f32 %v7416_v15, %v942_v41 }
 0x8a1   :  { %v1369_v45 = vand.u32 2147483647, %v7642_v40  ;;  %v1304_v48 = vpop.f32.mrf.mxu3 }
 0x8a2   :  { %v1376_v50 = vmul.f32 0.3275911, %v1368_v44  ;;  %v7651_v53 = vadd.f32 %v1304_v48, %v1127_v32  ;;  %v949_v54 = vsel %vm945_vm6, %v7646_v20, -inf  ;;  %v1584_v63 = vsub.f32 0.0, %v1368_v44 }
 0x8a3   :  { %v1377_v57 = vmul.f32 0.3275911, %v1369_v45  ;;  %950 = vmax.xlane.f32.xlu0 %v949_v54  ;;  %v1320_v58 = vpop.f32.mrf.mxu0  ;;  %v1585_v5 = vsub.f32 0.0, %v1369_v45 }
 0x8a4   :  { %v1384_v59 = vadd.f32 1.0, %v1376_v50  ;;  %v7658_v15 = vmul.f32 0.70710677, %v7651_v53  ;;  %v1321_v6 = vadd.f32 %v1320_v58, %v1128_v43  ;;  %v1334_v12 = vpop.f32.mrf.mxu1  ;;  %v1592_v35 = vmul.f32 %v1584_v63, %v1368_v44 }
 0x8a5   :  { %v7655_v0 = vadd.f32 1.0, %v1377_v57  ;;  %v1335_v19 = vadd.f32 %v1334_v12, %v1129_v3  ;;  %v1593_v10 = vmul.f32 %v1585_v5, %v1369_v45 }
 0x8a6   :  { %6674 = vrcp.f32 %v1384_v59  ;;  %v7665_v18 = vand.u32 2147483647, %v7658_v15  ;;  %v7667_v16 = vmul.f32 0.70710677, %v1321_v6  ;;  %vm1411_vm7 = vweird.f32 %v1384_v59 }
 0x8a7   :  { %6676 = vrcp.f32 %v7655_v0  ;;  %v1415_v61 = vand.u32 2147483647, %v1384_v59  ;;  %v1417_v62 = vand.u32 2147483648, %v1384_v59  ;;  %v1601_v7 = vmul.f32 1.442695, %v1592_v35  ;;  %v1346_v3 = vpop.f32.mrf.mxu2 }
 0x8a8   :  { %v1375_v34 = vmul.f32 0.3275911, %v7665_v18  ;;  %v1372_v24 = vand.u32 2147483647, %v7667_v16  ;;  %v7680_v11 = vmul.f32 0.70710677, %v1335_v19  ;;  %vm1426_vm8 = vweird.f32 %v7655_v0 }
 0x8a9   :  { %v1430_v29 = vand.u32 2147483647, %v7655_v0  ;;  %v1603_v33 = vmul.f32 1.442695, %v1593_v10  ;;  %v1432_v60 = vand.u32 2147483648, %v7655_v0  ;;  %vm7687_vm9 = vcmp.eq.f32.partialorder %v1415_v61, 8.507059e+37  ;;  %v1306_v36 = vpop.f32.mrf.mxu3 }
 0x8aa   :  { %v7678_v28 = vadd.f32 1.0, %v1375_v34  ;;  %v1380_v42 = vmul.f32 0.3275911, %v1372_v24  ;;  %v1418_v8 = vor.u32 1.1754944e-38, %v1417_v62  ;;  %v7694_v31 = vand.u32 2147483647, %v7680_v11 }
 0x8ab   :  { %969 = vmax.xlane.f32.xlu0 %v968_v22  ;;  %vm7696_vm12 = vcmp.eq.f32.partialorder %v1430_v29, 8.507059e+37  ;;  %v1433_v55 = vor.u32 1.1754944e-38, %v1432_v60  ;;  %v7700_v1 = vmul.f32 0.5, %v1321_v6  ;;  %v1583_v41 = vsub.f32 0.0, %v7665_v18  ;;  %v6410_v61 = vld [vmem:[%s10121_s9 + $0xb8] sm:$0xff] }
 0x8ac   :  { %v6675_v52 = vpop.eup %6674  ;;  %6678 = vrcp.f32 %v7678_v28  ;;  %v7691_v26 = vadd.f32 1.0, %v1380_v42  ;;  %v7705_v44 = vmul.f32 0.5, %v1335_v19  ;;  %v1381_v45 = vmul.f32 0.3275911, %v7694_v31  ;;  %1963 = vmatpush.bf16.msra.mxu1 %v6410_v61 }
 0x8ad   :  { %v6677_v25 = vpop.eup %6676  ;;  %v1407_v23 = vmul.f32 %v6675_v52, %v1384_v59  ;;  %vm1412_vm10 = vweird.f32 %v6675_v52  ;;  %6680 = vpow2.f32 %v1601_v7  ;;  %v1400_v54 = vand.u32 2147483647, %v7678_v28 }
 0x8ae   :  { %v1422_v17 = vmul.f32 %v6677_v25, %v7655_v0  ;;  %vm1427_vm11 = vweird.f32 %v6677_v25  ;;  %6682 = vpow2.f32 %v1603_v33  ;;  %vm1413_vm13 = vmor %vm1411_vm7, %vm1412_vm10  ;;  %v1588_v56 = vsub.f32 0.0, %v1372_v24 }
 0x8af   :  { %v1408_v51 = vsub.f32 1.0, %v1407_v23  ;;  %6684 = vrcp.f32 %v7691_v26  ;;  %vm1428_vm14 = vmor %vm1426_vm8, %vm1427_vm11  ;;  %v7714_v57 = vadd.f32 %v1346_v3, %v1130_v21  ;;  %v7723_v5 = vadd.f32 %v1306_v36, %v1127_v32 }
 0x8b0   :  { %v1423_v13 = vsub.f32 1.0, %v1422_v17  ;;  %v1402_v35 = vand.u32 2147483648, %v7678_v28  ;;  %v7733_v19 = vadd.f32 1.0, %v1381_v45  ;;  %vm1396_vm15 = vweird.f32 %v7678_v28 }
 0x8b1   :  { %v1409_v30 = vmul.f32 %v6675_v52, %v1408_v51  ;;  %v7740_v32 = vmul.f32 %v1583_v41, %v7665_v18  ;;  %vm7748_vm0 = vcmp.eq.f32.partialorder %v1400_v54, 8.507059e+37  ;;  %v1596_v7 = vmul.f32 %v1588_v56, %v1372_v24  ;;  %v6394_v41 = vld [vmem:[%s10121_s9 + $0x38] sm:$0xff] }
 0x8b2   :  { %v1424_v46 = vmul.f32 %v6677_v25, %v1423_v13  ;;  %v6679_v48 = vpop.eup %6678  ;;  %6686 = vrcp.f32 %v7733_v19  ;;  %v1403_v42 = vor.u32 1.1754944e-38, %v1402_v35  ;;  %vm1471_vm2 = vweird.f32 %v7691_v26  ;;  %v6401_v13 = vld [vmem:[%s10121_s9 + $0x70] sm:$0xff]  ;;  %1935 = vmatpush.bf16.msrb.mxu3 %v6394_v41  ;;  %v6400_v35 = vld [vmem:[%s10121_s9 + $0x68] sm:$0xff] }
 0x8b3   :  { %v1410_v49 = vadd.f32 %v6675_v52, %v1409_v30  ;;  %v1392_v63 = vmul.f32 %v6679_v48, %v7678_v28  ;;  %v7725_v0 = vpop.eup %6680  ;;  %vm1397_vm1 = vweird.f32 %v6679_v48  ;;  %v1475_v51 = vand.u32 2147483647, %v7691_v26  ;;  %v6409_v30 = vld [vmem:[%s10121_s9 + $0xb0] sm:$0xff] }
 0x8b4   :  { %v1425_v39 = vadd.f32 %v6677_v25, %v1424_v46  ;;  %v7735_v10 = vpop.eup %6682  ;;  %vm1398_vm3 = vmor %vm1396_vm15, %vm1397_vm1  ;;  %v1477_v43 = vand.u32 2147483648, %v7691_v26  ;;  %v7771_v3 = vmul.f32 1.442695, %v1596_v7  ;;  %1964 = vmatpush.bf16.msra.mxu1 %v6409_v30  ;;  %v1490_v54 = vand.u32 2147483647, %v7733_v19  ;;  %v6418_v30 = vld [vmem:[%s10121_s9 + $0xf8] sm:$0xff] }
 0x8b5   :  { %v1414_v50 = vsel %vm1413_vm13, %v6675_v52, %v1410_v49  ;;  %v1393_v34 = vsub.f32 1.0, %v1392_v63  ;;  %v6402_v52 = vld [vmem:[%s10121_s9 + $0x78] sm:$0xff]  ;;  %v6685_v62 = vpop.eup %6684  ;;  %vm7786_vm5 = vcmp.eq.f32.partialorder %v1475_v51, 8.507059e+37  ;;  %v1492_v61 = vand.u32 2147483648, %v7733_v19  ;;  %1977 = vmatpush.bf16.msrb.mxu2 %v6418_v30 }
 0x8b6   :  { %v7718_v58 = vsel %vm7687_vm9, %v1418_v8, %v1414_v50  ;;  %v1429_v59 = vsel %vm1428_vm14, %v6677_v25, %v1425_v39  ;;  %v1467_v29 = vmul.f32 %v6685_v62, %v7691_v26  ;;  %1949 = vmatpush.bf16.msrb.mxu0 %v6402_v52  ;;  %v7759_v8 = vmul.f32 0.70710677, %v7714_v57 }
 0x8b7   :  { %v1512_v6 = vmul.f32 1.0614054, %v7718_v58  ;;  %v7730_v12 = vsel %vm7696_vm12, %v1433_v55, %v1429_v59  ;;  %v1394_v18 = vmul.f32 %v6679_v48, %v1393_v34  ;;  %vm1472_vm4 = vweird.f32 %v6685_v62 }
 0x8b8   :  { %v1513_v22 = vmul.f32 1.0614054, %v7730_v12  ;;  %v1468_v24 = vsub.f32 1.0, %v1467_v29  ;;  %v7774_v39 = vand.u32 2147483647, %v7759_v8  ;;  %v7779_v45 = vpop.eup %6686  ;;  %vm1473_vm7 = vmor %vm1471_vm2, %vm1472_vm4  ;;  %v1478_v52 = vor.u32 1.1754944e-38, %v1477_v43 }
 0x8b9   :  { %v5070_v25 = vadd.f32 -1.4531521, %v1512_v6  ;;  %v1395_v4 = vadd.f32 %v6679_v48, %v1394_v18  ;;  %v1482_v6 = vmul.f32 %v7779_v45, %v7733_v19  ;;  %v6393_v29 = vld [vmem:[%s10121_s9 + $0x30] sm:$0xff]  ;;  %vm1487_vm8 = vweird.f32 %v7779_v45 }
 0x8ba   :  { %v5071_v17 = vadd.f32 -1.4531521, %v1513_v22  ;;  %v1469_v36 = vmul.f32 %v6685_v62, %v1468_v24  ;;  %1950 = vmatpush.bf16.msrb.mxu0 %v6401_v13  ;;  %v6408_v22 = vld [vmem:[%s10121_s9 + $0xa8] sm:$0xff]  ;;  %1936 = vmatpush.bf16.msrb.mxu3 %v6393_v29  ;;  %v6399_v24 = vld [vmem:[%s10121_s9 + $0x60] sm:$0xff]  ;;  %vm1486_vm9 = vweird.f32 %v7733_v19  ;;  %v1589_v43 = vsub.f32 0.0, %v7694_v31 }
 0x8bb   :  { %v1528_v33 = vmul.f32 %v5070_v25, %v7718_v58  ;;  %v1399_v55 = vsel %vm1398_vm3, %v6679_v48, %v1395_v4  ;;  %v1378_v25 = vmul.f32 0.3275911, %v7774_v39  ;;  %v1483_v18 = vsub.f32 1.0, %v1482_v6  ;;  %1965 = vmatpush.bf16.msra.mxu1 %v6408_v22  ;;  %v6407_v13 = vld [vmem:[%s10121_s9 + $0xa0] sm:$0xff]  ;;  %vm7837_vm10 = vmor %vm1486_vm9, %vm1487_vm8  ;;  %v6406_v22 = vld [vmem:[%s10121_s9 + $0x98] sm:$0xff] }
 0x8bc   :  { %v1529_v60 = vmul.f32 %v5071_v17, %v7730_v12  ;;  %v7784_v50 = vsel %vm7748_vm0, %v1403_v42, %v1399_v55  ;;  %v1470_v63 = vadd.f32 %v6685_v62, %v1469_v36  ;;  %vm1491_vm11 = vcmp.eq.f32.partialorder %v1490_v54, 8.507059e+37  ;;  %v6398_v54 = vld [vmem:[%s10121_s9 + $0x58] sm:$0xff] }
 0x8bd   :  { %v1536_v46 = vadd.f32 1.4214138, %v1528_v33  ;;  %v1511_v59 = vmul.f32 1.0614054, %v7784_v50  ;;  %v7815_v42 = vadd.f32 1.0, %v1378_v25  ;;  %v1484_v4 = vmul.f32 %v7779_v45, %v1483_v18 }
 0x8be   :  { %v1537_v49 = vadd.f32 1.4214138, %v1529_v60  ;;  %v1474_v17 = vsel %vm1473_vm7, %v6685_v62, %v1470_v63  ;;  %1951 = vmatpush.bf16.msrb.mxu0 %v6400_v35  ;;  %v1493_v19 = vor.u32 1.1754944e-38, %v1492_v61  ;;  %vm1632_vm12 = vcmp.lt.f32.partialorder %v7639_v14, 0.0 }
 0x8bf   :  { %v1544_v28 = vmul.f32 %v1536_v46, %v7718_v58  ;;  %v5069_v7 = vadd.f32 -1.4531521, %v1511_v59  ;;  %v7812_v26 = vsel %vm7786_vm5, %v1478_v52, %v1474_v17  ;;  %6688 = vrcp.f32 %v7815_v42  ;;  %1966 = vmatpush.bf16.msra.mxu1 %v6407_v13  ;;  %v6392_v59 = vld [vmem:[%s10121_s9 + $0x28] sm:$0xff] }
 0x8c0   :  { %v1545_v56 = vmul.f32 %v1537_v49, %v7730_v12  ;;  %v1516_v60 = vmul.f32 1.0614054, %v7812_v26  ;;  %v1485_v41 = vadd.f32 %v7779_v45, %v1484_v4  ;;  %v7865_v52 = vmul.f32 1.442695, %v7740_v32  ;;  %1937 = vmatpush.bf16.msrb.mxu3 %v6392_v59  ;;  %v6416_v4 = vld [vmem:[%s10121_s9 + $0xe8] sm:$0xff]  ;;  %v1348_v59 = vpop.f32.mrf.mxu2 }
 0x8c1   :  { %v5078_v34 = vadd.f32 -0.28449672, %v1544_v28  ;;  %v1527_v62 = vmul.f32 %v5069_v7, %v7784_v50  ;;  %v1597_v61 = vmul.f32 %v1589_v43, %v7694_v31  ;;  %vm1633_vm13 = vcmp.lt.f32.partialorder %v7642_v40, 0.0  ;;  %v6391_v31 = vld [vmem:[%s10121_s9 + $0x20] sm:$0xff] }
 0x8c2   :  { %v5079_v23 = vadd.f32 -0.28449672, %v1545_v56  ;;  %v5074_v36 = vadd.f32 -1.4531521, %v1516_v60  ;;  %1952 = vmatpush.bf16.msrb.mxu0 %v6399_v24  ;;  %v7842_v56 = vmul.f32 0.70710677, %v7723_v5  ;;  %v1489_v35 = vsel %vm7837_vm10, %v7779_v45, %v1485_v41 }
 0x8c3   :  { %v1560_v33 = vmul.f32 %v5078_v34, %v7718_v58  ;;  %v1535_v55 = vadd.f32 1.4214138, %v1527_v62  ;;  %v7867_v45 = vsel %vm1491_vm11, %v1493_v19, %v1489_v35  ;;  %v1586_v17 = vsub.f32 0.0, %v7774_v39  ;;  %1967 = vmatpush.bf16.msra.mxu1 %v6406_v22  ;;  %v6397_v62 = vld [vmem:[%s10121_s9 + $0x50] sm:$0xff]  ;;  %v6415_v35 = vld [vmem:[%s10121_s9 + $0xe0] sm:$0xff] }
 0x8c4   :  { %v1561_v51 = vmul.f32 %v5079_v23, %v7730_v12  ;;  %v1532_v6 = vmul.f32 %v5074_v36, %v7812_v26  ;;  %v1517_v7 = vmul.f32 1.0614054, %v7867_v45  ;;  %v7877_v29 = vand.u32 2147483647, %v7842_v56  ;;  %v6405_v60 = vld [vmem:[%s10121_s9 + $0x90] sm:$0xff]  ;;  %1938 = vmatpush.bf16.msrb.mxu3 %v6391_v31  ;;  %v6390_v36 = vld [vmem:[%s10121_s9 + $0x18] sm:$0xff] }
 0x8c5   :  { %v1568_v46 = vadd.f32 0.2548296, %v1560_v33  ;;  %6690 = vpow2.f32 %v7771_v3  ;;  %v1611_v24 = vmul.f32 1.442695, %v1597_v61  ;;  %v1445_v30 = vand.u32 2147483647, %v7815_v42 }
 0x8c6   :  { %v1569_v49 = vadd.f32 0.2548296, %v1561_v51  ;;  %v1540_v23 = vadd.f32 1.4214138, %v1532_v6  ;;  %1953 = vmatpush.bf16.msrb.mxu0 %v6398_v54  ;;  %v5075_v51 = vadd.f32 -1.4531521, %v1517_v7  ;;  %vm1441_vm14 = vweird.f32 %v7815_v42 }
 0x8c7   :  { %v1576_v28 = vmul.f32 %v1568_v46, %v7718_v58  ;;  %v1543_v58 = vmul.f32 %v1535_v55, %v7784_v50  ;;  %v1379_v3 = vmul.f32 0.3275911, %v7877_v29  ;;  %v1594_v55 = vmul.f32 %v1586_v17, %v7774_v39  ;;  %1968 = vmatpush.bf16.msra.mxu1 %v6405_v60  ;;  %v6404_v6 = vld [vmem:[%s10121_s9 + $0x88] sm:$0xff]  ;;  %v6389_v17 = vld [vmem:[%s10121_s9 + $0x10] sm:$0xff] }
 0x8c8   :  { %v1577_v63 = vmul.f32 %v1569_v49, %v7730_v12  ;;  %v6417_v12 = vld [vmem:[%s10121_s9 + $0xf0] sm:$0xff]  ;;  %v1548_v33 = vmul.f32 %v1540_v23, %v7812_v26  ;;  %v1533_v49 = vmul.f32 %v5075_v51, %v7867_v45  ;;  %v1447_v39 = vand.u32 2147483648, %v7815_v42  ;;  %1939 = vmatpush.bf16.msrb.mxu3 %v6390_v36  ;;  %v6403_v51 = vld [vmem:[%s10121_s9 + $0x80] sm:$0xff] }
 0x8c9   :  { %v1616_v34 = vmul.f32 %v7725_v0, %v1576_v28  ;;  %v7874_v0 = vpop.eup %6688  ;;  %v5077_v18 = vadd.f32 -0.28449672, %v1543_v58  ;;  %1978 = vmatpush.bf16.msrb.mxu2 %v6417_v12  ;;  %v7903_v19 = vadd.f32 1.0, %v1379_v3  ;;  %v6396_v58 = vld [vmem:[%s10121_s9 + $0x48] sm:$0xff]  ;;  %vm7919_vm0 = vcmp.eq.f32.partialorder %v1445_v30, 8.507059e+37 }
 0x8ca   :  { %v1617_v25 = vmul.f32 %v7735_v10, %v1577_v63  ;;  %v1437_v13 = vmul.f32 %v7874_v0, %v7815_v42  ;;  %v5082_v43 = vadd.f32 -0.28449672, %v1548_v33  ;;  %1954 = vmatpush.bf16.msrb.mxu0 %v6397_v62  ;;  %vm1442_vm15 = vweird.f32 %v7874_v0  ;;  %v6395_v33 = vld [vmem:[%s10121_s9 + $0x40] sm:$0xff]  ;;  %v6414_v42 = vld [vmem:[%s10121_s9 + $0xd8] sm:$0xff]  ;;  %v5362_v36 = vld [vmem:[%s10119_s7 + $0x1f0] sm:$0xf0] }
 0x8cb   :  { %v1624_v32 = vsub.f32 1.0, %v1616_v34  ;;  %v1559_v28 = vmul.f32 %v5077_v18, %v7784_v50  ;;  %v1541_v54 = vadd.f32 1.4214138, %v1533_v49  ;;  %6692 = vrcp.f32 %v7903_v19  ;;  %v6691_v34 = vpop.eup %6690  ;;  %1969 = vmatpush.bf16.msra.mxu1 %v6404_v6  ;;  %vm7944_vm2 = vmor %vm1441_vm14, %vm1442_vm15 }
 0x8cc   :  { %v1625_v10 = vsub.f32 1.0, %v1617_v25  ;;  %v1438_v48 = vsub.f32 1.0, %v1437_v13  ;;  %v1564_v63 = vmul.f32 %v5082_v43, %v7812_v26  ;;  %v7926_v23 = vmul.f32 1.442695, %v1594_v55  ;;  %1940 = vmatpush.bf16.msrb.mxu3 %v6389_v17 }
 0x8cd   :  { %v1640_v46 = vsub.f32 0.0, %v1624_v32  ;;  %1979 = vmatpush.bf16.msrb.mxu2 %v6416_v4  ;;  %v7930_v7 = vadd.f32 %v1348_v59, %v1130_v21  ;;  %v1567_v31 = vadd.f32 0.2548296, %v1559_v28  ;;  %vm1636_vm1 = vcmp.lt.f32.partialorder %v7667_v16, 0.0  ;;  %v5368_v59 = vld [vmem:[%s10119_s7 + $0x1e8] sm:$0xf] }
 0x8ce   :  { %v1641_v41 = vsub.f32 0.0, %v1625_v10  ;;  %v1439_v22 = vmul.f32 %v7874_v0, %v1438_v48  ;;  %v1572_v25 = vadd.f32 0.2548296, %v1564_v63  ;;  %1955 = vmatpush.bf16.msrb.mxu0 %v6396_v58  ;;  %v1549_v14 = vmul.f32 %v1541_v54, %v7867_v45  ;;  %v6388_v63 = vld [vmem:[%s10121_s9 + $0x8] sm:$0xff]  ;;  %v6450_v54 = vld [vmem:[%s10119_s7 + $0x1f4] sm:$0xf0] }
 0x8cf   :  { %v1648_v61 = vsel %vm1632_vm12, %v1640_v46, %v1624_v32  ;;  %6694 = vpow2.f32 %v1611_v24  ;;  %v1448_v40 = vor.u32 1.1754944e-38, %v1447_v39  ;;  %v1587_v4 = vsub.f32 0.0, %v7877_v29  ;;  %1970 = vmatpush.bf16.msra.mxu1 %v6403_v51  ;;  %v6447_v46 = vld [vmem:[%s10119_s7 + $0x1e4] sm:$0xf] }
 0x8d0   :  { %v1649_v18 = vsel %vm1633_vm13, %v1641_v41, %v1625_v10  ;;  %v1440_v32 = vadd.f32 %v7874_v0, %v1439_v22  ;;  %v1580_v21 = vmul.f32 %v1572_v25, %v7812_v26  ;;  %v1460_v10 = vand.u32 2147483647, %v7903_v19  ;;  %1941 = vmatpush.bf16.msrb.mxu3 %v6388_v63  ;;  %v5330_v63 = vld [vmem:[%s10119_s7 + $0x1b0] sm:$0xf0] }
 0x8d1   :  { %1980 = vmatpush.bf16.msrb.mxu2 %v6415_v35  ;;  %v1656_v62 = vadd.f32 1.0, %v1648_v61  ;;  %v5083_v60 = vadd.f32 -0.28449672, %v1549_v14  ;;  %v7963_v24 = vadd.f32 1.0, %v1649_v18  ;;  %v1462_v3 = vand.u32 2147483648, %v7903_v19  ;;  %v7973_v43 = vpop.eup %6692 }
 0x8d2   :  { %v1444_v26 = vsel %vm7944_vm2, %v7874_v0, %v1440_v32  ;;  %v1620_v13 = vmul.f32 %v6691_v34, %v1580_v21  ;;  %1956 = vmatpush.bf16.msrb.mxu0 %v6395_v33  ;;  %6696 = vpow2.f32 %v7865_v52  ;;  %v7979_v55 = vmul.f32 0.70710677, %v7930_v7  ;;  %v5346_v14 = vld [vmem:[%s10119_s7 + $0x1d0] sm:$0xf0]  ;;  %v5352_v32 = vld [vmem:[%s10119_s7 + $0x1c8] sm:$0xf] }
 0x8d3   :  { %v7967_v30 = vsel %vm7919_vm0, %v1448_v40, %v1444_v26  ;;  %v1565_v0 = vmul.f32 %v5083_v60, %v7867_v45  ;;  %v1575_v41 = vmul.f32 %v1567_v31, %v7784_v50  ;;  %v1452_v48 = vmul.f32 %v7973_v43, %v7903_v19  ;;  %v6413_v50 = vld [vmem:[%s10121_s9 + $0xd0] sm:$0xff]  ;;  %v6443_v31 = vld [vmem:[%s10119_s7 + $0x1c4] sm:$0xf]  ;;  %v6446_v40 = vld [vmem:[%s10119_s7 + $0x1d4] sm:$0xf0] }
 0x8d4   :  { %v1514_v49 = vmul.f32 1.0614054, %v7967_v30  ;;  %v1628_v28 = vsub.f32 1.0, %v1620_v13  ;;  %vm7987_vm3 = vcmp.eq.f32.partialorder %v1460_v10, 8.507059e+37  ;;  %v8001_v39 = vmul.f32 %v1656_v62, %v7671_v37  ;;  %v6387_v37 = vld [vmem:[%s10121_s9] sm:$0xff]  ;;  %v6412_v10 = vld [vmem:[%s10121_s9 + $0xc8] sm:$0xff] }
 0x8d5   :  { %1981 = vmatpush.bf16.msrb.mxu2 %v6414_v42  ;;  %v1573_v58 = vadd.f32 0.2548296, %v1565_v0  ;;  %v1595_v35 = vmul.f32 %v1587_v4, %v7877_v29  ;;  %v6695_v22 = vpop.eup %6694  ;;  %vm1637_vm4 = vcmp.lt.f32.partialorder %v7680_v11, 0.0  ;;  %v1453_v34 = vsub.f32 1.0, %v1452_v48  ;;  %1942 = vmatpush.bf16.msrb.mxu3 %v6387_v37  ;;  %v6439_v48 = vld [vmem:[%s10119_s7 + $0x1a4] sm:$0xf] }
 0x8d6   :  { %v5072_v6 = vadd.f32 -1.4531521, %v1514_v49  ;;  %v1644_v12 = vsub.f32 0.0, %v1628_v28  ;;  %v1463_v61 = vor.u32 1.1754944e-38, %v1462_v3  ;;  %v8009_v25 = vand.u32 2147483647, %v7979_v55 }
 0x8d7   :  { %v1581_v29 = vmul.f32 %v1573_v58, %v7867_v45  ;;  %vm1456_vm5 = vweird.f32 %v7903_v19  ;;  %v5365_v18 = vor.u32 %v6447_v46, %v5362_v36  ;;  %v1454_v9 = vmul.f32 %v7973_v43, %v1453_v34  ;;  %v5360_v3 = vld [vmem:[%s10119_s7 + $0x1e0] sm:$0xf]  ;;  %v6445_v52 = vld [vmem:[%s10119_s7 + $0x1cc] sm:$0xf0]  ;;  %v6435_v37 = vld [vmem:[%s10119_s7 + $0x184] sm:$0xf] }
 0x8d8   :  { %v1530_v17 = vmul.f32 %v5072_v6, %v7967_v30  ;;  %v1652_v45 = vsel %vm1636_vm1, %v1644_v12, %v1628_v28  ;;  %vm1457_vm7 = vweird.f32 %v7973_v43  ;;  %v1382_v21 = vmul.f32 0.3275911, %v8009_v25  ;;  %v6697_v33 = vpop.eup %6696  ;;  %v6449_v28 = vld [vmem:[%s10119_s7 + $0x1ec] sm:$0xf0] }
 0x8d9   :  { %1982 = vmatpush.bf16.msrb.mxu2 %v6413_v50  ;;  %v1660_v51 = vadd.f32 1.0, %v1652_v45  ;;  %v1621_v42 = vmul.f32 %v6695_v22, %v1581_v29  ;;  %2223 = vmatpush.bf16.msra.mxu0 %v5365_v18  ;;  %v5369_v16 = vor.u32 %v6450_v54, %v5368_v59  ;;  %v1455_v60 = vadd.f32 %v7973_v43, %v1454_v9  ;;  %vm1458_vm8 = vmor %vm1456_vm5, %vm1457_vm7  ;;  %v5336_v50 = vld [vmem:[%s10119_s7 + $0x1a8] sm:$0xf]  ;;  %v6411_v54 = vld [vmem:[%s10121_s9 + $0xc0] sm:$0xff] }
 0x8da   :  { %v1538_v62 = vadd.f32 1.4214138, %v1530_v17  ;;  %v8038_v26 = vmul.f32 1.442695, %v1595_v35  ;;  %v8040_v4 = vadd.f32 1.0, %v1382_v21  ;;  %v5349_v13 = vor.u32 %v6443_v31, %v5346_v14 }
 0x8db   :  { %v1668_v46 = vmul.f32 %v1660_v51, %v7700_v1  ;;  %v1629_v0 = vsub.f32 1.0, %v1621_v42  ;;  %2237 = vmatpush.bf16.msrb.mxu1 %v5369_v16  ;;  %v5353_v36 = vor.u32 %v6446_v40, %v5352_v32  ;;  %v8057_v1 = vmul.f32 %v6697_v33, %v1575_v41  ;;  %v5344_v35 = vld [vmem:[%s10119_s7 + $0x1c0] sm:$0xf]  ;;  %v5314_v29 = vld [vmem:[%s10119_s7 + $0x190] sm:$0xf0] }
 0x8dc   :  { %v1546_v49 = vmul.f32 %v1538_v62, %v7967_v30  ;;  %v1459_v59 = vsel %vm1458_vm8, %v7973_v43, %v1455_v60  ;;  %6698 = vrcp.f32 %v8040_v4  ;;  %v1505_v19 = vand.u32 2147483647, %v8040_v4  ;;  %v6442_v43 = vld [vmem:[%s10119_s7 + $0x1b4] sm:$0xf0]  ;;  %v5320_v17 = vld [vmem:[%s10119_s7 + $0x188] sm:$0xf] }
 0x8dd   :  { %1983 = vmatpush.bf16.msrb.mxu2 %v6412_v10  ;;  %v1672_v58 = vpack.c.bf16 %v1668_v46, %v8001_v39  ;;  %v1645_v6 = vsub.f32 0.0, %v1629_v0  ;;  %v8071_v41 = vsel %vm7987_vm3, %v1463_v61, %v1459_v59  ;;  %2224 = vmatpush.bf16.msra.mxu0 %v5349_v13  ;;  %v5361_v34 = vor.u32 %v6449_v28, %v5360_v3  ;;  %v6438_v14 = vld [vmem:[%s10119_s7 + $0x194] sm:$0xf0]  ;;  %v6448_v40 = vld [vmem:[%s10119_s7 + $0x1ec] sm:$0xf] }
 0x8de   :  { %v5080_v22 = vadd.f32 -0.28449672, %v1546_v49  ;;  %v1515_v39 = vmul.f32 1.0614054, %v8071_v41  ;;  %v5333_v61 = vor.u32 %v6439_v48, %v5330_v63  ;;  %v1623_v18 = vsub.f32 1.0, %v8057_v1 }
 0x8df   :  { %v1653_v12 = vsel %vm1637_vm4, %v1645_v6, %v1629_v0  ;;  %2238 = vmatpush.bf16.msrb.mxu1 %v5353_v36  ;;  %1957 = vmatmul.bf16.vlgmr.msrb.gmra.mxu0 %v1672_v58  ;;  %v1507_v32 = vand.u32 2147483648, %v8040_v4  ;;  %v5337_v45 = vor.u32 %v6442_v43, %v5336_v50  ;;  %v5345_v9 = vor.u32 %v6445_v52, %v5344_v35  ;;  %v5370_v10 = vld [vmem:[%s10119_s7 + $0x1f8] sm:$0xf0]  ;;  %v5328_v60 = vld [vmem:[%s10119_s7 + $0x1a0] sm:$0xf] }
 0x8e0   :  { %v1661_v31 = vadd.f32 1.0, %v1653_v12  ;;  %v5073_v11 = vadd.f32 -1.4531521, %v1515_v39  ;;  %2209 = vmatpush.bf16.msra.mxu3 %v5361_v34  ;;  %v5317_v21 = vor.u32 %v6435_v37, %v5314_v29  ;;  %v1665_v51 = vmul.f32 %v7963_v24, %v7673_v27  ;;  %v6441_v13 = vld [vmem:[%s10119_s7 + $0x1ac] sm:$0xf0] }
 0x8e1   :  { %1984 = vmatpush.bf16.msrb.mxu2 %v6411_v54  ;;  %2225 = vmatpush.bf16.msra.mxu0 %v5333_v61  ;;  %v5373_v16 = vor.u32 %v6448_v40, %v5370_v10  ;;  %v6431_v3 = vld [vmem:[%s10119_s7 + $0x164] sm:$0xf]  ;;  %v5298_v24 = vld [vmem:[%s10119_s7 + $0x170] sm:$0xf0]  ;;  %v5304_v46 = vld [vmem:[%s10119_s7 + $0x168] sm:$0xf]  ;;  %v5329_v63 = vor.u32 %v6441_v13, %v5328_v60  ;;  %v1562_v34 = vmul.f32 %v5080_v22, %v7967_v30  ;;  %6700 = vpow2.f32 %v8038_v26 }
 0x8e2   :  { %v8108_v33 = vpop.eup %6698  ;;  %v1669_v42 = vmul.f32 %v1661_v31, %v7705_v44  ;;  %v1531_v62 = vmul.f32 %v5073_v11, %v8071_v41  ;;  %v5321_v44 = vor.u32 %v6438_v14, %v5320_v17  ;;  %v6434_v0 = vld [vmem:[%s10119_s7 + $0x174] sm:$0xf0]  ;;  %v6444_v28 = vld [vmem:[%s10119_s7 + $0x1cc] sm:$0xf]  ;;  %v5354_v48 = vld [vmem:[%s10119_s7 + $0x1d8] sm:$0xf0]  ;;  %v5301_v50 = vor.u32 %v6431_v3, %v5298_v24 }
 0x8e3   :  { %v1497_v27 = vmul.f32 %v8108_v33, %v8040_v4  ;;  %2239 = vmatpush.bf16.msrb.mxu1 %v5337_v45  ;;  %v5357_v58 = vor.u32 %v6444_v28, %v5354_v48  ;;  %v5312_v6 = vld [vmem:[%s10119_s7 + $0x180] sm:$0xf]  ;;  %v6437_v43 = vld [vmem:[%s10119_s7 + $0x18c] sm:$0xf0]  ;;  %v8148_v35 = vsub.f32 0.0, %v1623_v18  ;;  %vm1502_vm9 = vweird.f32 %v8108_v33 }
 0x8e4   :  { %v1673_v49 = vpack.c.bf16 %v1669_v42, %v1665_v51  ;;  %v1539_v36 = vadd.f32 1.4214138, %v1531_v62  ;;  %2210 = vmatpush.bf16.msra.mxu3 %v5345_v9  ;;  %v1590_v39 = vsub.f32 0.0, %v8009_v25  ;;  %v6427_v52 = vld [vmem:[%s10119_s7 + $0x144] sm:$0xf]  ;;  %vm8163_vm10 = vcmp.eq.f32.partialorder %v1505_v19, 8.507059e+37 }
 0x8e5   :  { %2251 = vmatpush.bf16.msra.mxu2 %v5373_v16  ;;  %v1498_v59 = vsub.f32 1.0, %v1497_v27  ;;  %2226 = vmatpush.bf16.msra.mxu0 %v5317_v21  ;;  %v5282_v12 = vld [vmem:[%s10119_s7 + $0x150] sm:$0xf0]  ;;  %v5305_v29 = vor.u32 %v6434_v0, %v5304_v46  ;;  %v5288_v17 = vld [vmem:[%s10119_s7 + $0x148] sm:$0xf]  ;;  %vm1501_vm11 = vweird.f32 %v8040_v4  ;;  %v5313_v19 = vor.u32 %v6437_v43, %v5312_v6 }
 0x8e6   :  { %v1547_v54 = vmul.f32 %v1539_v36, %v8071_v41  ;;  %1971 = vmatmul.bf16.vlgmr.msra.gmra.mxu1 %v1673_v49  ;;  %v6440_v31 = vld [vmem:[%s10119_s7 + $0x1ac] sm:$0xf]  ;;  %v6430_v22 = vld [vmem:[%s10119_s7 + $0x154] sm:$0xf0]  ;;  %v5338_v14 = vld [vmem:[%s10119_s7 + $0x1b8] sm:$0xf0]  ;;  %v5285_v4 = vor.u32 %v6427_v52, %v5282_v12  ;;  %6702 = vpow2.f32 %v7926_v23  ;;  %v1598_v12 = vmul.f32 %v1590_v39, %v8009_v25 }
 0x8e7   :  { %v1499_v61 = vmul.f32 %v8108_v33, %v1498_v59  ;;  %2240 = vmatpush.bf16.msrb.mxu1 %v5321_v44  ;;  %vm8184_vm12 = vmor %vm1501_vm11, %vm1502_vm9  ;;  %v1508_v26 = vor.u32 1.1754944e-38, %v1507_v32  ;;  %v5341_v21 = vor.u32 %v6440_v31, %v5338_v14  ;;  %v5296_v40 = vld [vmem:[%s10119_s7 + $0x160] sm:$0xf]  ;;  %v6433_v51 = vld [vmem:[%s10119_s7 + $0x16c] sm:$0xf0]  ;;  %v5289_v60 = vor.u32 %v6430_v22, %v5288_v17  ;;  %v6701_v59 = vpop.eup %6700 }
 0x8e8   :  { %v5081_v11 = vadd.f32 -0.28449672, %v1547_v54  ;;  %2211 = vmatpush.bf16.msra.mxu3 %v5329_v63  ;;  %v6423_v42 = vld [vmem:[%s10119_s7 + $0x124] sm:$0xf]  ;;  %v5266_v32 = vld [vmem:[%s10119_s7 + $0x130] sm:$0xf0]  ;;  %v5297_v49 = vor.u32 %v6433_v51, %v5296_v40 }
 0x8e9   :  { %2252 = vmatpush.bf16.msra.mxu2 %v5357_v58  ;;  %v1500_v45 = vadd.f32 %v8108_v33, %v1499_v61  ;;  %2227 = vmatpush.bf16.msra.mxu0 %v5301_v50  ;;  %v1570_v62 = vadd.f32 0.2548296, %v1562_v34  ;;  %v6436_v13 = vld [vmem:[%s10119_s7 + $0x18c] sm:$0xf]  ;;  %v5322_v3 = vld [vmem:[%s10119_s7 + $0x198] sm:$0xf0]  ;;  %v5269_v36 = vor.u32 %v6423_v42, %v5266_v32 }
 0x8ea   :  { %v1563_v10 = vmul.f32 %v5081_v11, %v8071_v41  ;;  %v6426_v24 = vld [vmem:[%s10119_s7 + $0x134] sm:$0xf0]  ;;  %v5325_v46 = vor.u32 %v6436_v13, %v5322_v3  ;;  %v5280_v28 = vld [vmem:[%s10119_s7 + $0x140] sm:$0xf]  ;;  %v6429_v48 = vld [vmem:[%s10119_s7 + $0x14c] sm:$0xf0] }
 0x8eb   :  { %v1504_v16 = vsel %vm8184_vm12, %v8108_v33, %v1500_v45  ;;  %2241 = vmatpush.bf16.msrb.mxu1 %v5305_v29  ;;  %v5272_v33 = vld [vmem:[%s10119_s7 + $0x128] sm:$0xf]  ;;  %v6419_v50 = vld [vmem:[%s10119_s7 + $0x104] sm:$0xf]  ;;  %v5250_v58 = vld [vmem:[%s10119_s7 + $0x110] sm:$0xf0] }
 0x8ec   :  { %v1571_v27 = vadd.f32 0.2548296, %v1563_v10  ;;  %v8212_v44 = vsel %vm8163_vm10, %v1508_v26, %v1504_v16  ;;  %2212 = vmatpush.bf16.msra.mxu3 %v5313_v19  ;;  %v6432_v6 = vld [vmem:[%s10119_s7 + $0x16c] sm:$0xf]  ;;  %v5273_v54 = vor.u32 %v6426_v24, %v5272_v33  ;;  %v5306_v23 = vld [vmem:[%s10119_s7 + $0x178] sm:$0xf0]  ;;  %v5253_v17 = vor.u32 %v6419_v50, %v5250_v58  ;;  %v6703_v45 = vpop.eup %6702 }
 0x8ed   :  { %2253 = vmatpush.bf16.msra.mxu2 %v5341_v21  ;;  %v1518_v0 = vmul.f32 1.0614054, %v8212_v44  ;;  %2228 = vmatpush.bf16.msra.mxu0 %v5285_v4  ;;  %v5256_v34 = vld [vmem:[%s10119_s7 + $0x108] sm:$0xf]  ;;  %v6422_v61 = vld [vmem:[%s10119_s7 + $0x114] sm:$0xf0]  ;;  %v5309_v37 = vor.u32 %v6432_v6, %v5306_v23 }
 0x8ee   :  { %v1579_v63 = vmul.f32 %v1571_v27, %v8071_v41  ;;  %v1578_v41 = vmul.f32 %v1570_v62, %v7967_v30  ;;  %vm1631_vm13 = vcmp.lt.f32.partialorder %v7658_v15, 0.0  ;;  %v5281_v30 = vor.u32 %v6429_v48, %v5280_v28  ;;  %v6428_v25 = vld [vmem:[%s10119_s7 + $0x14c] sm:$0xf]  ;;  %v5290_v39 = vld [vmem:[%s10119_s7 + $0x158] sm:$0xf0] }
 0x8ef   :  { %v5076_v43 = vadd.f32 -1.4531521, %v1518_v0  ;;  %2242 = vmatpush.bf16.msrb.mxu1 %v5289_v60  ;;  %v1647_v31 = vsel %vm1631_vm13, %v8148_v35, %v1623_v18  ;;  %v5264_v15 = vld [vmem:[%s10119_s7 + $0x120] sm:$0xf]  ;;  %v6425_v19 = vld [vmem:[%s10119_s7 + $0x12c] sm:$0xf0]  ;;  %v5257_v14 = vor.u32 %v6422_v61, %v5256_v34  ;;  %v5293_v1 = vor.u32 %v6428_v25, %v5290_v39 }
 0x8f0   :  { %v1619_v52 = vmul.f32 %v6701_v59, %v1579_v63  ;;  %2213 = vmatpush.bf16.msra.mxu3 %v5297_v49  ;;  %vm1635_vm14 = vcmp.lt.f32.partialorder %v7842_v56, 0.0  ;;  %v1613_v26 = vmul.f32 1.442695, %v1598_v12  ;;  %v1655_v18 = vadd.f32 1.0, %v1647_v31  ;;  %v6424_v40 = vld [vmem:[%s10119_s7 + $0x12c] sm:$0xf] }
 0x8f1   :  { %2254 = vmatpush.bf16.msra.mxu2 %v5325_v46  ;;  %v1534_v29 = vmul.f32 %v5076_v43, %v8212_v44  ;;  %2229 = vmatpush.bf16.msra.mxu0 %v5269_v36  ;;  %v1618_v35 = vmul.f32 %v6703_v45, %v1578_v41  ;;  %v5265_v21 = vor.u32 %v6425_v19, %v5264_v15  ;;  %v5274_v10 = vld [vmem:[%s10119_s7 + $0x138] sm:$0xf0]  ;;  %v1351_v56 = vmul.f32 0.5, %v7651_v53  ;;  %v5248_v42 = vld [vmem:[%s10119_s7 + $0x100] sm:$0xf] }
 0x8f2   :  { %v1627_v11 = vsub.f32 1.0, %v1619_v52  ;;  %v1355_v32 = vmul.f32 0.5, %v7723_v5  ;;  %v6421_v60 = vld [vmem:[%s10119_s7 + $0x10c] sm:$0xf0]  ;;  %6704 = vpow2.f32 %v1613_v26  ;;  %v5277_v13 = vor.u32 %v6424_v40, %v5274_v10  ;;  %v6420_v5 = vld [vmem:[%s10119_s7 + $0x10c] sm:$0xf] }
 0x8f3   :  { %v1542_v22 = vadd.f32 1.4214138, %v1534_v29  ;;  %2243 = vmatpush.bf16.msrb.mxu1 %v5273_v54  ;;  %v1663_v53 = vmul.f32 %v1655_v18, %v1351_v56  ;;  %v1626_v3 = vsub.f32 1.0, %v1618_v35  ;;  %v5258_v24 = vld [vmem:[%s10119_s7 + $0x118] sm:$0xf0]  ;;  %v5249_v46 = vor.u32 %v6421_v60, %v5248_v42 }
 0x8f4   :  { %v1643_v9 = vsub.f32 0.0, %v1627_v11  ;;  %2214 = vmatpush.bf16.msra.mxu3 %v5281_v30  ;;  %v5261_v36 = vor.u32 %v6420_v5, %v5258_v24  ;;  %vm1634_vm15 = vcmp.lt.f32.partialorder %v7759_v8, 0.0  ;;  %vm1638_vm0 = vcmp.lt.f32.partialorder %v7979_v55, 0.0  ;;  %v8317_v15 = vld [vmem:[%s10120_s8 + $0x4] sm:$0xf] }
 0x8f5   :  { %2255 = vmatpush.bf16.msra.mxu2 %v5309_v37  ;;  %v1550_v4 = vmul.f32 %v1542_v22, %v8212_v44  ;;  %2230 = vmatpush.bf16.msra.mxu0 %v5253_v17  ;;  %v1642_v28 = vsub.f32 0.0, %v1626_v3  ;;  %v1354_v23 = vmul.f32 0.5, %v7714_v57  ;;  %v1358_v41 = vmul.f32 0.5, %v7930_v7  ;;  %v6634_v40 = vld [vmem:[%s10122_s10] ss:$0 sm:$0xff] }
 0x8f6   :  { %v1651_v51 = vsel %vm1635_vm14, %v1643_v9, %v1627_v11  ;;  %v2042_v19 = vperm.slane %v8317_v15, 1  ;;  %v2043_v22 = vperm.slane %v8317_v15, 2 }
 0x8f7   :  { %v1659_v62 = vadd.f32 1.0, %v1651_v51  ;;  %v5084_v16 = vadd.f32 -0.28449672, %v1550_v4  ;;  %2244 = vmatpush.bf16.msrb.mxu1 %v5257_v14  ;;  %v1650_v50 = vsel %vm1634_vm15, %v1642_v28, %v1626_v3 }
 0x8f8   :  { %2231 = vmatmul.bf16.vlgmr.msra.gmra.mxu0 %v7626_v38  ;;  %2215 = vmatpush.bf16.msra.mxu3 %v5265_v21  ;;  %v6705_v59 = vpop.eup %6704  ;;  %v1658_v43 = vadd.f32 1.0, %v1650_v50 }
 0x8f9   :  { %2256 = vmatpush.bf16.msra.mxu2 %v5293_v1  ;;  %v1667_v27 = vmul.f32 %v1659_v62, %v1355_v32  ;;  %v1566_v33 = vmul.f32 %v5084_v16, %v8212_v44 }
 0x8fa   :  { %2245 = vmatmul.bf16.vlgmr.msrb.gmra.mxu1 %v7626_v38 }
 0x8fb   :  { %v1671_v0 = vpack.c.bf16 %v1667_v27, %v1663_v53  ;;  %v1574_v49 = vadd.f32 0.2548296, %v1566_v33 }
 0x8fc   :  { %2216 = vmatpush.bf16.msra.mxu3 %v5249_v46  ;;  %v8343_v46 = vsel %vm945_vm6, %v7661_v2, 0.0 }
 0x8fd   :  { %2257 = vmatpush.bf16.msra.mxu2 %v5277_v13  ;;  %v1582_v48 = vmul.f32 %v1574_v49, %v8212_v44  ;;  %1943 = vmatmul.bf16.vlgmr.msrb.gmra.mxu3 %v1671_v0  ;;  %v1666_v44 = vmul.f32 %v1658_v43, %v1354_v23 }
 0x8ff   :  { %v1622_v63 = vmul.f32 %v6705_v59, %v1582_v48 }
 0x901   :  { %2258 = vmatpush.bf16.msra.mxu2 %v5261_v36  ;;  %v1630_v58 = vsub.f32 1.0, %v1622_v63 }
 0x903   :  { %v1646_v6 = vsub.f32 0.0, %v1630_v58 }
 0x905   :  { %v1654_v54 = vsel %vm1638_vm0, %v1646_v6, %v1630_v58 }
 0x906   :  { %v1662_v52 = vadd.f32 1.0, %v1654_v54 }
 0x908   :  { %v1670_v12 = vmul.f32 %v1662_v52, %v1358_v41 }
 0x90a   :  { %v1674_v34 = vpack.c.bf16 %v1670_v12, %v1666_v44 }
 0x90c   :  { %1985 = vmatmul.bf16.vlgmr.msrb.gmra.mxu2 %v1674_v34 }
 0x90d   :  { %2217 = vmatmul.bf16.vlgmr.msra.gmra.mxu3 %v7626_v38 }
 0x916   :  { %v951_v8 = vpop.xlane.xlu0 %950 }
 0x917   :  { %v953_v61 = vsub.f32 %v7646_v20, %v951_v8  ;;  %v2041_v8 = vperm.slane %v8317_v15, 0 }
 0x919   :  { %v956_v37 = vmul.f32 1.442695, %v953_v61 }
 0x91b   :  { %6706 = vpow2.f32 %v956_v37 }
 0x91c   :  { %2259 = vmatmul.bf16.vlgmr.msra.gmra.mxu2 %v7626_v38 }
 0x91e   :  { %v970_v29 = vpop.xlane.xlu0 %969 }
 0x91f   :  { %vm974_vm1 = vcmp.eq.f32.partialorder %v7661_v2, %v970_v29 }
 0x920   :  { %v976_v57 = vsel %vm974_vm1, %v7198_v47, 4 }
 0x921   :  { %v8301_v7 = vpop.eup %6706  ;;  %v8304_v55 = vsel %vm945_vm6, %v976_v57, 2147483647  ;;  %v6473_v57 = vld [vmem:[%s10121_s9 + $0x1b0] sm:$0xff] }
 0x922   :  { %v961_v30 = vsel %vm945_vm6, %v8301_v7, 0.0  ;;  %v980_v20 = vshra.s32 %v8304_v55, 16  ;;  %v979_v59 = vand.u32 65535, %v8304_v55 }
 0x923   :  { %962 = vadd.xlane.f32.xlu1 %v961_v30 }
 0x924   :  { %v8309_v17 = vcvt.s32.f32 %v980_v20 }
 0x92b   :  { %983 = vmin.xlane.f32.xlu1 %v8309_v17 }
 0x95c   :  { %v1958_v25 = vpop.f32.mrf.mxu0 }
 0x963   :  { %v1972_v39 = vpop.f32.mrf.mxu1 }
 0x964   :  { %v1960_v31 = vpop.f32.mrf.mxu0 }
 0x96b   :  { %v8312_v11 = vpop.f32.mrf.mxu1 }
 0x975   :  { %v2232_v14 = vpop.f32.mrf.mxu0 }
 0x976   :  { %v2233_v45 = vadd.f32 %v2232_v14, %v2042_v19  ;;  %v6466_v14 = vld [vmem:[%s10121_s9 + $0x178] sm:$0xff] }
 0x977   :  { %v2246_v9 = vpop.f32.mrf.mxu1  ;;  %2865 = vmatpush.bf16.msrb.mxu0 %v6466_v14 }
 0x978   :  { %v8321_v26 = vmul.f32 0.70710677, %v2233_v45  ;;  %v2247_v1 = vadd.f32 %v2246_v9, %v2043_v22  ;;  %v8345_v36 = vmul.f32 0.5, %v2233_v45 }
 0x97a   :  { %v2282_v18 = vand.u32 2147483647, %v8321_v26  ;;  %v8324_v35 = vmul.f32 0.70710677, %v2247_v1  ;;  %v8351_v50 = vmul.f32 0.5, %v2247_v1 }
 0x97c   :  { %v2290_v4 = vmul.f32 0.3275911, %v2282_v18  ;;  %v2283_v21 = vand.u32 2147483647, %v8324_v35  ;;  %v2498_v60 = vsub.f32 0.0, %v2282_v18 }
 0x97d   :  { %v2234_v10 = vpop.f32.mrf.mxu0 }
 0x97e   :  { %v2298_v56 = vadd.f32 1.0, %v2290_v4  ;;  %v2291_v51 = vmul.f32 0.3275911, %v2283_v21  ;;  %v8330_v42 = vadd.f32 %v2234_v10, %v2042_v19  ;;  %v2506_v0 = vmul.f32 %v2498_v60, %v2282_v18 }
 0x97f   :  { %v2248_v53 = vpop.f32.mrf.mxu1  ;;  %v2499_v58 = vsub.f32 0.0, %v2283_v21 }
 0x980   :  { %v1944_v32 = vpop.f32.mrf.mxu3  ;;  %6708 = vrcp.f32 %v2298_v56  ;;  %v8332_v16 = vadd.f32 1.0, %v2291_v51  ;;  %v8335_v13 = vmul.f32 0.70710677, %v8330_v42  ;;  %v8339_v5 = vadd.f32 %v2248_v53, %v2043_v22 }
 0x981   :  { %v1945_v62 = vadd.f32 %v6634_v40, %v1944_v32  ;;  %v2329_v63 = vand.u32 2147483647, %v2298_v56  ;;  %v2331_v23 = vand.u32 2147483648, %v2298_v56  ;;  %v2515_v12 = vmul.f32 1.442695, %v2506_v0 }
 0x982   :  { %6710 = vrcp.f32 %v8332_v16  ;;  %v2286_v27 = vand.u32 2147483647, %v8335_v13  ;;  %v8348_v48 = vmul.f32 0.70710677, %v8339_v5  ;;  %vm2325_vm3 = vweird.f32 %v2298_v56 }
 0x983   :  { %v1959_v3 = vadd.f32 %v1958_v25, %v1945_v62  ;;  %vm8361_vm4 = vcmp.eq.f32.partialorder %v2329_v63, 8.507059e+37  ;;  %v2507_v30 = vmul.f32 %v2499_v58, %v2283_v21  ;;  %v2344_v45 = vand.u32 2147483647, %v8332_v16 }
 0x984   :  { %v2294_v49 = vmul.f32 0.3275911, %v2286_v27  ;;  %v8356_v52 = vand.u32 2147483647, %v8348_v48  ;;  %v2502_v34 = vsub.f32 0.0, %v2286_v27  ;;  %v2346_v9 = vand.u32 2147483648, %v8332_v16 }
 0x985   :  { %v1973_v33 = vadd.f32 %v1972_v39, %v1959_v3  ;;  %v2332_v39 = vor.u32 1.1754944e-38, %v2331_v23  ;;  %vm2340_vm8 = vweird.f32 %v8332_v16  ;;  %vm2345_vm10 = vcmp.eq.f32.partialorder %v2344_v45, 8.507059e+37 }
 0x986   :  { %v6709_v24 = vpop.eup %6708  ;;  %v8353_v43 = vadd.f32 1.0, %v2294_v49  ;;  %v2295_v20 = vmul.f32 0.3275911, %v8356_v52  ;;  %v2510_v21 = vmul.f32 %v2502_v34, %v2286_v27  ;;  %v2347_v3 = vor.u32 1.1754944e-38, %v2346_v9 }
 0x987   :  { %v2321_v28 = vmul.f32 %v6709_v24, %v2298_v56  ;;  %vm2326_vm2 = vweird.f32 %v6709_v24  ;;  %v8389_v27 = vmul.f32 1.442695, %v2507_v30 }
 0x988   :  { %v1946_v6 = vpop.f32.mrf.mxu3  ;;  %v6711_v44 = vpop.eup %6710  ;;  %6712 = vrcp.f32 %v8353_v43  ;;  %vm2327_vm5 = vmor %vm2325_vm3, %vm2326_vm2  ;;  %v8375_v1 = vadd.f32 1.0, %v2295_v20  ;;  %v2389_v51 = vand.u32 2147483647, %v8353_v43  ;;  %vm2385_vm13 = vweird.f32 %v8353_v43 }
 0x989   :  { %v2322_v54 = vsub.f32 1.0, %v2321_v28  ;;  %v1947_v41 = vadd.f32 %v6634_v40, %v1946_v6  ;;  %v2336_v37 = vmul.f32 %v6711_v44, %v8332_v16  ;;  %6714 = vpow2.f32 %v2515_v12 }
 0x98a   :  { %vm2341_vm7 = vweird.f32 %v6711_v44  ;;  %6716 = vrcp.f32 %v8375_v1  ;;  %vm8400_vm11 = vcmp.eq.f32.partialorder %v2389_v51, 8.507059e+37  ;;  %v8404_v6 = vmul.f32 1.442695, %v2510_v21 }
 0x98b   :  { %v2323_v61 = vmul.f32 %v6709_v24, %v2322_v54  ;;  %v1961_v29 = vadd.f32 %v1960_v31, %v1947_v41  ;;  %v2337_v19 = vsub.f32 1.0, %v2336_v37  ;;  %v6474_v31 = vld [vmem:[%s10121_s9 + $0x1b8] sm:$0xff]  ;;  %vm2342_vm9 = vmor %vm2340_vm8, %vm2341_vm7  ;;  %v2044_v54 = vperm.slane %v8317_v15, 3  ;;  %v6477_v15 = vld [vmem:[%s10121_s9 + $0x1d0] sm:$0xff] }
 0x98c   :  { %2879 = vmatpush.bf16.msra.mxu1 %v6474_v31  ;;  %v2406_v14 = vand.u32 2147483648, %v8375_v1  ;;  %vm2400_vm0 = vweird.f32 %v8375_v1  ;;  %vm2546_vm3 = vcmp.lt.f32.partialorder %v8321_v26, 0.0  ;;  %vm2550_vm7 = vcmp.lt.f32.partialorder %v8335_v13, 0.0  ;;  %v6468_v26 = vld [vmem:[%s10121_s9 + $0x188] sm:$0xff]  ;;  %v6478_v13 = vld [vmem:[%s10121_s9 + $0x1d8] sm:$0xff] }
 0x98d   :  { %v2324_v25 = vadd.f32 %v6709_v24, %v2323_v61  ;;  %v1975_v22 = vadd.f32 %v8312_v11, %v1961_v29  ;;  %v2338_v4 = vmul.f32 %v6711_v44, %v2337_v19  ;;  %v2503_v61 = vsub.f32 0.0, %v8356_v52  ;;  %v6465_v29 = vld [vmem:[%s10121_s9 + $0x170] sm:$0xff] }
 0x98e   :  { %v6713_v40 = vpop.eup %6712  ;;  %v2404_v19 = vand.u32 2147483647, %v8375_v1  ;;  %2866 = vmatpush.bf16.msrb.mxu0 %v6465_v29 }
 0x98f   :  { %v2328_v18 = vsel %vm2327_vm5, %v6709_v24, %v2324_v25  ;;  %v1986_v11 = vpop.f32.mrf.mxu2  ;;  %v2339_v60 = vadd.f32 %v6711_v44, %v2338_v4  ;;  %v2381_v53 = vmul.f32 %v6713_v40, %v8353_v43  ;;  %v8396_v63 = vpop.eup %6714  ;;  %vm2386_vm12 = vweird.f32 %v6713_v40 }
 0x990   :  { %v8379_v10 = vsel %vm8361_vm4, %v2332_v39, %v2328_v18  ;;  %v8381_v56 = vadd.f32 %v1986_v11, %v1973_v33  ;;  %v2218_v32 = vpop.f32.mrf.mxu3  ;;  %v2391_v33 = vand.u32 2147483648, %v8353_v43  ;;  %vm2387_vm14 = vmor %vm2385_vm13, %vm2386_vm12  ;;  %2880 = vmatpush.bf16.msra.mxu1 %v6473_v57  ;;  %vm8447_vm1 = vcmp.eq.f32.partialorder %v2404_v19, 8.507059e+37 }
 0x991   :  { %v2426_v62 = vmul.f32 1.0614054, %v8379_v10  ;;  %v8394_v24 = vadd.f32 %v2218_v32, %v2041_v8  ;;  %v2343_v49 = vsel %vm2342_vm9, %v6711_v44, %v2339_v60  ;;  %v2382_v28 = vsub.f32 1.0, %v2381_v53  ;;  %v6717_v44 = vpop.eup %6716 }
 0x992   :  { %v8398_v16 = vsel %vm2345_vm10, %v2347_v3, %v2343_v49  ;;  %v2392_v34 = vor.u32 1.1754944e-38, %v2391_v33  ;;  %v2396_v39 = vmul.f32 %v6717_v44, %v8375_v1  ;;  %vm2401_vm15 = vweird.f32 %v6717_v44 }
 0x993   :  { %v5375_v0 = vadd.f32 -1.4531521, %v2426_v62  ;;  %v2427_v41 = vmul.f32 1.0614054, %v8398_v16  ;;  %v2383_v12 = vmul.f32 %v6713_v40, %v2382_v28  ;;  %v8412_v37 = vmul.f32 0.70710677, %v8394_v24  ;;  %vm2402_vm2 = vmor %vm2400_vm0, %vm2401_vm15 }
 0x994   :  { %v2397_v21 = vsub.f32 1.0, %v2396_v39  ;;  %v6464_v62 = vld [vmem:[%s10121_s9 + $0x168] sm:$0xff]  ;;  %v8473_v39 = vmul.f32 0.5, %v8330_v42  ;;  %vm2547_vm4 = vcmp.lt.f32.partialorder %v8324_v35, 0.0 }
 0x995   :  { %v2442_v23 = vmul.f32 %v5375_v0, %v8379_v10  ;;  %v5376_v20 = vadd.f32 -1.4531521, %v2427_v41  ;;  %v2384_v25 = vadd.f32 %v6713_v40, %v2383_v12  ;;  %v8426_v45 = vand.u32 2147483647, %v8412_v37  ;;  %2867 = vmatpush.bf16.msrb.mxu0 %v6464_v62 }
 0x996   :  { %v2398_v33 = vmul.f32 %v6717_v44, %v2397_v21  ;;  %v2407_v12 = vor.u32 1.1754944e-38, %v2406_v14 }
 0x997   :  { %v2450_v30 = vadd.f32 1.4214138, %v2442_v23  ;;  %v1988_v43 = vpop.f32.mrf.mxu2  ;;  %v2443_v4 = vmul.f32 %v5376_v20, %v8398_v16  ;;  %v2388_v11 = vsel %vm2387_vm14, %v6713_v40, %v2384_v25  ;;  %v6472_v40 = vld [vmem:[%s10121_s9 + $0x1a8] sm:$0xff]  ;;  %v2497_v42 = vsub.f32 0.0, %v8426_v45 }
 0x998   :  { %v8423_v31 = vadd.f32 %v1988_v43, %v1975_v22  ;;  %v2220_v9 = vpop.f32.mrf.mxu3  ;;  %v8432_v51 = vsel %vm8400_vm11, %v2392_v34, %v2388_v11  ;;  %v2289_v22 = vmul.f32 0.3275911, %v8426_v45  ;;  %2881 = vmatpush.bf16.msra.mxu1 %v6472_v40  ;;  %v2399_v41 = vadd.f32 %v6717_v44, %v2398_v33  ;;  %v6463_v34 = vld [vmem:[%s10121_s9 + $0x160] sm:$0xff]  ;;  %v6462_v11 = vld [vmem:[%s10121_s9 + $0x158] sm:$0xff] }
 0x999   :  { %v2458_v18 = vmul.f32 %v2450_v30, %v8379_v10  ;;  %v8437_v32 = vadd.f32 %v2220_v9, %v2041_v8  ;;  %v2451_v53 = vadd.f32 1.4214138, %v2443_v4  ;;  %v2430_v3 = vmul.f32 1.0614054, %v8432_v51  ;;  %2868 = vmatpush.bf16.msrb.mxu0 %v6463_v34  ;;  %v6469_v34 = vld [vmem:[%s10121_s9 + $0x190] sm:$0xff] }
 0x99a   :  { %v2511_v8 = vmul.f32 %v2503_v61, %v8356_v52  ;;  %v8452_v49 = vadd.f32 1.0, %v2289_v22  ;;  %v6458_v52 = vld [vmem:[%s10121_s9 + $0x138] sm:$0xff]  ;;  %v6471_v61 = vld [vmem:[%s10121_s9 + $0x1a0] sm:$0xff]  ;;  %v2403_v20 = vsel %vm2402_vm2, %v6717_v44, %v2399_v41  ;;  %v2505_v41 = vmul.f32 %v2497_v42, %v8426_v45 }
 0x99b   :  { %v5383_v60 = vadd.f32 -0.28449672, %v2458_v18  ;;  %v2459_v58 = vmul.f32 %v2451_v53, %v8398_v16  ;;  %v5379_v23 = vadd.f32 -1.4531521, %v2430_v3  ;;  %v8459_v1 = vmul.f32 0.70710677, %v8437_v32  ;;  %2851 = vmatpush.bf16.msrb.mxu3 %v6458_v52 }
 0x99c   :  { %6718 = vrcp.f32 %v8452_v49  ;;  %v8477_v43 = vsel %vm8447_vm1, %v2407_v12, %v2403_v20  ;;  %v2525_v19 = vmul.f32 1.442695, %v2511_v8  ;;  %2882 = vmatpush.bf16.msra.mxu1 %v6471_v61  ;;  %v8506_v53 = vmul.f32 0.5, %v8339_v5  ;;  %v6482_v5 = vld [vmem:[%s10121_s9 + $0x1f8] sm:$0xff]  ;;  %v6456_v12 = vld [vmem:[%s10121_s9 + $0x128] sm:$0xff]  ;;  %v6461_v52 = vld [vmem:[%s10121_s9 + $0x150] sm:$0xff] }
 0x99d   :  { %v2474_v28 = vmul.f32 %v5383_v60, %v8379_v10  ;;  %v5384_v57 = vadd.f32 -0.28449672, %v2459_v58  ;;  %v2446_v30 = vmul.f32 %v5379_v23, %v8432_v51  ;;  %6720 = vpow2.f32 %v8389_v27  ;;  %2869 = vmatpush.bf16.msrb.mxu0 %v6462_v11  ;;  %2893 = vmatpush.bf16.msrb.mxu2 %v6482_v5 }
 0x99e   :  { %v2431_v18 = vmul.f32 1.0614054, %v8477_v43  ;;  %6722 = vpow2.f32 %v8404_v6  ;;  %v8490_v4 = vand.u32 2147483647, %v8459_v1  ;;  %v6470_v6 = vld [vmem:[%s10121_s9 + $0x198] sm:$0xff]  ;;  %vm2310_vm5 = vweird.f32 %v8452_v49 }
 0x99f   :  { %v2482_v29 = vadd.f32 0.2548296, %v2474_v28  ;;  %v2260_v25 = vpop.f32.mrf.mxu2  ;;  %v2475_v9 = vmul.f32 %v5384_v57, %v8398_v16  ;;  %v2454_v44 = vadd.f32 1.4214138, %v2446_v30  ;;  %6724 = vpow2.f32 %v2525_v19 }
 0x9a0   :  { %v8487_v27 = vadd.f32 %v2260_v25, %v2044_v54  ;;  %v5380_v40 = vadd.f32 -1.4531521, %v2431_v18  ;;  %v2293_v33 = vmul.f32 0.3275911, %v8490_v4  ;;  %2883 = vmatpush.bf16.msra.mxu1 %v6470_v6  ;;  %v2316_v25 = vand.u32 2147483648, %v8452_v49 }
 0x9a1   :  { %v2490_v14 = vmul.f32 %v2482_v29, %v8379_v10  ;;  %v6457_v10 = vld [vmem:[%s10121_s9 + $0x130] sm:$0xff]  ;;  %v2483_v22 = vadd.f32 0.2548296, %v2475_v9  ;;  %v2462_v62 = vmul.f32 %v2454_v44, %v8432_v51  ;;  %2870 = vmatpush.bf16.msrb.mxu0 %v6461_v52  ;;  %v2513_v5 = vmul.f32 1.442695, %v2505_v41 }
 0x9a2   :  { %v8503_v60 = vpop.eup %6718  ;;  %v8509_v3 = vmul.f32 0.70710677, %v8487_v27  ;;  %2852 = vmatpush.bf16.msrb.mxu3 %v6457_v10  ;;  %v2447_v28 = vmul.f32 %v5380_v40, %v8477_v43  ;;  %v6481_v9 = vld [vmem:[%s10121_s9 + $0x1f0] sm:$0xff]  ;;  %v2314_v10 = vand.u32 2147483647, %v8452_v49  ;;  %v6460_v40 = vld [vmem:[%s10121_s9 + $0x148] sm:$0xff] }
 0x9a3   :  { %v2530_v21 = vmul.f32 %v8396_v63, %v2490_v14  ;;  %v2491_v63 = vmul.f32 %v2483_v22, %v8398_v16  ;;  %v5387_v8 = vadd.f32 -0.28449672, %v2462_v62  ;;  %v6721_v58 = vpop.eup %6720  ;;  %v2306_v23 = vmul.f32 %v8503_v60, %v8452_v49  ;;  %v6455_v62 = vld [vmem:[%s10121_s9 + $0x120] sm:$0xff]  ;;  %2894 = vmatpush.bf16.msrb.mxu2 %v6481_v9 }
 0x9a4   :  { %v8523_v16 = vand.u32 2147483647, %v8509_v3  ;;  %v2455_v45 = vadd.f32 1.4214138, %v2447_v28  ;;  %v6723_v30 = vpop.eup %6722  ;;  %v8537_v14 = vadd.f32 1.0, %v2293_v33  ;;  %2884 = vmatpush.bf16.msra.mxu1 %v6469_v34  ;;  %vm2311_vm8 = vweird.f32 %v8503_v60  ;;  %v6459_v49 = vld [vmem:[%s10121_s9 + $0x140] sm:$0xff] }
 0x9a5   :  { %v2538_v0 = vsub.f32 1.0, %v2530_v21  ;;  %v2531_v29 = vmul.f32 %v6721_v58, %v2491_v63  ;;  %v2478_v57 = vmul.f32 %v5387_v8, %v8432_v51  ;;  %v2307_v20 = vsub.f32 1.0, %v2306_v23  ;;  %v6725_v11 = vpop.eup %6724  ;;  %2871 = vmatpush.bf16.msrb.mxu0 %v6460_v40  ;;  %v6480_v58 = vld [vmem:[%s10121_s9 + $0x1e8] sm:$0xff]  ;;  %vm2312_vm9 = vmor %vm2310_vm5, %vm2311_vm8 }
 0x9a6   :  { %v2292_v19 = vmul.f32 0.3275911, %v8523_v16  ;;  %2853 = vmatpush.bf16.msrb.mxu3 %v6456_v12  ;;  %v2463_v42 = vmul.f32 %v2455_v45, %v8477_v43  ;;  %6726 = vrcp.f32 %v8537_v14  ;;  %v2317_v28 = vor.u32 1.1754944e-38, %v2316_v25 }
 0x9a7   :  { %v2554_v61 = vsub.f32 0.0, %v2538_v0  ;;  %v2539_v44 = vsub.f32 1.0, %v2531_v29  ;;  %v2486_v18 = vadd.f32 0.2548296, %v2478_v57  ;;  %v2308_v21 = vmul.f32 %v8503_v60, %v2307_v20  ;;  %v6454_v29 = vld [vmem:[%s10121_s9 + $0x118] sm:$0xff]  ;;  %2895 = vmatpush.bf16.msrb.mxu2 %v6480_v58 }
 0x9a8   :  { %v8549_v22 = vadd.f32 1.0, %v2292_v19  ;;  %v5388_v63 = vadd.f32 -0.28449672, %v2463_v42  ;;  %v2500_v52 = vsub.f32 0.0, %v8523_v16  ;;  %2885 = vmatpush.bf16.msra.mxu1 %v6468_v26  ;;  %vm2315_vm10 = vcmp.eq.f32.partialorder %v2314_v10, 8.507059e+37  ;;  %v6479_v19 = vld [vmem:[%s10121_s9 + $0x1e0] sm:$0xff] }
 0x9a9   :  { %v2562_v6 = vsel %vm2546_vm3, %v2554_v61, %v2538_v0  ;;  %v2555_v33 = vsub.f32 0.0, %v2539_v44  ;;  %v2494_v0 = vmul.f32 %v2486_v18, %v8432_v51  ;;  %v2309_v8 = vadd.f32 %v8503_v60, %v2308_v21  ;;  %2872 = vmatpush.bf16.msrb.mxu0 %v6459_v49  ;;  %v6452_v49 = vld [vmem:[%s10121_s9 + $0x108] sm:$0xff] }
 0x9aa   :  { %6728 = vrcp.f32 %v8549_v22  ;;  %2854 = vmatpush.bf16.msrb.mxu3 %v6455_v62  ;;  %v2570_v23 = vadd.f32 1.0, %v2562_v6  ;;  %v2479_v51 = vmul.f32 %v5388_v63, %v8477_v43  ;;  %v2359_v61 = vand.u32 2147483647, %v8549_v22  ;;  %v2262_v63 = vpop.f32.mrf.mxu2 }
 0x9ab   :  { %v2534_v12 = vmul.f32 %v6723_v30, %v2494_v0  ;;  %v2563_v41 = vsel %vm2547_vm4, %v2555_v33, %v2539_v44  ;;  %v2313_v34 = vsel %vm2312_vm9, %v8503_v60, %v2309_v8  ;;  %v2361_v35 = vand.u32 2147483648, %v8549_v22  ;;  %v6467_v60 = vld [vmem:[%s10121_s9 + $0x180] sm:$0xff]  ;;  %2896 = vmatpush.bf16.msrb.mxu2 %v6479_v19 }
 0x9ac   :  { %v2487_v45 = vadd.f32 0.2548296, %v2479_v51  ;;  %v8583_v30 = vsel %vm2315_vm10, %v2317_v28, %v2313_v34  ;;  %vm2551_vm11 = vcmp.lt.f32.partialorder %v8348_v48, 0.0  ;;  %6730 = vpow2.f32 %v2513_v5  ;;  %v8595_v9 = vpop.eup %6726  ;;  %2886 = vmatpush.bf16.msra.mxu1 %v6467_v60  ;;  %v6451_v48 = vld [vmem:[%s10121_s9 + $0x100] sm:$0xff] }
 0x9ad   :  { %v2542_v57 = vsub.f32 1.0, %v2534_v12  ;;  %v2425_v20 = vmul.f32 1.0614054, %v8583_v30  ;;  %v2501_v25 = vsub.f32 0.0, %v8490_v4  ;;  %v2578_v44 = vmul.f32 %v2570_v23, %v8345_v36  ;;  %v6453_v36 = vld [vmem:[%s10121_s9 + $0x110] sm:$0xff]  ;;  %v963_v23 = vpop.xlane.xlu1 %962 }
 0x9ae   :  { %2855 = vmatpush.bf16.msrb.mxu3 %v6454_v29  ;;  %v2495_v42 = vmul.f32 %v2487_v45, %v8477_v43  ;;  %v8600_v10 = vmul.f32 %v2500_v52, %v8523_v16  ;;  %v2571_v21 = vadd.f32 1.0, %v2563_v41  ;;  %vm2355_vm12 = vweird.f32 %v8549_v22 }
 0x9af   :  { %v2558_v18 = vsub.f32 0.0, %v2542_v57  ;;  %v5374_v62 = vadd.f32 -1.4531521, %v2425_v20  ;;  %v2366_v40 = vmul.f32 %v8595_v9, %v8537_v14  ;;  %vm8614_vm13 = vcmp.eq.f32.partialorder %v2359_v61, 8.507059e+37  ;;  %2897 = vmatpush.bf16.msrb.mxu2 %v6478_v13 }
 0x9b0   :  { %v8602_v6 = vpop.eup %6728  ;;  %v2535_v26 = vmul.f32 %v6725_v11, %v2495_v42  ;;  %v2362_v0 = vor.u32 1.1754944e-38, %v2361_v35  ;;  %v2374_v58 = vand.u32 2147483647, %v8537_v14  ;;  %vm2371_vm14 = vweird.f32 %v8595_v9 }
 0x9b1   :  { %v2566_v43 = vsel %vm2550_vm7, %v2558_v18, %v2542_v57  ;;  %v2351_v16 = vmul.f32 %v8602_v6, %v8549_v22  ;;  %v2441_v28 = vmul.f32 %v5374_v62, %v8583_v30  ;;  %v2367_v5 = vsub.f32 1.0, %v2366_v40  ;;  %v6511_v22 = vld [vmem:[%s10119_s7 + $0x2e4] sm:$0xf] }
 0x9b2   :  { %v2574_v8 = vadd.f32 1.0, %v2566_v43  ;;  %2856 = vmatpush.bf16.msrb.mxu3 %v6453_v36  ;;  %v2543_v11 = vsub.f32 1.0, %v2535_v26  ;;  %v2376_v51 = vand.u32 2147483648, %v8537_v14  ;;  %v8625_v52 = vpop.eup %6730  ;;  %v8631_v29 = vadd.f32 %v2262_v63, %v2044_v54 }
 0x9b3   :  { %v2352_v12 = vsub.f32 1.0, %v2351_v16  ;;  %v2449_v34 = vadd.f32 1.4214138, %v2441_v28  ;;  %v2368_v61 = vmul.f32 %v8595_v9, %v2367_v5  ;;  %vm2356_vm15 = vweird.f32 %v8602_v6  ;;  %2898 = vmatpush.bf16.msrb.mxu2 %v6477_v15  ;;  %v5700_v15 = vld [vmem:[%s10119_s7 + $0x2b0] sm:$0xf0] }
 0x9b4   :  { %v2582_v41 = vmul.f32 %v2574_v8, %v8473_v39  ;;  %v2559_v57 = vsub.f32 0.0, %v2543_v11  ;;  %6732 = vrcp.f32 %v963_v23  ;;  %vm2370_vm0 = vweird.f32 %v8537_v14  ;;  %vm2357_vm2 = vmor %vm2355_vm12, %vm2356_vm15  ;;  %v6514_v8 = vld [vmem:[%s10119_s7 + $0x2f4] sm:$0xf0] }
 0x9b5   :  { %v2353_v45 = vmul.f32 %v8602_v6, %v2352_v12  ;;  %v2457_v39 = vmul.f32 %v2449_v34, %v8583_v30  ;;  %v2369_v60 = vadd.f32 %v8595_v9, %v2368_v61  ;;  %vm2372_vm1 = vmor %vm2370_vm0, %vm2371_vm14  ;;  %v2377_v19 = vor.u32 1.1754944e-38, %v2376_v51  ;;  %v5716_v61 = vld [vmem:[%s10119_s7 + $0x2d0] sm:$0xf0] }
 0x9b6   :  { %v2586_v35 = vpack.c.bf16 %v2582_v41, %v2578_v44  ;;  %2857 = vmatpush.bf16.msrb.mxu3 %v6452_v49  ;;  %v2567_v54 = vsel %vm2551_vm11, %v2559_v57, %v2543_v11  ;;  %v8650_v44 = vmul.f32 0.70710677, %v8631_v29  ;;  %vm2375_vm3 = vcmp.eq.f32.partialorder %v2374_v58, 8.507059e+37 }
 0x9b7   :  { %v2354_v20 = vadd.f32 %v8602_v6, %v2353_v45  ;;  %v2575_v18 = vadd.f32 1.0, %v2567_v54  ;;  %v5382_v42 = vadd.f32 -0.28449672, %v2457_v39  ;;  %v2373_v14 = vsel %vm2372_vm1, %v8595_v9, %v2369_v60  ;;  %v6510_v45 = vld [vmem:[%s10119_s7 + $0x2d4] sm:$0xf0] }
 0x9b8   :  { %2873 = vmatmul.bf16.vlgmr.msrb.gmra.mxu0 %v2586_v35  ;;  %v2579_v62 = vmul.f32 %v2571_v21, %v8351_v50  ;;  %v8662_v36 = vsel %vm2375_vm3, %v2377_v19, %v2373_v14  ;;  %v8665_v43 = vand.u32 2147483647, %v8650_v44  ;;  %v5738_v21 = vld [vmem:[%s10119_s7 + $0x2e8] sm:$0xf]  ;;  %v2509_v33 = vmul.f32 %v2501_v25, %v8490_v4  ;;  %v6475_v35 = vld [vmem:[%s10121_s9 + $0x1c0] sm:$0xff] }
 0x9b9   :  { %v2358_v40 = vsel %vm2357_vm2, %v8602_v6, %v2354_v20  ;;  %v2583_v9 = vmul.f32 %v2575_v18, %v8506_v53  ;;  %v2473_v26 = vmul.f32 %v5382_v42, %v8583_v30  ;;  %v2429_v50 = vmul.f32 1.0614054, %v8662_v36  ;;  %v5732_v6 = vld [vmem:[%s10119_s7 + $0x2f0] sm:$0xf0]  ;;  %v6476_v4 = vld [vmem:[%s10121_s9 + $0x1c8] sm:$0xff] }
 0x9ba   :  { %v8674_v16 = vsel %vm8614_vm13, %v2362_v0, %v2358_v40  ;;  %2858 = vmatpush.bf16.msrb.mxu3 %v6451_v48  ;;  %v6733_v63 = vpop.eup %6732  ;;  %v2296_v0 = vmul.f32 0.3275911, %v8665_v43  ;;  %v8692_v58 = vmul.f32 1.442695, %v8600_v10  ;;  %v5735_v51 = vor.u32 %v6511_v22, %v5732_v6  ;;  %v6507_v10 = vld [vmem:[%s10119_s7 + $0x2c4] sm:$0xf]  ;;  %2899 = vmatpush.bf16.msrb.mxu2 %v6476_v4 }
 0x9bb   :  { %v2428_v53 = vmul.f32 1.0614054, %v8674_v16  ;;  %v2587_v28 = vpack.c.bf16 %v2583_v9, %v2579_v62  ;;  %v2481_v5 = vadd.f32 0.2548296, %v2473_v26  ;;  %v5378_v23 = vadd.f32 -1.4531521, %v2429_v50  ;;  %v8752_v62 = vpop.xlane.xlu1 %983 }
 0x9bc   :  { %v8694_v11 = vadd.f32 1.0, %v2296_v0  ;;  %v8697_v12 = vmul.f32 %v6733_v63, %v8301_v7  ;;  %v5739_v34 = vor.u32 %v6514_v8, %v5738_v21  ;;  %v5722_v7 = vld [vmem:[%s10119_s7 + $0x2c8] sm:$0xf]  ;;  %v8714_v49 = vmul.f32 0.5, %v8394_v24  ;;  %3137 = vmatpush.bf16.msra.mxu0 %v5735_v51  ;;  %v6503_v60 = vld [vmem:[%s10119_s7 + $0x2a4] sm:$0xf] }
 0x9bd   :  { %v5377_v13 = vadd.f32 -1.4531521, %v2428_v53  ;;  %v2489_v25 = vmul.f32 %v2481_v5, %v8583_v30  ;;  %v2445_v41 = vmul.f32 %v5378_v23, %v8662_v36  ;;  %2887 = vmatmul.bf16.vlgmr.msra.gmra.mxu1 %v2587_v28  ;;  %v2521_v57 = vmul.f32 1.442695, %v2509_v33  ;;  %v6506_v42 = vld [vmem:[%s10119_s7 + $0x2b4] sm:$0xf0] }
 0x9be   :  { %6734 = vrcp.f32 %v8694_v11  ;;  %3151 = vmatpush.bf16.msrb.mxu1 %v5739_v34  ;;  %v8734_v20 = vmul.f32 0.5, %v8437_v32  ;;  %v971_v19 = vsel %vm945_vm6, %v8697_v12, -inf  ;;  %v5730_v14 = vld [vmem:[%s10119_s7 + $0x2e0] sm:$0xf]  ;;  %v6513_v32 = vld [vmem:[%s10119_s7 + $0x2ec] sm:$0xf0]  ;;  %v5719_v40 = vor.u32 %v6507_v10, %v5716_v61  ;;  %2900 = vmatpush.bf16.msrb.mxu2 %v6475_v35 }
 0x9bf   :  { %v2444_v30 = vmul.f32 %v5377_v13, %v8674_v16  ;;  %v8725_v39 = vmul.f32 %v8625_v52, %v2489_v25  ;;  %v2453_v24 = vadd.f32 1.4214138, %v2445_v41  ;;  %v5706_v52 = vld [vmem:[%s10119_s7 + $0x2a8] sm:$0xf]  ;;  %972 = vmax.xlane.f32.xlu2 %v971_v19  ;;  %6736 = vpow2.f32 %v2521_v57  ;;  %v8762_v21 = vld [vmem:[%s10119_s7 + $0x284] sm:$0xf] }
 0x9c0   :  { %v5723_v22 = vor.u32 %v6510_v45, %v5722_v7  ;;  %vm2545_vm4 = vcmp.lt.f32.partialorder %v8412_v37, 0.0  ;;  %v2419_v50 = vand.u32 2147483647, %v8694_v11  ;;  %v1084_v6 = vsel %vm945_vm6, %v8697_v12, 0.0  ;;  %v5684_v63 = vld [vmem:[%s10119_s7 + $0x290] sm:$0xf0]  ;;  %3138 = vmatpush.bf16.msra.mxu0 %v5719_v40 }
 0x9c1   :  { %v2452_v54 = vadd.f32 1.4214138, %v2444_v30  ;;  %v2461_v18 = vmul.f32 %v2453_v24, %v8662_v36  ;;  %v2537_v9 = vsub.f32 1.0, %v8725_v39  ;;  %v5690_v53 = vld [vmem:[%s10119_s7 + $0x288] sm:$0xf]  ;;  %v2421_v8 = vand.u32 2147483648, %v8694_v11 }
 0x9c2   :  { %v6502_v33 = vld [vmem:[%s10119_s7 + $0x294] sm:$0xf0]  ;;  %3152 = vmatpush.bf16.msrb.mxu1 %v5723_v22  ;;  %v5703_v28 = vor.u32 %v6503_v60, %v5700_v15  ;;  %v5707_v5 = vor.u32 %v6506_v42, %v5706_v52  ;;  %v5731_v23 = vor.u32 %v6513_v32, %v5730_v14  ;;  %v5714_v13 = vld [vmem:[%s10119_s7 + $0x2c0] sm:$0xf]  ;;  %v6509_v51 = vld [vmem:[%s10119_s7 + $0x2cc] sm:$0xf0]  ;;  %vm985_vm5 = vcmp.eq.f32.partialorder %v8309_v17, %v8752_v62 }
 0x9c3   :  { %v2460_v48 = vmul.f32 %v2452_v54, %v8674_v16  ;;  %v5386_v26 = vadd.f32 -0.28449672, %v2461_v18  ;;  %v6512_v34 = vld [vmem:[%s10119_s7 + $0x2ec] sm:$0xf]  ;;  %v5740_v10 = vld [vmem:[%s10119_s7 + $0x2f8] sm:$0xf0]  ;;  %v8794_v61 = vadd.f32 %v1084_v6, %v8343_v46  ;;  %v981_v7 = vcvt.s32.f32 %v979_v59 }
 0x9c4   :  { %v8773_v0 = vpop.eup %6734  ;;  %3123 = vmatpush.bf16.msra.mxu3 %v5731_v23  ;;  %v5698_v30 = vld [vmem:[%s10119_s7 + $0x2a0] sm:$0xf]  ;;  %v6505_v57 = vld [vmem:[%s10119_s7 + $0x2ac] sm:$0xf0]  ;;  %v6508_v45 = vld [vmem:[%s10119_s7 + $0x2cc] sm:$0xf]  ;;  %v5715_v55 = vor.u32 %v6509_v51, %v5714_v13  ;;  %3139 = vmatpush.bf16.msra.mxu0 %v5703_v28  ;;  %v5687_v54 = vor.u32 %v8762_v21, %v5684_v63  ;;  %v5691_v19 = vor.u32 %v6502_v33, %v5690_v53  ;;  %vm2415_vm8 = vweird.f32 %v8694_v11 }
 0x9c5   :  { %v5385_v4 = vadd.f32 -0.28449672, %v2460_v48  ;;  %v2477_v25 = vmul.f32 %v5386_v26, %v8662_v36  ;;  %v2411_v41 = vmul.f32 %v8773_v0, %v8694_v11  ;;  %v2553_v46 = vsub.f32 0.0, %v2537_v9  ;;  %v5724_v59 = vld [vmem:[%s10119_s7 + $0x2d8] sm:$0xf0]  ;;  %v6737_v60 = vpop.eup %6736 }
 0x9c6   :  { %3153 = vmatpush.bf16.msrb.mxu1 %v5707_v5  ;;  %v986_v15 = vsel %vm985_vm5, %v981_v7, inf  ;;  %v6495_v52 = vld [vmem:[%s10119_s7 + $0x264] sm:$0xf]  ;;  %v5743_v18 = vor.u32 %v6512_v34, %v5740_v10  ;;  %vm2416_vm7 = vweird.f32 %v8773_v0  ;;  %v5668_v17 = vld [vmem:[%s10119_s7 + $0x270] sm:$0xf0]  ;;  %v2422_v22 = vor.u32 1.1754944e-38, %v2421_v8 }
 0x9c7   :  { %v2485_v35 = vadd.f32 0.2548296, %v2477_v25  ;;  %v2412_v24 = vsub.f32 1.0, %v2411_v41  ;;  %v2476_v42 = vmul.f32 %v5385_v4, %v8674_v16  ;;  %987 = vmin.xlane.f32.xlu2 %v986_v15  ;;  %v5674_v48 = vld [vmem:[%s10119_s7 + $0x268] sm:$0xf]  ;;  %v5699_v26 = vor.u32 %v6505_v57, %v5698_v30  ;;  %vm2417_vm9 = vmor %vm2415_vm8, %vm2416_vm7 }
 0x9c8   :  { %v6498_v40 = vld [vmem:[%s10119_s7 + $0x274] sm:$0xf0]  ;;  %3124 = vmatpush.bf16.msra.mxu3 %v5715_v55  ;;  %3165 = vmatpush.bf16.msra.mxu2 %v5743_v18  ;;  %v5727_v6 = vor.u32 %v6508_v45, %v5724_v59  ;;  %v5682_v21 = vld [vmem:[%s10119_s7 + $0x280] sm:$0xf]  ;;  %v6491_v33 = vld [vmem:[%s10119_s7 + $0x244] sm:$0xf]  ;;  %v2561_v23 = vsel %vm2545_vm4, %v2553_v46, %v2537_v9  ;;  %v5671_v51 = vor.u32 %v6495_v52, %v5668_v17  ;;  %6738 = vpow2.f32 %v8692_v58 }
 0x9c9   :  { %v2493_v14 = vmul.f32 %v2485_v35, %v8662_v36  ;;  %v2413_v32 = vmul.f32 %v8773_v0, %v2412_v24  ;;  %v2504_v36 = vsub.f32 0.0, %v8665_v43  ;;  %v6501_v8 = vld [vmem:[%s10119_s7 + $0x28c] sm:$0xf0]  ;;  %v6504_v28 = vld [vmem:[%s10119_s7 + $0x2ac] sm:$0xf]  ;;  %v1086_v13 = vrot.slane %v8794_v61, 4  ;;  %3140 = vmatpush.bf16.msra.mxu0 %v5687_v54 }
 0x9ca   :  { %v5708_v5 = vld [vmem:[%s10119_s7 + $0x2b8] sm:$0xf0]  ;;  %3154 = vmatpush.bf16.msrb.mxu1 %v5691_v19  ;;  %v5675_v4 = vor.u32 %v6498_v40, %v5674_v48  ;;  %v5652_v25 = vld [vmem:[%s10119_s7 + $0x250] sm:$0xf0]  ;;  %v5658_v39 = vld [vmem:[%s10119_s7 + $0x248] sm:$0xf]  ;;  %v5683_v7 = vor.u32 %v6501_v8, %v5682_v21 }
 0x9cb   :  { %v2533_v63 = vmul.f32 %v6737_v60, %v2493_v14  ;;  %v2414_v53 = vadd.f32 %v8773_v0, %v2413_v32  ;;  %v2484_v41 = vadd.f32 0.2548296, %v2476_v42  ;;  %vm2420_vm10 = vcmp.eq.f32.partialorder %v2419_v50, 8.507059e+37  ;;  %v6494_v34 = vld [vmem:[%s10119_s7 + $0x254] sm:$0xf0] }
 0x9cc   :  { %3125 = vmatpush.bf16.msra.mxu3 %v5699_v26  ;;  %3166 = vmatpush.bf16.msra.mxu2 %v5727_v6  ;;  %v5711_v30 = vor.u32 %v6504_v28, %v5708_v5  ;;  %v5666_v57 = vld [vmem:[%s10119_s7 + $0x260] sm:$0xf]  ;;  %v6497_v11 = vld [vmem:[%s10119_s7 + $0x26c] sm:$0xf0]  ;;  %v6500_v50 = vld [vmem:[%s10119_s7 + $0x28c] sm:$0xf]  ;;  %v2512_v46 = vmul.f32 %v2504_v36, %v8665_v43  ;;  %v5655_v24 = vor.u32 %v6491_v33, %v5652_v25 }
 0x9cd   :  { %v2541_v37 = vsub.f32 1.0, %v2533_v63  ;;  %v2418_v9 = vsel %vm2417_vm9, %v8773_v0, %v2414_v53  ;;  %v2569_v0 = vadd.f32 1.0, %v2561_v23  ;;  %v5692_v35 = vld [vmem:[%s10119_s7 + $0x298] sm:$0xf0]  ;;  %vm2549_vm11 = vcmp.lt.f32.partialorder %v8459_v1, 0.0  ;;  %3141 = vmatpush.bf16.msra.mxu0 %v5671_v51 }
 0x9ce   :  { %v8870_v10 = vsel %vm2420_vm10, %v2422_v22, %v2418_v9  ;;  %3155 = vmatpush.bf16.msrb.mxu1 %v5675_v4  ;;  %v5659_v55 = vor.u32 %v6494_v34, %v5658_v39  ;;  %v6487_v59 = vld [vmem:[%s10119_s7 + $0x224] sm:$0xf]  ;;  %v5636_v60 = vld [vmem:[%s10119_s7 + $0x230] sm:$0xf0]  ;;  %v1087_v43 = vadd.f32 %v1086_v13, %v8794_v61  ;;  %v2492_v15 = vmul.f32 %v2484_v41, %v8674_v16  ;;  %v5642_v1 = vld [vmem:[%s10119_s7 + $0x228] sm:$0xf]  ;;  %v6739_v26 = vpop.eup %6738 }
 0x9cf   :  { %v2557_v58 = vsub.f32 0.0, %v2541_v37  ;;  %v2432_v45 = vmul.f32 1.0614054, %v8870_v10  ;;  %v6490_v52 = vld [vmem:[%s10119_s7 + $0x234] sm:$0xf0]  ;;  %v5667_v42 = vor.u32 %v6497_v11, %v5666_v57  ;;  %v5695_v14 = vor.u32 %v6500_v50, %v5692_v35 }
 0x9d0   :  { %3126 = vmatpush.bf16.msra.mxu3 %v5683_v7  ;;  %3167 = vmatpush.bf16.msra.mxu2 %v5711_v30  ;;  %v5650_v61 = vld [vmem:[%s10119_s7 + $0x240] sm:$0xf]  ;;  %v1088_v16 = vrot.slane %v1087_v43, 2  ;;  %v2577_v32 = vmul.f32 %v2569_v0, %v8714_v49  ;;  %v5639_v48 = vor.u32 %v6487_v59, %v5636_v60  ;;  %v6493_v40 = vld [vmem:[%s10119_s7 + $0x24c] sm:$0xf0]  ;;  %v5643_v49 = vor.u32 %v6490_v52, %v5642_v1 }
 0x9d1   :  { %v2565_v54 = vsel %vm2549_vm11, %v2557_v58, %v2541_v37  ;;  %v5381_v19 = vadd.f32 -1.4531521, %v2432_v45  ;;  %v6496_v22 = vld [vmem:[%s10119_s7 + $0x26c] sm:$0xf]  ;;  %v5676_v36 = vld [vmem:[%s10119_s7 + $0x278] sm:$0xf0]  ;;  %3142 = vmatpush.bf16.msra.mxu0 %v5655_v24  ;;  %v2532_v8 = vmul.f32 %v6739_v26, %v2492_v15  ;;  %v5651_v13 = vor.u32 %v6493_v40, %v5650_v61 }
 0x9d2   :  { %v2573_v18 = vadd.f32 1.0, %v2565_v54  ;;  %v2527_v21 = vmul.f32 1.442695, %v2512_v46  ;;  %3156 = vmatpush.bf16.msrb.mxu1 %v5659_v55  ;;  %v6483_v63 = vld [vmem:[%s10119_s7 + $0x204] sm:$0xf]  ;;  %v1089_v33 = vadd.f32 %v1088_v16, %v1087_v43  ;;  %v5679_v51 = vor.u32 %v6496_v22, %v5676_v36 }
 0x9d3   :  { %v2448_v17 = vmul.f32 %v5381_v19, %v8870_v10  ;;  %v5620_v53 = vld [vmem:[%s10119_s7 + $0x210] sm:$0xf0]  ;;  %v5626_v5 = vld [vmem:[%s10119_s7 + $0x208] sm:$0xf]  ;;  %v5634_v4 = vld [vmem:[%s10119_s7 + $0x220] sm:$0xf] }
 0x9d4   :  { %v2581_v6 = vmul.f32 %v2573_v18, %v8734_v20  ;;  %v6486_v20 = vld [vmem:[%s10119_s7 + $0x214] sm:$0xf0]  ;;  %3127 = vmatpush.bf16.msra.mxu3 %v5667_v42  ;;  %3168 = vmatpush.bf16.msra.mxu2 %v5695_v14  ;;  %v1090_v25 = vrot.slane %v1089_v33, 1  ;;  %v6489_v41 = vld [vmem:[%s10119_s7 + $0x22c] sm:$0xf0]  ;;  %v5623_v34 = vor.u32 %v6483_v63, %v5620_v53  ;;  %vm1081_vm12 = vcmask 24576  }
 0x9d5   :  { %v2456_v28 = vadd.f32 1.4214138, %v2448_v17  ;;  %v6492_v37 = vld [vmem:[%s10119_s7 + $0x24c] sm:$0xf]  ;;  %v5660_v9 = vld [vmem:[%s10119_s7 + $0x258] sm:$0xf0]  ;;  %3143 = vmatpush.bf16.msra.mxu0 %v5639_v48  ;;  %v5627_v7 = vor.u32 %v6486_v20, %v5626_v5  ;;  %6740 = vpow2.f32 %v2527_v21  ;;  %v5635_v50 = vor.u32 %v6489_v41, %v5634_v4 }
 0x9d6   :  { %v2585_v23 = vpack.c.bf16 %v2581_v6, %v2577_v32  ;;  %3157 = vmatpush.bf16.msrb.mxu1 %v5643_v49  ;;  %v1091_v30 = vadd.f32 %v1090_v25, %v1089_v33  ;;  %v2540_v11 = vsub.f32 1.0, %v2532_v8  ;;  %v5663_v0 = vor.u32 %v6492_v37, %v5660_v9  ;;  %v5618_v58 = vld [vmem:[%s10119_s7 + $0x200] sm:$0xf]  ;;  %v6485_v46 = vld [vmem:[%s10119_s7 + $0x20c] sm:$0xf0] }
 0x9d7   :  { %v2464_v39 = vmul.f32 %v2456_v28, %v8870_v10  ;;  %v6488_v35 = vld [vmem:[%s10119_s7 + $0x22c] sm:$0xf]  ;;  %v5644_v24 = vld [vmem:[%s10119_s7 + $0x238] sm:$0xf0]  ;;  %v5619_v59 = vor.u32 %v6485_v46, %v5618_v58  ;;  %vm2548_vm13 = vcmp.lt.f32.partialorder %v8509_v3, 0.0  ;;  %vm2552_vm14 = vcmp.lt.f32.partialorder %v8650_v44, 0.0 }
 0x9d8   :  { %2859 = vmatmul.bf16.vlgmr.msrb.gmra.mxu3 %v2585_v23  ;;  %3169 = vmatpush.bf16.msra.mxu2 %v5679_v51  ;;  %1092 = vst.msk [vmem:[%s10126_s14] sm:$0x1] %vm1081_vm12, %v1091_v30  ;;  %v5647_v60 = vor.u32 %v6488_v35, %v5644_v24  ;;  %v2556_v43 = vsub.f32 0.0, %v2540_v11  ;;  %v6484_v54 = vld [vmem:[%s10119_s7 + $0x20c] sm:$0xf]  ;;  %v2268_v32 = vmul.f32 0.5, %v8487_v27 }
 0x9d9   :  { %v5389_v57 = vadd.f32 -0.28449672, %v2464_v39  ;;  %3128 = vmatpush.bf16.msra.mxu3 %v5651_v13  ;;  %3144 = vmatpush.bf16.msra.mxu0 %v5623_v34  ;;  %v5628_v19 = vld [vmem:[%s10119_s7 + $0x218] sm:$0xf0]  ;;  %v2272_v17 = vmul.f32 0.5, %v8631_v29  ;;  %v990_v29 = vcvt.f32.s32 %v8752_v62 }
 0x9da   :  { %3158 = vmatpush.bf16.msrb.mxu1 %v5627_v7  ;;  %v5631_v18 = vor.u32 %v6484_v54, %v5628_v19  ;;  %v9000_v23 = vld [vmem:[%s10120_s8 + $0x8] sm:$0xf]  ;;  %v6635_v4 = vld [vmem:[%s10122_s10 + $0x1] ss:$0 sm:$0xff] }
 0x9db   :  { %v2480_v45 = vmul.f32 %v5389_v57, %v8870_v10  ;;  %v6741_v1 = vpop.eup %6740  ;;  %v991_v49 = vshll.u32 %v990_v29, 16  ;;  %v2956_v13 = vperm.slane %v9000_v23, 1  ;;  %v2957_v51 = vperm.slane %v9000_v23, 2 }
 0x9dc   :  { %3170 = vmatpush.bf16.msra.mxu2 %v5663_v0  ;;  %3145 = vmatmul.bf16.vlgmr.msra.gmra.mxu0 %v7626_v38 }
 0x9dd   :  { %v2488_v55 = vadd.f32 0.2548296, %v2480_v45  ;;  %3129 = vmatpush.bf16.msra.mxu3 %v5635_v50  ;;  %3159 = vmatmul.bf16.vlgmr.msrb.gmra.mxu1 %v7626_v38  ;;  %v6538_v50 = vld [vmem:[%s10121_s9 + $0x2b8] sm:$0xff] }
 0x9de   :  { %3793 = vmatpush.bf16.msra.mxu1 %v6538_v50 }
 0x9df   :  { %v2496_v15 = vmul.f32 %v2488_v55, %v8870_v10  ;;  %v2564_v10 = vsel %vm2548_vm13, %v2556_v43, %v2540_v11  ;;  %v6530_v11 = vld [vmem:[%s10121_s9 + $0x278] sm:$0xff] }
 0x9e0   :  { %3171 = vmatpush.bf16.msra.mxu2 %v5647_v60  ;;  %v2572_v61 = vadd.f32 1.0, %v2564_v10  ;;  %3779 = vmatpush.bf16.msrb.mxu0 %v6530_v11 }
 0x9e1   :  { %v2536_v52 = vmul.f32 %v6741_v1, %v2496_v15  ;;  %3130 = vmatpush.bf16.msra.mxu3 %v5619_v59 }
 0x9e2   :  { %v2580_v40 = vmul.f32 %v2572_v61, %v2268_v32 }
 0x9e3   :  { %v2544_v42 = vsub.f32 1.0, %v2536_v52 }
 0x9e4   :  { %3172 = vmatpush.bf16.msra.mxu2 %v5631_v18 }
 0x9e5   :  { %v2560_v14 = vsub.f32 0.0, %v2544_v42 }
 0x9e7   :  { %v2568_v16 = vsel %vm2552_vm14, %v2560_v14, %v2544_v42  ;;  %v2955_v42 = vperm.slane %v9000_v23, 0 }
 0x9e8   :  { %v2576_v48 = vadd.f32 1.0, %v2568_v16  ;;  %3131 = vmatmul.bf16.vlgmr.msra.gmra.mxu3 %v7626_v38 }
 0x9ea   :  { %v2584_v3 = vmul.f32 %v2576_v48, %v2272_v17 }
 0x9ec   :  { %v2588_v22 = vpack.c.bf16 %v2584_v3, %v2580_v40  ;;  %v2958_v3 = vperm.slane %v9000_v23, 3 }
 0x9ee   :  { %2901 = vmatmul.bf16.vlgmr.msrb.gmra.mxu2 %v2588_v22 }
 0x9fe   :  { %3173 = vmatmul.bf16.vlgmr.msra.gmra.mxu2 %v7626_v38 }
 0xa32   :  { %v973_v36 = vpop.xlane.xlu2 %972 }
 0xa33   :  { %vm975_vm15 = vcmp.eq.f32.partialorder %v8697_v12, %v973_v36 }
 0xa34   :  { %v977_v44 = vsel %vm975_vm15, %v7198_v47, 4 }
 0xa35   :  { %v8976_v26 = vsel %vm945_vm6, %v977_v44, 2147483647  ;;  %v2874_v8 = vpop.f32.mrf.mxu0 }
 0xa36   :  { %v995_v27 = vshra.s32 %v8976_v26, 16 }
 0xa38   :  { %v8980_v6 = vcvt.s32.f32 %v995_v27 }
 0xa3a   :  { %998 = vmin.xlane.f32.xlu0 %v8980_v6  ;;  %v988_v21 = vpop.xlane.xlu2 %987  ;;  %v2888_v28 = vpop.f32.mrf.mxu1 }
 0xa3b   :  { %v989_v63 = vcvt.f32.s32 %v988_v21 }
 0xa3d   :  { %v8983_v53 = vadd.s32 %v991_v49, %v989_v63  ;;  %v2876_v5 = vpop.f32.mrf.mxu0 }
 0xa3f   :  { %vm1008_vm0 = vcmp.eq.s32.totalorder %v7198_v47, %v8983_v53  ;;  %v6865_v53 = vmov 0  }
 0xa40   :  { %v8991_v33 = vsel %vm1008_vm0, -inf, %v7661_v2  ;;  %6623 = vset.pattern.permute.xlu1 %v6865_v53  ;;  %6624 = vset.pattern.permute.xlu0 %v6865_v53 }
 0xa41   :  { %v1012_v62 = vsel %vm945_vm6, %v8991_v33, -inf }
 0xa42   :  { %1013 = vmax.xlane.f32.xlu0 %v1012_v62  ;;  %v8995_v20 = vpop.f32.mrf.mxu1 }
 0xa59   :  { %v3146_v25 = vpop.f32.mrf.mxu0 }
 0xa5a   :  { %v3160_v39 = vpop.f32.mrf.mxu1  ;;  %v3147_v41 = vadd.f32 %v3146_v25, %v2956_v13 }
 0xa5b   :  { %v3161_v37 = vadd.f32 %v3160_v39, %v2957_v51  ;;  %v2860_v9 = vpop.f32.mrf.mxu3 }
 0xa5c   :  { %v2861_v34 = vadd.f32 %v6635_v4, %v2860_v9  ;;  %v9007_v7 = vmul.f32 0.70710677, %v3147_v41  ;;  %v9025_v14 = vmul.f32 0.5, %v3147_v41 }
 0xa5d   :  { %v9009_v30 = vmul.f32 0.70710677, %v3161_v37  ;;  %v9027_v16 = vmul.f32 0.5, %v3161_v37 }
 0xa5e   :  { %v2875_v57 = vadd.f32 %v2874_v8, %v2861_v34  ;;  %v3196_v0 = vand.u32 2147483647, %v9007_v7 }
 0xa5f   :  { %v3197_v58 = vand.u32 2147483647, %v9009_v30 }
 0xa60   :  { %v2889_v45 = vadd.f32 %v2888_v28, %v2875_v57  ;;  %v3204_v46 = vmul.f32 0.3275911, %v3196_v0  ;;  %v3412_v60 = vsub.f32 0.0, %v3196_v0 }
 0xa61   :  { %v3205_v35 = vmul.f32 0.3275911, %v3197_v58  ;;  %v3148_v24 = vpop.f32.mrf.mxu0  ;;  %v3413_v52 = vsub.f32 0.0, %v3197_v58 }
 0xa62   :  { %v3162_v55 = vpop.f32.mrf.mxu1  ;;  %v3212_v59 = vadd.f32 1.0, %v3204_v46  ;;  %v3149_v54 = vadd.f32 %v3148_v24, %v2956_v13  ;;  %v3420_v18 = vmul.f32 %v3412_v60, %v3196_v0  ;;  %v6537_v24 = vld [vmem:[%s10121_s9 + $0x2b0] sm:$0xff] }
 0xa63   :  { %v9019_v43 = vadd.f32 1.0, %v3205_v35  ;;  %v2862_v15 = vpop.f32.mrf.mxu3  ;;  %v3163_v1 = vadd.f32 %v3162_v55, %v2957_v51  ;;  %v3421_v17 = vmul.f32 %v3413_v52, %v3197_v58  ;;  %3794 = vmatpush.bf16.msra.mxu1 %v6537_v24 }
 0xa64   :  { %v2863_v19 = vadd.f32 %v6635_v4, %v2862_v15  ;;  %6742 = vrcp.f32 %v3212_v59  ;;  %v9022_v10 = vmul.f32 0.70710677, %v3149_v54  ;;  %v3243_v61 = vand.u32 2147483647, %v3212_v59 }
 0xa65   :  { %6744 = vrcp.f32 %v9019_v43  ;;  %v9029_v32 = vmul.f32 0.70710677, %v3163_v1  ;;  %vm3239_vm1 = vweird.f32 %v3212_v59  ;;  %v3245_v36 = vand.u32 2147483648, %v3212_v59 }
 0xa66   :  { %v3200_v48 = vand.u32 2147483647, %v9022_v10  ;;  %v2877_v40 = vadd.f32 %v2876_v5, %v2863_v19  ;;  %v3429_v44 = vmul.f32 1.442695, %v3420_v18  ;;  %vm3254_vm2 = vweird.f32 %v9019_v43 }
 0xa67   :  { %v3201_v27 = vand.u32 2147483647, %v9029_v32  ;;  %v3258_v63 = vand.u32 2147483647, %v9019_v43  ;;  %vm9036_vm3 = vcmp.eq.f32.partialorder %v3243_v61, 8.507059e+37  ;;  %v3260_v5 = vand.u32 2147483648, %v9019_v43 }
 0xa68   :  { %v3208_v62 = vmul.f32 0.3275911, %v3200_v48  ;;  %v3431_v4 = vmul.f32 1.442695, %v3421_v17  ;;  %v2891_v39 = vadd.f32 %v8995_v20, %v2877_v40  ;;  %v3416_v9 = vsub.f32 0.0, %v3200_v48 }
 0xa69   :  { %v3209_v13 = vmul.f32 0.3275911, %v3201_v27  ;;  %v3417_v50 = vsub.f32 0.0, %v3201_v27  ;;  %v3246_v46 = vor.u32 1.1754944e-38, %v3245_v36  ;;  %vm9054_vm7 = vcmp.eq.f32.partialorder %v3258_v63, 8.507059e+37 }
 0xa6a   :  { %v6743_v22 = vpop.eup %6742  ;;  %v9042_v25 = vadd.f32 1.0, %v3208_v62  ;;  %v3261_v60 = vor.u32 1.1754944e-38, %v3260_v5  ;;  %v9067_v15 = vmul.f32 0.5, %v3149_v54  ;;  %v3424_v19 = vmul.f32 %v3416_v9, %v3200_v48 }
 0xa6b   :  { %v3132_v29 = vpop.f32.mrf.mxu3  ;;  %v6745_v21 = vpop.eup %6744  ;;  %v3235_v49 = vmul.f32 %v6743_v22, %v3212_v59  ;;  %vm3240_vm4 = vweird.f32 %v6743_v22  ;;  %v9045_v34 = vadd.f32 1.0, %v3209_v13  ;;  %v9071_v18 = vmul.f32 0.5, %v3163_v1 }
 0xa6c   :  { %v3250_v28 = vmul.f32 %v6745_v21, %v9019_v43  ;;  %6746 = vrcp.f32 %v9042_v25  ;;  %vm3255_vm5 = vweird.f32 %v6745_v21  ;;  %v9052_v58 = vadd.f32 %v3132_v29, %v2955_v42  ;;  %vm3241_vm8 = vmor %vm3239_vm1, %vm3240_vm4 }
 0xa6d   :  { %v3236_v51 = vsub.f32 1.0, %v3235_v49  ;;  %6748 = vpow2.f32 %v3429_v44  ;;  %vm3256_vm9 = vmor %vm3254_vm2, %vm3255_vm5  ;;  %v3425_v61 = vmul.f32 %v3417_v50, %v3201_v27  ;;  %v3303_v40 = vand.u32 2147483647, %v9042_v25  ;;  %v6528_v44 = vld [vmem:[%s10121_s9 + $0x268] sm:$0xff] }
 0xa6e   :  { %v3251_v41 = vsub.f32 1.0, %v3250_v28  ;;  %6750 = vrcp.f32 %v9045_v34  ;;  %v9079_v54 = vmul.f32 0.70710677, %v9052_v58  ;;  %vm3299_vm10 = vweird.f32 %v9042_v25  ;;  %v6536_v27 = vld [vmem:[%s10121_s9 + $0x2a8] sm:$0xff] }
 0xa6f   :  { %v3237_v57 = vmul.f32 %v6743_v22, %v3236_v51  ;;  %6752 = vpow2.f32 %v3431_v4  ;;  %v3305_v36 = vand.u32 2147483648, %v9042_v25  ;;  %v3437_v63 = vmul.f32 1.442695, %v3424_v19  ;;  %3795 = vmatpush.bf16.msra.mxu1 %v6536_v27  ;;  %v6535_v19 = vld [vmem:[%s10121_s9 + $0x2a0] sm:$0xff] }
 0xa70   :  { %v3252_v0 = vmul.f32 %v6745_v21, %v3251_v41  ;;  %v9099_v8 = vand.u32 2147483647, %v9079_v54  ;;  %vm3314_vm11 = vweird.f32 %v9045_v34  ;;  %v3318_v9 = vand.u32 2147483647, %v9045_v34 }
 0xa71   :  { %v2902_v37 = vpop.f32.mrf.mxu2  ;;  %v3238_v20 = vadd.f32 %v6743_v22, %v3237_v57  ;;  %vm9113_vm14 = vcmp.eq.f32.partialorder %v3303_v40, 8.507059e+37  ;;  %6754 = vpow2.f32 %v3437_v63  ;;  %v3320_v24 = vand.u32 2147483648, %v9045_v34 }
 0xa72   :  { %v9047_v11 = vadd.f32 %v2902_v37, %v2889_v45  ;;  %v6529_v45 = vld [vmem:[%s10121_s9 + $0x270] sm:$0xff]  ;;  %v3253_v55 = vadd.f32 %v6745_v21, %v3252_v0  ;;  %v3411_v63 = vsub.f32 0.0, %v9099_v8  ;;  %vm3460_vm5 = vcmp.lt.f32.partialorder %v9007_v7, 0.0  ;;  %v6519_v7 = vld [vmem:[%s10121_s9 + $0x220] sm:$0xff] }
 0xa73   :  { %v3242_v52 = vsel %vm3241_vm8, %v6743_v22, %v3238_v20  ;;  %3780 = vmatpush.bf16.msrb.mxu0 %v6529_v45  ;;  %v3134_v48 = vpop.f32.mrf.mxu3  ;;  %v6747_v22 = vpop.eup %6746  ;;  %3796 = vmatpush.bf16.msra.mxu1 %v6535_v19 }
 0xa74   :  { %v9075_v17 = vsel %vm9036_vm3, %v3246_v46, %v3242_v52  ;;  %v3257_v59 = vsel %vm3256_vm9, %v6745_v21, %v3253_v55  ;;  %v9094_v29 = vpop.eup %6748  ;;  %v3295_v49 = vmul.f32 %v6747_v22, %v9042_v25  ;;  %v9106_v51 = vadd.f32 %v3134_v48, %v2955_v42 }
 0xa75   :  { %v3340_v43 = vmul.f32 1.0614054, %v9075_v17  ;;  %v9084_v1 = vsel %vm9054_vm7, %v3261_v60, %v3257_v59  ;;  %v6751_v28 = vpop.eup %6750  ;;  %vm3300_vm13 = vweird.f32 %v6747_v22  ;;  %v3203_v42 = vmul.f32 0.3275911, %v9099_v8  ;;  %v6527_v60 = vld [vmem:[%s10121_s9 + $0x260] sm:$0xff] }
 0xa76   :  { %v3341_v21 = vmul.f32 1.0614054, %v9084_v1  ;;  %v3296_v41 = vsub.f32 1.0, %v3295_v49  ;;  %v3310_v37 = vmul.f32 %v6751_v28, %v9045_v34  ;;  %v9110_v57 = vpop.eup %6752  ;;  %v9120_v35 = vmul.f32 0.70710677, %v9106_v51  ;;  %vm3301_vm1 = vmor %vm3299_vm10, %vm3300_vm13 }
 0xa77   :  { %v5745_v5 = vadd.f32 -1.4531521, %v3340_v43  ;;  %3781 = vmatpush.bf16.msrb.mxu0 %v6528_v44  ;;  %v9123_v55 = vadd.f32 1.0, %v3203_v42  ;;  %vm3315_vm15 = vweird.f32 %v6751_v28  ;;  %v3306_v43 = vor.u32 1.1754944e-38, %v3305_v36 }
 0xa78   :  { %v5746_v4 = vadd.f32 -1.4531521, %v3341_v21  ;;  %v3297_v20 = vmul.f32 %v6747_v22, %v3296_v41  ;;  %v3311_v46 = vsub.f32 1.0, %v3310_v37  ;;  %v3439_v44 = vmul.f32 1.442695, %v3425_v61  ;;  %vm3316_vm2 = vmor %vm3314_vm11, %vm3315_vm15 }
 0xa79   :  { %v2904_v62 = vpop.f32.mrf.mxu2  ;;  %v3356_v50 = vmul.f32 %v5745_v5, %v9075_v17  ;;  %6756 = vrcp.f32 %v9123_v55  ;;  %v3321_v25 = vor.u32 1.1754944e-38, %v3320_v24  ;;  %v9146_v61 = vand.u32 2147483647, %v9120_v35 }
 0xa7a   :  { %v9102_v13 = vadd.f32 %v2904_v62, %v2891_v39  ;;  %v3357_v0 = vmul.f32 %v5746_v4, %v9084_v1  ;;  %v3298_v59 = vadd.f32 %v6747_v22, %v3297_v20  ;;  %v3312_v40 = vmul.f32 %v6751_v28, %v3311_v46  ;;  %v9155_v39 = vpop.eup %6754 }
 0xa7b   :  { %v3364_v45 = vadd.f32 1.4214138, %v3356_v50  ;;  %3782 = vmatpush.bf16.msrb.mxu0 %v6527_v60  ;;  %vm3319_vm3 = vcmp.eq.f32.partialorder %v3318_v9, 8.507059e+37  ;;  %v6534_v50 = vld [vmem:[%s10121_s9 + $0x298] sm:$0xff]  ;;  %6758 = vpow2.f32 %v3439_v44  ;;  %vm3224_vm4 = vweird.f32 %v9123_v55  ;;  %v6533_v44 = vld [vmem:[%s10121_s9 + $0x290] sm:$0xff] }
 0xa7c   :  { %v3365_v52 = vadd.f32 1.4214138, %v3357_v0  ;;  %v3302_v21 = vsel %vm3301_vm1, %v6747_v22, %v3298_v59  ;;  %v3313_v49 = vadd.f32 %v6751_v28, %v3312_v40  ;;  %v6526_v22 = vld [vmem:[%s10121_s9 + $0x258] sm:$0xff]  ;;  %3797 = vmatpush.bf16.msra.mxu1 %v6534_v50  ;;  %vm3461_vm7 = vcmp.lt.f32.partialorder %v9009_v30, 0.0 }
 0xa7d   :  { %v3372_v48 = vmul.f32 %v3364_v45, %v9075_v17  ;;  %v9140_v4 = vsel %vm9113_vm14, %v3306_v43, %v3302_v21  ;;  %v3419_v45 = vmul.f32 %v3411_v63, %v9099_v8  ;;  %v6525_v43 = vld [vmem:[%s10121_s9 + $0x250] sm:$0xff]  ;;  %v3228_v21 = vand.u32 2147483647, %v9123_v55 }
 0xa7e   :  { %v3373_v27 = vmul.f32 %v3365_v52, %v9084_v1  ;;  %v3344_v41 = vmul.f32 1.0614054, %v9140_v4  ;;  %v3317_v37 = vsel %vm3316_vm2, %v6751_v28, %v3313_v49  ;;  %v6522_v28 = vld [vmem:[%s10121_s9 + $0x238] sm:$0xff]  ;;  %v3207_v52 = vmul.f32 0.3275911, %v9146_v61 }
 0xa7f   :  { %v5753_v5 = vadd.f32 -0.28449672, %v3372_v48  ;;  %v9158_v42 = vsel %vm3319_vm3, %v3321_v25, %v3317_v37  ;;  %3783 = vmatpush.bf16.msrb.mxu0 %v6526_v22  ;;  %v9170_v24 = vpop.eup %6756  ;;  %3765 = vmatpush.bf16.msrb.mxu3 %v6522_v28  ;;  %v3230_v49 = vand.u32 2147483648, %v9123_v55  ;;  %vm3229_vm10 = vcmp.eq.f32.partialorder %v3228_v21, 8.507059e+37 }
 0xa80   :  { %v5754_v36 = vadd.f32 -0.28449672, %v3373_v27  ;;  %v5749_v20 = vadd.f32 -1.4531521, %v3344_v41  ;;  %v3345_v46 = vmul.f32 1.0614054, %v9158_v42  ;;  %v3220_v8 = vmul.f32 %v9170_v24, %v9123_v55  ;;  %3798 = vmatpush.bf16.msra.mxu1 %v6533_v44 }
 0xa81   :  { %v3174_v62 = vpop.f32.mrf.mxu2  ;;  %v3388_v34 = vmul.f32 %v5753_v5, %v9075_v17  ;;  %vm3225_vm8 = vweird.f32 %v9170_v24  ;;  %v9204_v50 = vadd.f32 1.0, %v3207_v52  ;;  %v3427_v52 = vmul.f32 1.442695, %v3419_v45  ;;  %v6531_v55 = vld [vmem:[%s10121_s9 + $0x280] sm:$0xff] }
 0xa82   :  { %v9162_v0 = vadd.f32 %v3174_v62, %v2958_v3  ;;  %v3389_v9 = vmul.f32 %v5754_v36, %v9084_v1  ;;  %v3360_v40 = vmul.f32 %v5749_v20, %v9140_v4  ;;  %v5750_v48 = vadd.f32 -1.4531521, %v3345_v46  ;;  %v6521_v62 = vld [vmem:[%s10121_s9 + $0x230] sm:$0xff]  ;;  %v6546_v46 = vld [vmem:[%s10121_s9 + $0x2f8] sm:$0xff]  ;;  %vm9230_vm9 = vmor %vm3224_vm4, %vm3225_vm8 }
 0xa83   :  { %v3396_v60 = vadd.f32 0.2548296, %v3388_v34  ;;  %v3221_v36 = vsub.f32 1.0, %v3220_v8  ;;  %3784 = vmatpush.bf16.msrb.mxu0 %v6525_v43  ;;  %3766 = vmatpush.bf16.msrb.mxu3 %v6521_v62  ;;  %v6532_v34 = vld [vmem:[%s10121_s9 + $0x288] sm:$0xff]  ;;  %6760 = vrcp.f32 %v9204_v50  ;;  %v6523_v62 = vld [vmem:[%s10121_s9 + $0x240] sm:$0xff]  ;;  %vm3464_vm11 = vcmp.lt.f32.partialorder %v9022_v10, 0.0 }
 0xa84   :  { %v9174_v19 = vmul.f32 0.70710677, %v9162_v0  ;;  %v3397_v59 = vadd.f32 0.2548296, %v3389_v9  ;;  %v3368_v25 = vadd.f32 1.4214138, %v3360_v40  ;;  %v3361_v22 = vmul.f32 %v5750_v48, %v9158_v42  ;;  %3799 = vmatpush.bf16.msra.mxu1 %v6532_v34  ;;  %3807 = vmatpush.bf16.msrb.mxu2 %v6546_v46 }
 0xa85   :  { %v3404_v27 = vmul.f32 %v3396_v60, %v9075_v17  ;;  %v9199_v17 = vpop.eup %6758  ;;  %v3222_v20 = vmul.f32 %v9170_v24, %v3221_v36  ;;  %v6520_v40 = vld [vmem:[%s10121_s9 + $0x228] sm:$0xff]  ;;  %vm3465_vm13 = vcmp.lt.f32.partialorder %v9029_v32, 0.0  ;;  %vm3284_vm3 = vweird.f32 %v9204_v50 }
 0xa86   :  { %v9192_v63 = vand.u32 2147483647, %v9174_v19  ;;  %v3405_v5 = vmul.f32 %v3397_v59, %v9084_v1  ;;  %v6524_v1 = vld [vmem:[%s10121_s9 + $0x248] sm:$0xff]  ;;  %v3376_v9 = vmul.f32 %v3368_v25, %v9140_v4  ;;  %vm3459_vm8 = vcmp.lt.f32.partialorder %v9079_v54, 0.0  ;;  %v6006_v54 = vld [vmem:[%s10119_s7 + $0x330] sm:$0xf0] }
 0xa87   :  { %v3444_v41 = vmul.f32 %v9094_v29, %v3404_v27  ;;  %v3369_v29 = vadd.f32 1.4214138, %v3361_v22  ;;  %v3223_v43 = vadd.f32 %v9170_v24, %v3222_v20  ;;  %3785 = vmatpush.bf16.msrb.mxu0 %v6524_v1  ;;  %v3231_v27 = vor.u32 1.1754944e-38, %v3230_v49  ;;  %3767 = vmatpush.bf16.msrb.mxu3 %v6520_v40 }
 0xa88   :  { %v3206_v37 = vmul.f32 0.3275911, %v9192_v63  ;;  %v3445_v28 = vmul.f32 %v9110_v57, %v3405_v5  ;;  %v5757_v48 = vadd.f32 -0.28449672, %v3376_v9  ;;  %v6545_v5 = vld [vmem:[%s10121_s9 + $0x2f0] sm:$0xff]  ;;  %v3414_v1 = vsub.f32 0.0, %v9192_v63  ;;  %3800 = vmatpush.bf16.msra.mxu1 %v6531_v55 }
 0xa89   :  { %v3452_v60 = vsub.f32 1.0, %v3444_v41  ;;  %v3377_v8 = vmul.f32 %v3369_v29, %v9158_v42  ;;  %v3227_v22 = vsel %vm9230_vm9, %v9170_v24, %v3223_v43  ;;  %v9261_v24 = vpop.eup %6760  ;;  %3808 = vmatpush.bf16.msrb.mxu2 %v6545_v5  ;;  %v6518_v5 = vld [vmem:[%s10121_s9 + $0x218] sm:$0xff]  ;;  %vm3463_vm9 = vcmp.lt.f32.partialorder %v9120_v35, 0.0 }
 0xa8a   :  { %v9218_v59 = vadd.f32 1.0, %v3206_v37  ;;  %v3453_v57 = vsub.f32 1.0, %v3445_v28  ;;  %v3392_v21 = vmul.f32 %v5757_v48, %v9140_v4  ;;  %v9250_v41 = vsel %vm3229_vm10, %v3231_v27, %v3227_v22  ;;  %v6544_v48 = vld [vmem:[%s10121_s9 + $0x2e8] sm:$0xff] }
 0xa8b   :  { %v3468_v44 = vsub.f32 0.0, %v3452_v60  ;;  %v5758_v49 = vadd.f32 -0.28449672, %v3377_v8  ;;  %3786 = vmatpush.bf16.msrb.mxu0 %v6523_v62  ;;  %v3339_v30 = vmul.f32 1.0614054, %v9250_v41  ;;  %3768 = vmatpush.bf16.msrb.mxu3 %v6519_v7  ;;  %v9276_v45 = vmul.f32 %v3414_v1, %v9192_v63 }
 0xa8c   :  { %6762 = vrcp.f32 %v9218_v59  ;;  %v3469_v25 = vsub.f32 0.0, %v3453_v57  ;;  %v3273_v37 = vand.u32 2147483647, %v9218_v59  ;;  %v3400_v28 = vadd.f32 0.2548296, %v3392_v21  ;;  %v6543_v21 = vld [vmem:[%s10121_s9 + $0x2e0] sm:$0xff] }
 0xa8d   :  { %v3476_v36 = vsel %vm3460_vm5, %v3468_v44, %v3452_v60  ;;  %v3393_v9 = vmul.f32 %v5758_v49, %v9158_v42  ;;  %v3275_v29 = vand.u32 2147483648, %v9218_v59  ;;  %6764 = vpow2.f32 %v3427_v52  ;;  %3809 = vmatpush.bf16.msrb.mxu2 %v6544_v48 }
 0xa8e   :  { %v3477_v34 = vsel %vm3461_vm7, %v3469_v25, %v3453_v57  ;;  %v3484_v20 = vadd.f32 1.0, %v3476_v36  ;;  %v3408_v60 = vmul.f32 %v3400_v28, %v9140_v4  ;;  %v3280_v57 = vmul.f32 %v9261_v24, %v9204_v50  ;;  %v6517_v28 = vld [vmem:[%s10121_s9 + $0x210] sm:$0xff] }
 0xa8f   :  { %v3485_v46 = vadd.f32 1.0, %v3477_v34  ;;  %v3401_v40 = vadd.f32 0.2548296, %v3393_v9  ;;  %v5744_v43 = vadd.f32 -1.4531521, %v3339_v30  ;;  %vm3269_vm14 = vweird.f32 %v9218_v59  ;;  %3769 = vmatpush.bf16.msrb.mxu3 %v6518_v5  ;;  %v3176_v34 = vpop.f32.mrf.mxu2 }
 0xa90   :  { %v3415_v4 = vsub.f32 0.0, %v9146_v61  ;;  %v3448_v52 = vmul.f32 %v9155_v39, %v3408_v60  ;;  %vm9283_vm15 = vcmp.eq.f32.partialorder %v3273_v37, 8.507059e+37  ;;  %v3276_v55 = vor.u32 1.1754944e-38, %v3275_v29  ;;  %v6575_v60 = vld [vmem:[%s10119_s7 + $0x3e4] sm:$0xf] }
 0xa91   :  { %v3409_v44 = vmul.f32 %v3401_v40, %v9158_v42  ;;  %v9291_v63 = vmul.f32 %v3484_v20, %v9025_v14  ;;  %v9294_v25 = vmul.f32 %v3485_v46, %v9027_v16  ;;  %v3355_v39 = vmul.f32 %v5744_v43, %v9250_v41  ;;  %3810 = vmatpush.bf16.msrb.mxu2 %v6543_v21  ;;  %v6542_v40 = vld [vmem:[%s10121_s9 + $0x2d8] sm:$0xff] }
 0xa92   :  { %v9271_v8 = vpop.eup %6762  ;;  %v3281_v42 = vsub.f32 1.0, %v3280_v57  ;;  %v3456_v49 = vsub.f32 1.0, %v3448_v52  ;;  %v3290_v37 = vand.u32 2147483648, %v9204_v50  ;;  %vm3285_vm1 = vweird.f32 %v9261_v24  ;;  %v6102_v52 = vld [vmem:[%s10119_s7 + $0x3f0] sm:$0xf0] }
 0xa93   :  { %v3265_v27 = vmul.f32 %v9271_v8, %v9218_v59  ;;  %v3449_v22 = vmul.f32 %v9199_v17, %v3409_v44  ;;  %v3363_v14 = vadd.f32 1.4214138, %v3355_v39  ;;  %v3288_v16 = vand.u32 2147483647, %v9204_v50  ;;  %v9308_v9 = vpop.eup %6764  ;;  %vm3286_vm4 = vmor %vm3284_vm3, %vm3285_vm1  ;;  %v6108_v44 = vld [vmem:[%s10119_s7 + $0x3e8] sm:$0xf]  ;;  %3770 = vmatpush.bf16.msrb.mxu3 %v6517_v28 }
 0xa94   :  { %v3282_v1 = vmul.f32 %v9261_v24, %v3281_v42  ;;  %v3472_v29 = vsub.f32 0.0, %v3456_v49  ;;  %vm3270_vm2 = vweird.f32 %v9271_v8  ;;  %v3291_v30 = vor.u32 1.1754944e-38, %v3290_v37  ;;  %v6578_v59 = vld [vmem:[%s10119_s7 + $0x3f4] sm:$0xf0] }
 0xa95   :  { %v3266_v36 = vsub.f32 1.0, %v3265_v27  ;;  %v3457_v17 = vsub.f32 1.0, %v3449_v22  ;;  %v3371_v20 = vmul.f32 %v3363_v14, %v9250_v41  ;;  %v9328_v50 = vadd.f32 %v3176_v34, %v2958_v3  ;;  %vm3271_vm5 = vmor %vm3269_vm14, %vm3270_vm2  ;;  %v6516_v3 = vld [vmem:[%s10121_s9 + $0x208] sm:$0xff]  ;;  %3811 = vmatpush.bf16.msrb.mxu2 %v6542_v40 }
 0xa96   :  { %v3283_v46 = vadd.f32 %v9261_v24, %v3282_v1  ;;  %v3480_v57 = vsel %vm3464_vm11, %v3472_v29, %v3456_v49  ;;  %vm3289_vm7 = vcmp.eq.f32.partialorder %v3288_v16, 8.507059e+37  ;;  %v3423_v21 = vmul.f32 %v3415_v4, %v9146_v61  ;;  %v6086_v49 = vld [vmem:[%s10119_s7 + $0x3d0] sm:$0xf0]  ;;  %v6092_v4 = vld [vmem:[%s10119_s7 + $0x3c8] sm:$0xf] }
 0xa97   :  { %v3267_v7 = vmul.f32 %v9271_v8, %v3266_v36  ;;  %v3473_v48 = vsub.f32 0.0, %v3457_v17  ;;  %v3488_v10 = vadd.f32 1.0, %v3480_v57  ;;  %v5752_v27 = vadd.f32 -0.28449672, %v3371_v20  ;;  %v6574_v36 = vld [vmem:[%s10119_s7 + $0x3d4] sm:$0xf0]  ;;  %3771 = vmatpush.bf16.msrb.mxu3 %v6516_v3 }
 0xa98   :  { %v3287_v23 = vsel %vm3286_vm4, %v9261_v24, %v3283_v46  ;;  %v6571_v24 = vld [vmem:[%s10119_s7 + $0x3c4] sm:$0xf]  ;;  %v9377_v62 = vmul.f32 0.70710677, %v9328_v50  ;;  %v6109_v28 = vor.u32 %v6578_v59, %v6108_v44  ;;  %v6076_v40 = vld [vmem:[%s10119_s7 + $0x3a8] sm:$0xf] }
 0xa99   :  { %v3268_v43 = vadd.f32 %v9271_v8, %v3267_v7  ;;  %v3481_v5 = vsel %vm3465_vm13, %v3473_v48, %v3457_v17  ;;  %v9347_v42 = vsel %vm3289_vm7, %v3291_v30, %v3287_v23  ;;  %v3496_v32 = vmul.f32 %v3488_v10, %v9067_v15  ;;  %v6541_v15 = vld [vmem:[%s10121_s9 + $0x2d0] sm:$0xff]  ;;  %v6567_v29 = vld [vmem:[%s10119_s7 + $0x3a4] sm:$0xf] }
 0xa9a   :  { %v3489_v22 = vadd.f32 1.0, %v3481_v5  ;;  %v3343_v14 = vmul.f32 1.0614054, %v9347_v42  ;;  %v9385_v20 = vand.u32 2147483647, %v9377_v62  ;;  %v6089_v46 = vor.u32 %v6571_v24, %v6086_v49  ;;  %4065 = vmatpush.bf16.msrb.mxu1 %v6109_v28  ;;  %v6515_v57 = vld [vmem:[%s10121_s9 + $0x200] sm:$0xff]  ;;  %3812 = vmatpush.bf16.msrb.mxu2 %v6541_v15 }
 0xa9b   :  { %v3272_v39 = vsel %vm3271_vm5, %v9271_v8, %v3268_v43  ;;  %v3387_v8 = vmul.f32 %v5752_v27, %v9250_v41  ;;  %v3500_v1 = vpack.c.bf16 %v3496_v32, %v9291_v63  ;;  %v6093_v63 = vor.u32 %v6574_v36, %v6092_v4  ;;  %v6570_v43 = vld [vmem:[%s10119_s7 + $0x3b4] sm:$0xf0]  ;;  %v6563_v23 = vld [vmem:[%s10119_s7 + $0x384] sm:$0xf]  ;;  %3772 = vmatpush.bf16.msrb.mxu3 %v6515_v57  ;;  %v6060_v32 = vld [vmem:[%s10119_s7 + $0x388] sm:$0xf] }
 0xa9c   :  { %v9363_v61 = vsel %vm9283_vm15, %v3276_v55, %v3272_v39  ;;  %v6105_v55 = vor.u32 %v6575_v60, %v6102_v52  ;;  %v3497_v16 = vmul.f32 %v3489_v22, %v9071_v18  ;;  %v5748_v7 = vadd.f32 -1.4531521, %v3343_v14  ;;  %v6070_v18 = vld [vmem:[%s10119_s7 + $0x3b0] sm:$0xf0]  ;;  %v6540_v52 = vld [vmem:[%s10121_s9 + $0x2c8] sm:$0xff] }
 0xa9d   :  { %v3342_v37 = vmul.f32 1.0614054, %v9363_v61  ;;  %v3395_v34 = vadd.f32 0.2548296, %v3387_v8  ;;  %3787 = vmatmul.bf16.vlgmr.msrb.gmra.mxu0 %v3500_v1  ;;  %v9411_v10 = vmul.f32 1.442695, %v9276_v45  ;;  %v6073_v59 = vor.u32 %v6567_v29, %v6070_v18 }
 0xa9e   :  { %4051 = vmatpush.bf16.msra.mxu0 %v6105_v55  ;;  %v3501_v30 = vpack.c.bf16 %v3497_v16, %v9294_v25  ;;  %v3359_v25 = vmul.f32 %v5748_v7, %v9347_v42  ;;  %v3435_v27 = vmul.f32 1.442695, %v3423_v21  ;;  %4066 = vmatpush.bf16.msrb.mxu1 %v6093_v63  ;;  %v6077_v24 = vor.u32 %v6570_v43, %v6076_v40  ;;  %v6054_v45 = vld [vmem:[%s10119_s7 + $0x390] sm:$0xf0]  ;;  %v6577_v21 = vld [vmem:[%s10119_s7 + $0x3ec] sm:$0xf0] }
 0xa9f   :  { %v5747_v17 = vadd.f32 -1.4531521, %v3342_v37  ;;  %v3403_v60 = vmul.f32 %v3395_v34, %v9250_v41  ;;  %v3210_v41 = vmul.f32 0.3275911, %v9385_v20  ;;  %v6566_v22 = vld [vmem:[%s10119_s7 + $0x394] sm:$0xf0]  ;;  %3813 = vmatpush.bf16.msrb.mxu2 %v6540_v52  ;;  %v6057_v16 = vor.u32 %v6563_v23, %v6054_v45 }
 0xaa0   :  { %3801 = vmatmul.bf16.vlgmr.msra.gmra.mxu1 %v3501_v30  ;;  %v3367_v5 = vadd.f32 1.4214138, %v3359_v25  ;;  %v6539_v8 = vld [vmem:[%s10121_s9 + $0x2c0] sm:$0xff]  ;;  %v994_v4 = vand.u32 65535, %v8976_v26  ;;  %v9440_v36 = vmul.f32 0.5, %v9052_v58  ;;  %v6061_v29 = vor.u32 %v6566_v22, %v6060_v32 }
 0xaa1   :  { %v3358_v48 = vmul.f32 %v5747_v17, %v9363_v61  ;;  %v9408_v44 = vmul.f32 %v9308_v9, %v3403_v60  ;;  %v9416_v39 = vadd.f32 1.0, %v3210_v41  ;;  %v6100_v9 = vld [vmem:[%s10119_s7 + $0x3e0] sm:$0xf]  ;;  %v6559_v37 = vld [vmem:[%s10119_s7 + $0x364] sm:$0xf]  ;;  %v3418_v60 = vsub.f32 0.0, %v9385_v20 }
 0xaa2   :  { %4052 = vmatpush.bf16.msra.mxu0 %v6089_v46  ;;  %v3375_v49 = vmul.f32 %v3367_v5, %v9347_v42  ;;  %v6038_v14 = vld [vmem:[%s10119_s7 + $0x370] sm:$0xf0]  ;;  %v6044_v26 = vld [vmem:[%s10119_s7 + $0x368] sm:$0xf]  ;;  %v6101_v58 = vor.u32 %v6577_v21, %v6100_v9  ;;  %v6084_v34 = vld [vmem:[%s10119_s7 + $0x3c0] sm:$0xf]  ;;  %4067 = vmatpush.bf16.msrb.mxu1 %v6077_v24 }
 0xaa3   :  { %v3366_v3 = vadd.f32 1.4214138, %v3358_v48  ;;  %6766 = vrcp.f32 %v9416_v39  ;;  %v3451_v15 = vsub.f32 1.0, %v9408_v44  ;;  %v6573_v28 = vld [vmem:[%s10119_s7 + $0x3cc] sm:$0xf0]  ;;  %3814 = vmatpush.bf16.msrb.mxu2 %v6539_v8  ;;  %v6041_v23 = vor.u32 %v6559_v37, %v6038_v14 }
 0xaa4   :  { %v5756_v1 = vadd.f32 -0.28449672, %v3375_v49  ;;  %6768 = vpow2.f32 %v3435_v27  ;;  %v6562_v17 = vld [vmem:[%s10119_s7 + $0x374] sm:$0xf0]  ;;  %v6576_v7 = vld [vmem:[%s10119_s7 + $0x3ec] sm:$0xf]  ;;  %4037 = vmatpush.bf16.msra.mxu3 %v6101_v58  ;;  %v6085_v57 = vor.u32 %v6573_v28, %v6084_v34  ;;  %vm3329_vm13 = vweird.f32 %v9416_v39 }
 0xaa5   :  { %v3374_v55 = vmul.f32 %v3366_v3, %v9363_v61  ;;  %v6110_v46 = vld [vmem:[%s10119_s7 + $0x3f8] sm:$0xf0]  ;;  %v9474_v63 = vld [vmem:[%s10119_s7 + $0x344] sm:$0xf]  ;;  %v9479_v18 = vld [vmem:[%s10119_s7 + $0x350] sm:$0xf0]  ;;  %v6045_v5 = vor.u32 %v6562_v17, %v6044_v26  ;;  %v996_v26 = vcvt.s32.f32 %v994_v4  ;;  %6770 = vpow2.f32 %v9411_v10 }
 0xaa6   :  { %4053 = vmatpush.bf16.msra.mxu0 %v6073_v59  ;;  %v3391_v30 = vmul.f32 %v5756_v1, %v9347_v42  ;;  %v9484_v40 = vld [vmem:[%s10119_s7 + $0x348] sm:$0xf]  ;;  %v6113_v48 = vor.u32 %v6576_v7, %v6110_v46  ;;  %v6068_v25 = vld [vmem:[%s10119_s7 + $0x3a0] sm:$0xf]  ;;  %v6569_v41 = vld [vmem:[%s10119_s7 + $0x3ac] sm:$0xf0]  ;;  %4068 = vmatpush.bf16.msrb.mxu1 %v6061_v29 }
 0xaa7   :  { %v3467_v52 = vsub.f32 0.0, %v3451_v15  ;;  %v5755_v44 = vadd.f32 -0.28449672, %v3374_v55  ;;  %v6558_v59 = vld [vmem:[%s10119_s7 + $0x354] sm:$0xf0]  ;;  %v6069_v49 = vor.u32 %v6569_v41, %v6068_v25  ;;  %v3335_v55 = vand.u32 2147483648, %v9416_v39 }
 0xaa8   :  { %v3399_v27 = vadd.f32 0.2548296, %v3391_v30  ;;  %4079 = vmatpush.bf16.msra.mxu2 %v6113_v48  ;;  %v6572_v24 = vld [vmem:[%s10119_s7 + $0x3cc] sm:$0xf]  ;;  %v6094_v45 = vld [vmem:[%s10119_s7 + $0x3d8] sm:$0xf0]  ;;  %4038 = vmatpush.bf16.msra.mxu3 %v6085_v57  ;;  %v6029_v29 = vor.u32 %v6558_v59, %v9484_v40 }
 0xaa9   :  { %v9492_v43 = vpop.eup %6766  ;;  %v3333_v21 = vand.u32 2147483647, %v9416_v39  ;;  %v6097_v32 = vor.u32 %v6572_v24, %v6094_v45  ;;  %v6052_v22 = vld [vmem:[%s10119_s7 + $0x380] sm:$0xf]  ;;  %v6568_v8 = vld [vmem:[%s10119_s7 + $0x3ac] sm:$0xf]  ;;  %v3475_v58 = vsel %vm3459_vm8, %v3467_v52, %v3451_v15  ;;  %v3390_v34 = vmul.f32 %v5755_v44, %v9363_v61 }
 0xaaa   :  { %4054 = vmatpush.bf16.msra.mxu0 %v6057_v16  ;;  %v3325_v3 = vmul.f32 %v9492_v43, %v9416_v39  ;;  %v3407_v9 = vmul.f32 %v3399_v27, %v9347_v42  ;;  %v6769_v37 = vpop.eup %6768  ;;  %v6025_v42 = vor.u32 %v9474_v63, %v9479_v18  ;;  %v6565_v1 = vld [vmem:[%s10119_s7 + $0x38c] sm:$0xf0]  ;;  %v6078_v16 = vld [vmem:[%s10119_s7 + $0x3b8] sm:$0xf0]  ;;  %v6551_v17 = vld [vmem:[%s10119_s7 + $0x324] sm:$0xf]  ;;  %vm3330_vm10 = vweird.f32 %v9492_v43  ;;  %4069 = vmatpush.bf16.msrb.mxu1 %v6045_v5 }
 0xaab   :  { %v6012_v4 = vld [vmem:[%s10119_s7 + $0x328] sm:$0xf]  ;;  %v6554_v15 = vld [vmem:[%s10119_s7 + $0x334] sm:$0xf0]  ;;  %v6081_v30 = vor.u32 %v6568_v8, %v6078_v16  ;;  %v6053_v18 = vor.u32 %v6565_v1, %v6052_v22  ;;  %v6564_v57 = vld [vmem:[%s10119_s7 + $0x38c] sm:$0xf]  ;;  %v6009_v39 = vor.u32 %v6551_v17, %v6006_v54 }
 0xaac   :  { %v3326_v14 = vsub.f32 1.0, %v3325_v3  ;;  %v3447_v28 = vmul.f32 %v6769_v37, %v3407_v9  ;;  %4080 = vmatpush.bf16.msra.mxu2 %v6097_v32  ;;  %4039 = vmatpush.bf16.msra.mxu3 %v6069_v49  ;;  %v6062_v48 = vld [vmem:[%s10119_s7 + $0x398] sm:$0xf0]  ;;  %vm9553_vm14 = vcmp.eq.f32.partialorder %v3333_v21, 8.507059e+37  ;;  %v6036_v52 = vld [vmem:[%s10119_s7 + $0x360] sm:$0xf]  ;;  %vm3331_vm15 = vmor %vm3329_vm13, %vm3330_vm10  ;;  %v6013_v45 = vor.u32 %v6554_v15, %v6012_v4 }
 0xaad   :  { %v9530_v7 = vpop.xlane.xlu0 %998  ;;  %v6561_v44 = vld [vmem:[%s10119_s7 + $0x36c] sm:$0xf0]  ;;  %v3483_v27 = vadd.f32 1.0, %v3475_v58  ;;  %v6547_v3 = vld [vmem:[%s10119_s7 + $0x304] sm:$0xf]  ;;  %v6065_v49 = vor.u32 %v6564_v57, %v6062_v48  ;;  %v3183_v35 = vmul.f32 0.5, %v9106_v51  ;;  %v3426_v51 = vmul.f32 %v3418_v60, %v9385_v20 }
 0xaae   :  { %4055 = vmatpush.bf16.msra.mxu0 %v6041_v23  ;;  %v3327_v46 = vmul.f32 %v9492_v43, %v3326_v14  ;;  %vm1000_vm11 = vcmp.eq.f32.partialorder %v8980_v6, %v9530_v7  ;;  %v3455_v63 = vsub.f32 1.0, %v3447_v28  ;;  %v3336_v6 = vor.u32 1.1754944e-38, %v3335_v55  ;;  %v5990_v5 = vld [vmem:[%s10119_s7 + $0x310] sm:$0xf0]  ;;  %4070 = vmatpush.bf16.msrb.mxu1 %v6029_v29  ;;  %v5996_v9 = vld [vmem:[%s10119_s7 + $0x308] sm:$0xf] }
 0xaaf   :  { %v1001_v40 = vsel %vm1000_vm11, %v996_v26, inf  ;;  %v3398_v59 = vadd.f32 0.2548296, %v3390_v34  ;;  %v6550_v21 = vld [vmem:[%s10119_s7 + $0x314] sm:$0xf0]  ;;  %v3491_v16 = vmul.f32 %v3483_v27, %v9440_v36  ;;  %v5993_v26 = vor.u32 %v6547_v3, %v5990_v5 }
 0xab0   :  { %v3328_v25 = vadd.f32 %v9492_v43, %v3327_v46  ;;  %1002 = vmin.xlane.f32.xlu1 %v1001_v40  ;;  %v3471_v23 = vsub.f32 0.0, %v3455_v63  ;;  %4081 = vmatpush.bf16.msra.mxu2 %v6081_v30  ;;  %v6020_v8 = vld [vmem:[%s10119_s7 + $0x340] sm:$0xf]  ;;  %v6557_v37 = vld [vmem:[%s10119_s7 + $0x34c] sm:$0xf0]  ;;  %v5997_v29 = vor.u32 %v6550_v21, %v5996_v9  ;;  %vm3462_vm2 = vcmp.lt.f32.partialorder %v9174_v19, 0.0 }
 0xab1   :  { %4040 = vmatpush.bf16.msra.mxu3 %v6053_v18  ;;  %v6560_v14 = vld [vmem:[%s10119_s7 + $0x36c] sm:$0xf]  ;;  %v6046_v1 = vld [vmem:[%s10119_s7 + $0x378] sm:$0xf0]  ;;  %v6021_v17 = vor.u32 %v6557_v37, %v6020_v8  ;;  %v6004_v10 = vld [vmem:[%s10119_s7 + $0x320] sm:$0xf]  ;;  %v3406_v4 = vmul.f32 %v3398_v59, %v9363_v61  ;;  %v6771_v61 = vpop.eup %6770  ;;  %v1005_v19 = vcvt.f32.s32 %v9530_v7 }
 0xab2   :  { %4056 = vmatpush.bf16.msra.mxu0 %v6025_v42  ;;  %v3332_v24 = vsel %vm3331_vm15, %v9492_v43, %v3328_v25  ;;  %v3479_v32 = vsel %vm3463_vm9, %v3471_v23, %v3455_v63  ;;  %v6037_v43 = vor.u32 %v6561_v44, %v6036_v52  ;;  %4071 = vmatpush.bf16.msrb.mxu1 %v6013_v45  ;;  %v6553_v54 = vld [vmem:[%s10119_s7 + $0x32c] sm:$0xf0]  ;;  %v6556_v60 = vld [vmem:[%s10119_s7 + $0x34c] sm:$0xf]  ;;  %v6030_v30 = vld [vmem:[%s10119_s7 + $0x358] sm:$0xf0] }
 0xab3   :  { %v9582_v22 = vsel %vm9553_vm14, %v3336_v6, %v3332_v24  ;;  %v3487_v55 = vadd.f32 1.0, %v3479_v32  ;;  %v6049_v46 = vor.u32 %v6560_v14, %v6046_v1  ;;  %v3441_v40 = vmul.f32 1.442695, %v3426_v51  ;;  %v5988_v25 = vld [vmem:[%s10119_s7 + $0x300] sm:$0xf] }
 0xab4   :  { %v3346_v42 = vmul.f32 1.0614054, %v9582_v22  ;;  %4082 = vmatpush.bf16.msra.mxu2 %v6065_v49  ;;  %v6005_v57 = vor.u32 %v6553_v54, %v6004_v10  ;;  %v6033_v48 = vor.u32 %v6556_v60, %v6030_v30  ;;  %v3446_v6 = vmul.f32 %v6771_v61, %v3406_v4  ;;  %v6549_v44 = vld [vmem:[%s10119_s7 + $0x30c] sm:$0xf0]  ;;  %v6552_v27 = vld [vmem:[%s10119_s7 + $0x32c] sm:$0xf] }
 0xab5   :  { %v1014_v58 = vpop.xlane.xlu0 %1013  ;;  %v3495_v34 = vmul.f32 %v3487_v55, %v3183_v35  ;;  %4041 = vmatpush.bf16.msra.mxu3 %v6037_v43  ;;  %v6014_v23 = vld [vmem:[%s10119_s7 + $0x338] sm:$0xf0]  ;;  %6772 = vpow2.f32 %v3441_v40  ;;  %v5989_v3 = vor.u32 %v6549_v44, %v5988_v25  ;;  %v6548_v45 = vld [vmem:[%s10119_s7 + $0x30c] sm:$0xf]  ;;  %vm3466_vm3 = vcmp.lt.f32.partialorder %v9377_v62, 0.0 }
 0xab6   :  { %4057 = vmatpush.bf16.msra.mxu0 %v6009_v39  ;;  %v5751_v28 = vadd.f32 -1.4531521, %v3346_v42  ;;  %vm1018_vm1 = vcmp.eq.f32.partialorder %v8991_v33, %v1014_v58  ;;  %4072 = vmatpush.bf16.msrb.mxu1 %v5997_v29  ;;  %v6017_v5 = vor.u32 %v6552_v27, %v6014_v23  ;;  %v3454_v59 = vsub.f32 1.0, %v3446_v6  ;;  %v5998_v9 = vld [vmem:[%s10119_s7 + $0x318] sm:$0xf0] }
 0xab7   :  { %v1020_v36 = vsel %vm1018_vm1, %v7198_v47, 4  ;;  %v3499_v33 = vpack.c.bf16 %v3495_v34, %v3491_v16  ;;  %v6001_v49 = vor.u32 %v6548_v45, %v5998_v9  ;;  %v3182_v16 = vmul.f32 0.5, %v9162_v0  ;;  %v6636_v61 = vld [vmem:[%s10122_s10 + $0x2] ss:$0 sm:$0xff] }
 0xab8   :  { %v3362_v15 = vmul.f32 %v5751_v28, %v9582_v22  ;;  %v9614_v20 = vsel %vm945_vm6, %v1020_v36, 2147483647  ;;  %4083 = vmatpush.bf16.msra.mxu2 %v6049_v46  ;;  %v3470_v32 = vsub.f32 0.0, %v3454_v59  ;;  %v1006_v51 = vshll.u32 %v1005_v19, 16 }
 0xab9   :  { %v1024_v63 = vshra.s32 %v9614_v20, 16  ;;  %3773 = vmatmul.bf16.vlgmr.msrb.gmra.mxu3 %v3499_v33  ;;  %4073 = vmatmul.bf16.vlgmr.msrb.gmra.mxu1 %v7626_v38 }
 0xaba   :  { %4058 = vmatpush.bf16.msra.mxu0 %v5993_v26  ;;  %v3370_v18 = vadd.f32 1.4214138, %v3362_v15  ;;  %4042 = vmatpush.bf16.msra.mxu3 %v6021_v17  ;;  %v3478_v14 = vsel %vm3462_vm2, %v3470_v32, %v3454_v59  ;;  %v3186_v26 = vmul.f32 0.5, %v9328_v50  ;;  %v1023_v50 = vand.u32 65535, %v9614_v20  ;;  %v9674_v15 = vld [vmem:[%s10120_s8 + $0xc] sm:$0xf] }
 0xabb   :  { %v1026_v41 = vcvt.s32.f32 %v1024_v63  ;;  %v6773_v8 = vpop.eup %6772  ;;  %v3486_v42 = vadd.f32 1.0, %v3478_v14  ;;  %v3870_v60 = vperm.slane %v9674_v15, 1  ;;  %v3871_v30 = vperm.slane %v9674_v15, 2 }
 0xabc   :  { %v3378_v52 = vmul.f32 %v3370_v18, %v9582_v22  ;;  %4084 = vmatpush.bf16.msra.mxu2 %v6033_v48  ;;  %v1025_v4 = vcvt.s32.f32 %v1023_v50 }
 0xabd   :  { %4059 = vmatmul.bf16.vlgmr.msra.gmra.mxu0 %v7626_v38  ;;  %1027 = vmin.xlane.f32.xlu1 %v1026_v41 }
 0xabe   :  { %v5759_v39 = vadd.f32 -0.28449672, %v3378_v52  ;;  %4043 = vmatpush.bf16.msra.mxu3 %v6005_v57 }
 0xac0   :  { %v3394_v24 = vmul.f32 %v5759_v39, %v9582_v22  ;;  %4085 = vmatpush.bf16.msra.mxu2 %v6017_v5 }
 0xac2   :  { %v3402_v21 = vadd.f32 0.2548296, %v3394_v24  ;;  %4044 = vmatpush.bf16.msra.mxu3 %v5989_v3 }
 0xac4   :  { %v3410_v43 = vmul.f32 %v3402_v21, %v9582_v22  ;;  %4086 = vmatpush.bf16.msra.mxu2 %v6001_v49  ;;  %v3494_v22 = vmul.f32 %v3486_v42, %v3182_v16  ;;  %v3869_v16 = vperm.slane %v9674_v15, 0 }
 0xac6   :  { %v3450_v37 = vmul.f32 %v6773_v8, %v3410_v43 }
 0xac8   :  { %v3458_v35 = vsub.f32 1.0, %v3450_v37 }
 0xac9   :  { %4045 = vmatmul.bf16.vlgmr.msra.gmra.mxu3 %v7626_v38 }
 0xaca   :  { %v3474_v55 = vsub.f32 0.0, %v3458_v35 }
 0xacc   :  { %v3482_v1 = vsel %vm3466_vm3, %v3474_v55, %v3458_v35 }
 0xacd   :  { %v3490_v58 = vadd.f32 1.0, %v3482_v1 }
 0xacf   :  { %v3498_v34 = vmul.f32 %v3490_v58, %v3186_v26 }
 0xad1   :  { %v3502_v28 = vpack.c.bf16 %v3498_v34, %v3494_v22 }
 0xad3   :  { %3815 = vmatmul.bf16.vlgmr.msrb.gmra.mxu2 %v3502_v28 }
 0xae3   :  { %4087 = vmatmul.bf16.vlgmr.msra.gmra.mxu2 %v7626_v38 }
 0xb1a   :  { %v3788_v36 = vpop.f32.mrf.mxu0 }
 0xb1d   :  { %v3802_v46 = vpop.f32.mrf.mxu1 }
 0xb22   :  { %v3790_v7 = vpop.f32.mrf.mxu0 }
 0xb23   :  { %v1003_v29 = vpop.xlane.xlu1 %1002 }
 0xb24   :  { %v1004_v17 = vcvt.f32.s32 %v1003_v29 }
 0xb25   :  { %v9666_v10 = vpop.f32.mrf.mxu1 }
 0xb26   :  { %v9653_v62 = vadd.s32 %v1006_v51, %v1004_v17 }
 0xb28   :  { %vm1009_vm4 = vcmp.eq.s32.totalorder %v7198_v47, %v9653_v62 }
 0xb29   :  { %v9661_v0 = vsel %vm1009_vm4, -inf, %v8697_v12 }
 0xb2a   :  { %v1015_v38 = vsel %vm945_vm6, %v9661_v0, -inf }
 0xb2b   :  { %1016 = vmax.xlane.f32.xlu2 %v1015_v38 }
 0xb30   :  { %v9668_v54 = vpop.xlane.xlu1 %1027 }
 0xb31   :  { %vm1029_vm5 = vcmp.eq.f32.partialorder %v1026_v41, %v9668_v54 }
 0xb32   :  { %v1030_v33 = vsel %vm1029_vm5, %v1025_v4, inf }
 0xb33   :  { %1031 = vmin.xlane.f32.xlu2 %v1030_v33 }
 0xb36   :  { %v4074_v18 = vpop.f32.mrf.mxu1 }
 0xb37   :  { %v9683_v40 = vadd.f32 %v4074_v18, %v3871_v30 }
 0xb39   :  { %v9689_v48 = vmul.f32 0.70710677, %v9683_v40 }
 0xb3a   :  { %v4060_v20 = vpop.f32.mrf.mxu0 }
 0xb3b   :  { %v9678_v63 = vadd.f32 %v4060_v20, %v3870_v60  ;;  %v4111_v52 = vand.u32 2147483647, %v9689_v48  ;;  %v6602_v20 = vld [vmem:[%s10121_s9 + $0x3b8] sm:$0xff] }
 0xb3c   :  { %v3774_v25 = vpop.f32.mrf.mxu3  ;;  %4707 = vmatpush.bf16.msra.mxu1 %v6602_v20 }
 0xb3d   :  { %v9686_v57 = vmul.f32 0.70710677, %v9678_v63  ;;  %v3775_v6 = vadd.f32 %v6636_v61, %v3774_v25  ;;  %v4119_v23 = vmul.f32 0.3275911, %v4111_v52  ;;  %v4327_v32 = vsub.f32 0.0, %v4111_v52 }
 0xb3e   :  { %v4076_v5 = vpop.f32.mrf.mxu1 }
 0xb3f   :  { %v4110_v41 = vand.u32 2147483647, %v9686_v57  ;;  %v3789_v27 = vadd.f32 %v3788_v36, %v3775_v6  ;;  %v4127_v24 = vadd.f32 1.0, %v4119_v23  ;;  %v9697_v21 = vadd.f32 %v4076_v5, %v3871_v30  ;;  %v6594_v30 = vld [vmem:[%s10121_s9 + $0x378] sm:$0xff] }
 0xb40   :  { %v4335_v22 = vmul.f32 %v4327_v32, %v4111_v52  ;;  %4693 = vmatpush.bf16.msrb.mxu0 %v6594_v30 }
 0xb41   :  { %v4118_v44 = vmul.f32 0.3275911, %v4110_v41  ;;  %v9693_v59 = vadd.f32 %v3802_v46, %v3789_v27  ;;  %v4326_v9 = vsub.f32 0.0, %v4110_v41  ;;  %v9703_v37 = vmul.f32 0.70710677, %v9697_v21 }
 0xb42   :  { %v4062_v39 = vpop.f32.mrf.mxu0  ;;  %v4172_v36 = vand.u32 2147483647, %v4127_v24  ;;  %vm4168_vm9 = vweird.f32 %v4127_v24  ;;  %v9727_v52 = vmul.f32 1.442695, %v4335_v22 }
 0xb43   :  { %v4126_v3 = vadd.f32 1.0, %v4118_v44  ;;  %v9695_v45 = vadd.f32 %v4062_v39, %v3870_v60  ;;  %v4334_v8 = vmul.f32 %v4326_v9, %v4110_v41  ;;  %v9707_v1 = vand.u32 2147483647, %v9703_v37 }
 0xb44   :  { %v3776_v49 = vpop.f32.mrf.mxu3  ;;  %vm4173_vm14 = vcmp.eq.f32.partialorder %v4172_v36, 8.507059e+37 }
 0xb45   :  { %6774 = vrcp.f32 %v4126_v3  ;;  %v9700_v43 = vmul.f32 0.70710677, %v9695_v45  ;;  %v3777_v35 = vadd.f32 %v6636_v61, %v3776_v49  ;;  %v4157_v42 = vand.u32 2147483647, %v4126_v3 }
 0xb46   :  { %6776 = vrcp.f32 %v4127_v24  ;;  %vm4153_vm7 = vweird.f32 %v4126_v3  ;;  %v4159_v28 = vand.u32 2147483648, %v4126_v3  ;;  %v4343_v19 = vmul.f32 1.442695, %v4334_v8 }
 0xb47   :  { %v4114_v14 = vand.u32 2147483647, %v9700_v43  ;;  %v4123_v51 = vmul.f32 0.3275911, %v9707_v1  ;;  %v3791_v38 = vadd.f32 %v3790_v7, %v3777_v35  ;;  %vm9713_vm8 = vcmp.eq.f32.partialorder %v4157_v42, 8.507059e+37 }
 0xb48   :  { %v4174_v7 = vand.u32 2147483648, %v4127_v24  ;;  %v4160_v6 = vor.u32 1.1754944e-38, %v4159_v28  ;;  %v4331_v9 = vsub.f32 0.0, %v9707_v1 }
 0xb49   :  { %v4122_v34 = vmul.f32 0.3275911, %v4114_v14  ;;  %v9717_v60 = vadd.f32 1.0, %v4123_v51  ;;  %v4330_v25 = vsub.f32 0.0, %v4114_v14  ;;  %v9737_v49 = vadd.f32 %v9666_v10, %v3791_v38 }
 0xb4a   :  { %v4175_v5 = vor.u32 1.1754944e-38, %v4174_v7  ;;  %v6601_v7 = vld [vmem:[%s10121_s9 + $0x3b0] sm:$0xff] }
 0xb4b   :  { %v6775_v55 = vpop.eup %6774  ;;  %v9711_v46 = vadd.f32 1.0, %v4122_v34  ;;  %v9744_v8 = vmul.f32 %v4330_v25, %v4114_v14  ;;  %vm4228_vm3 = vweird.f32 %v9717_v60  ;;  %v4234_v20 = vand.u32 2147483648, %v9717_v60  ;;  %4708 = vmatpush.bf16.msra.mxu1 %v6601_v7 }
 0xb4c   :  { %v6777_v26 = vpop.eup %6776  ;;  %v4149_v58 = vmul.f32 %v6775_v55, %v4126_v3  ;;  %v4046_v50 = vpop.f32.mrf.mxu3  ;;  %vm4154_vm10 = vweird.f32 %v6775_v55  ;;  %v4339_v7 = vmul.f32 %v4331_v9, %v9707_v1  ;;  %v6599_v1 = vld [vmem:[%s10121_s9 + $0x3a0] sm:$0xff] }
 0xb4d   :  { %v4164_v29 = vmul.f32 %v6777_v26, %v4127_v24  ;;  %6778 = vrcp.f32 %v9711_v46  ;;  %vm4169_vm11 = vweird.f32 %v6777_v26  ;;  %v9729_v44 = vadd.f32 %v4046_v50, %v3869_v16  ;;  %vm4155_vm13 = vmor %vm4153_vm7, %vm4154_vm10 }
 0xb4e   :  { %v4150_v17 = vsub.f32 1.0, %v4149_v58  ;;  %6780 = vrcp.f32 %v9717_v60  ;;  %v4217_v23 = vand.u32 2147483647, %v9711_v46  ;;  %vm4170_vm15 = vmor %vm4168_vm9, %vm4169_vm11  ;;  %vm4213_vm1 = vweird.f32 %v9711_v46 }
 0xb4f   :  { %v4165_v33 = vsub.f32 1.0, %v4164_v29  ;;  %6782 = vpow2.f32 %v4343_v19  ;;  %v4219_v42 = vand.u32 2147483648, %v9711_v46  ;;  %v9751_v58 = vmul.f32 0.70710677, %v9729_v44 }
 0xb50   :  { %v4151_v18 = vmul.f32 %v6775_v55, %v4150_v17  ;;  %vm9755_vm2 = vcmp.eq.f32.partialorder %v4217_v23, 8.507059e+37  ;;  %v4232_v17 = vand.u32 2147483647, %v9717_v60 }
 0xb51   :  { %v4166_v61 = vmul.f32 %v6777_v26, %v4165_v33  ;;  %v9770_v33 = vand.u32 2147483647, %v9751_v58 }
 0xb52   :  { %v4152_v41 = vadd.f32 %v6775_v55, %v4151_v18  ;;  %vm9800_vm9 = vcmp.eq.f32.partialorder %v4232_v17, 8.507059e+37 }
 0xb53   :  { %v4167_v27 = vadd.f32 %v6777_v26, %v4166_v61  ;;  %v6779_v35 = vpop.eup %6778 }
 0xb54   :  { %v4156_v39 = vsel %vm4155_vm13, %v6775_v55, %v4152_v41  ;;  %v4048_v10 = vpop.f32.mrf.mxu3  ;;  %v6781_v22 = vpop.eup %6780  ;;  %vm4214_vm5 = vweird.f32 %v6779_v35  ;;  %v4117_v41 = vmul.f32 0.3275911, %v9770_v33 }
 0xb55   :  { %v9741_v32 = vsel %vm9713_vm8, %v4160_v6, %v4156_v39  ;;  %v4171_v3 = vsel %vm4170_vm15, %v6777_v26, %v4167_v27  ;;  %v4209_v26 = vmul.f32 %v6779_v35, %v9711_v46  ;;  %v9759_v19 = vadd.f32 %v4048_v10, %v3869_v16  ;;  %v9766_v38 = vpop.eup %6782  ;;  %v6592_v10 = vld [vmem:[%s10121_s9 + $0x368] sm:$0xff]  ;;  %vm4215_vm8 = vmor %vm4213_vm1, %vm4214_vm5 }
 0xb56   :  { %v4254_v55 = vmul.f32 1.0614054, %v9741_v32  ;;  %v9747_v24 = vsel %vm4173_vm14, %v4175_v5, %v4171_v3  ;;  %v3816_v14 = vpop.f32.mrf.mxu2  ;;  %v4224_v51 = vmul.f32 %v6781_v22, %v9717_v60  ;;  %vm4229_vm7 = vweird.f32 %v6781_v22 }
 0xb57   :  { %v4255_v34 = vmul.f32 1.0614054, %v9747_v24  ;;  %v9764_v36 = vadd.f32 %v3816_v14, %v9693_v59  ;;  %v4210_v4 = vsub.f32 1.0, %v4209_v26  ;;  %v9775_v18 = vmul.f32 0.70710677, %v9759_v19  ;;  %v6593_v59 = vld [vmem:[%s10121_s9 + $0x370] sm:$0xff]  ;;  %vm4230_vm10 = vmor %vm4228_vm3, %vm4229_vm7 }
 0xb58   :  { %v6115_v29 = vadd.f32 -1.4531521, %v4254_v55  ;;  %v4225_v30 = vsub.f32 1.0, %v4224_v51  ;;  %4694 = vmatpush.bf16.msrb.mxu0 %v6593_v59  ;;  %v4220_v3 = vor.u32 1.1754944e-38, %v4219_v42  ;;  %v9788_v55 = vadd.f32 1.0, %v4117_v41 }
 0xb59   :  { %v6116_v50 = vadd.f32 -1.4531521, %v4255_v34  ;;  %v4211_v25 = vmul.f32 %v6779_v35, %v4210_v4  ;;  %v9786_v23 = vand.u32 2147483647, %v9775_v18  ;;  %v6600_v34 = vld [vmem:[%s10121_s9 + $0x3a8] sm:$0xff]  ;;  %v4235_v42 = vor.u32 1.1754944e-38, %v4234_v20 }
 0xb5a   :  { %v4270_v16 = vmul.f32 %v6115_v29, %v9741_v32  ;;  %v4226_v27 = vmul.f32 %v6781_v22, %v4225_v30  ;;  %6784 = vrcp.f32 %v9788_v55  ;;  %4709 = vmatpush.bf16.msra.mxu1 %v6600_v34  ;;  %v4351_v41 = vmul.f32 1.442695, %v9744_v8  ;;  %v6590_v8 = vld [vmem:[%s10121_s9 + $0x358] sm:$0xff] }
 0xb5b   :  { %v4271_v61 = vmul.f32 %v6116_v50, %v9747_v24  ;;  %v4212_v5 = vadd.f32 %v6779_v35, %v4211_v25  ;;  %6786 = vpow2.f32 %v9727_v52  ;;  %v3872_v52 = vperm.slane %v9674_v15, 3  ;;  %v6598_v34 = vld [vmem:[%s10121_s9 + $0x398] sm:$0xff] }
 0xb5c   :  { %v4278_v6 = vadd.f32 1.4214138, %v4270_v16  ;;  %v4227_v14 = vadd.f32 %v6781_v22, %v4226_v27  ;;  %v4121_v16 = vmul.f32 0.3275911, %v9786_v23  ;;  %4695 = vmatpush.bf16.msrb.mxu0 %v6592_v10  ;;  %v4353_v10 = vmul.f32 1.442695, %v4339_v7 }
 0xb5d   :  { %v4279_v39 = vadd.f32 1.4214138, %v4271_v61  ;;  %v4216_v50 = vsel %vm4215_vm8, %v6779_v35, %v4212_v5  ;;  %v6589_v7 = vld [vmem:[%s10121_s9 + $0x350] sm:$0xff]  ;;  %vm4138_vm13 = vweird.f32 %v9788_v55  ;;  %vm4374_vm14 = vcmp.lt.f32.partialorder %v9686_v57, 0.0 }
 0xb5e   :  { %v4286_v26 = vmul.f32 %v4278_v6, %v9741_v32  ;;  %v3818_v4 = vpop.f32.mrf.mxu2  ;;  %v9812_v17 = vsel %vm9755_vm2, %v4220_v3, %v4216_v50  ;;  %v4231_v30 = vsel %vm4230_vm10, %v6781_v22, %v4227_v14  ;;  %v6591_v22 = vld [vmem:[%s10121_s9 + $0x360] sm:$0xff]  ;;  %v9833_v6 = vadd.f32 1.0, %v4121_v16  ;;  %4710 = vmatpush.bf16.msra.mxu1 %v6599_v1 }
 0xb5f   :  { %v4287_v51 = vmul.f32 %v4279_v39, %v9747_v24  ;;  %v9815_v20 = vadd.f32 %v3818_v4, %v9737_v49  ;;  %v4258_v60 = vmul.f32 1.0614054, %v9812_v17  ;;  %v9820_v59 = vsel %vm9800_vm9, %v4235_v42, %v4231_v30 }
 0xb60   :  { %v6123_v46 = vadd.f32 -0.28449672, %v4286_v26  ;;  %v4259_v49 = vmul.f32 1.0614054, %v9820_v59  ;;  %4696 = vmatpush.bf16.msrb.mxu0 %v6591_v22  ;;  %v9839_v39 = vpop.eup %6784  ;;  %6788 = vrcp.f32 %v9833_v6  ;;  %v9850_v26 = vmul.f32 0.5, %v9678_v63 }
 0xb61   :  { %v6124_v35 = vadd.f32 -0.28449672, %v4287_v51  ;;  %v6119_v25 = vadd.f32 -1.4531521, %v4258_v60  ;;  %v4134_v42 = vmul.f32 %v9839_v39, %v9788_v55  ;;  %v9857_v51 = vmul.f32 0.5, %v9683_v40 }
 0xb62   :  { %v4302_v28 = vmul.f32 %v6123_v46, %v9741_v32  ;;  %v6120_v27 = vadd.f32 -1.4531521, %v4259_v49  ;;  %6790 = vpow2.f32 %v4351_v41  ;;  %v6787_v46 = vpop.eup %6786  ;;  %v4142_v63 = vand.u32 2147483647, %v9788_v55  ;;  %4711 = vmatpush.bf16.msra.mxu1 %v6598_v34 }
 0xb63   :  { %v4303_v61 = vmul.f32 %v6124_v35, %v9747_v24  ;;  %v4274_v3 = vmul.f32 %v6119_v25, %v9812_v17  ;;  %v4135_v35 = vsub.f32 1.0, %v4134_v42  ;;  %6792 = vpow2.f32 %v4353_v10  ;;  %v6586_v42 = vld [vmem:[%s10121_s9 + $0x338] sm:$0xff] }
 0xb64   :  { %v4310_v9 = vadd.f32 0.2548296, %v4302_v28  ;;  %v4275_v29 = vmul.f32 %v6120_v27, %v9820_v59  ;;  %4697 = vmatpush.bf16.msrb.mxu0 %v6590_v8  ;;  %v6597_v28 = vld [vmem:[%s10121_s9 + $0x390] sm:$0xff]  ;;  %vm4139_vm11 = vweird.f32 %v9839_v39  ;;  %v4325_v41 = vsub.f32 0.0, %v9770_v33  ;;  %4679 = vmatpush.bf16.msrb.mxu3 %v6586_v42  ;;  %v6610_v42 = vld [vmem:[%s10121_s9 + $0x3f8] sm:$0xff] }
 0xb65   :  { %v4311_v5 = vadd.f32 0.2548296, %v4303_v61  ;;  %v4282_v4 = vadd.f32 1.4214138, %v4274_v3  ;;  %vm9890_vm15 = vcmp.eq.f32.partialorder %v4142_v63, 8.507059e+37  ;;  %vm4375_vm1 = vcmp.lt.f32.partialorder %v9689_v48, 0.0  ;;  %vm9901_vm2 = vmor %vm4138_vm13, %vm4139_vm11  ;;  %4721 = vmatpush.bf16.msrb.mxu2 %v6610_v42 }
 0xb66   :  { %v4318_v14 = vmul.f32 %v4310_v9, %v9741_v32  ;;  %v4088_v16 = vpop.f32.mrf.mxu2  ;;  %v4283_v30 = vadd.f32 1.4214138, %v4275_v29  ;;  %v9881_v61 = vpop.eup %6788  ;;  %4712 = vmatpush.bf16.msra.mxu1 %v6597_v28  ;;  %vm4378_vm3 = vcmp.lt.f32.partialorder %v9700_v43, 0.0  ;;  %vm4379_vm7 = vcmp.lt.f32.partialorder %v9703_v37, 0.0 }
 0xb67   :  { %v4319_v50 = vmul.f32 %v4311_v5, %v9747_v24  ;;  %v9863_v32 = vadd.f32 %v4088_v16, %v3872_v52  ;;  %v4290_v40 = vmul.f32 %v4282_v4, %v9812_v17  ;;  %v4144_v24 = vand.u32 2147483648, %v9788_v55 }
 0xb68   :  { %v9866_v60 = vmul.f32 %v9766_v38, %v4318_v14  ;;  %v4291_v22 = vmul.f32 %v4283_v30, %v9820_v59  ;;  %v4136_v38 = vmul.f32 %v9839_v39, %v4135_v35  ;;  %v4194_v3 = vmul.f32 %v9881_v61, %v9833_v6  ;;  %4698 = vmatpush.bf16.msrb.mxu0 %v6589_v7  ;;  %v6791_v10 = vpop.eup %6790  ;;  %v6596_v35 = vld [vmem:[%s10121_s9 + $0x388] sm:$0xff] }
 0xb69   :  { %v9876_v49 = vmul.f32 %v6787_v46, %v4319_v50  ;;  %v6127_v25 = vadd.f32 -0.28449672, %v4290_v40  ;;  %v9886_v1 = vmul.f32 0.70710677, %v9863_v32  ;;  %v4145_v14 = vor.u32 1.1754944e-38, %v4144_v24  ;;  %v6588_v50 = vld [vmem:[%s10121_s9 + $0x348] sm:$0xff]  ;;  %v6793_v63 = vpop.eup %6792 }
 0xb6a   :  { %v6128_v9 = vadd.f32 -0.28449672, %v4291_v22  ;;  %v4137_v27 = vadd.f32 %v9839_v39, %v4136_v38  ;;  %v4366_v55 = vsub.f32 1.0, %v9866_v60  ;;  %v4195_v30 = vsub.f32 1.0, %v4194_v3  ;;  %4713 = vmatpush.bf16.msra.mxu1 %v6596_v35 }
 0xb6b   :  { %v4306_v8 = vmul.f32 %v6127_v25, %v9812_v17  ;;  %v9906_v29 = vand.u32 2147483647, %v9886_v1  ;;  %v4367_v4 = vsub.f32 1.0, %v9876_v49  ;;  %v9923_v60 = vmul.f32 0.5, %v9695_v45 }
 0xb6c   :  { %v4307_v16 = vmul.f32 %v6128_v9, %v9820_v59  ;;  %v4141_v46 = vsel %vm9901_vm2, %v9839_v39, %v4137_v27  ;;  %v9926_v24 = vmul.f32 0.5, %v9697_v21  ;;  %v4333_v49 = vmul.f32 %v4325_v41, %v9770_v33  ;;  %4699 = vmatpush.bf16.msrb.mxu0 %v6588_v50  ;;  %v6585_v9 = vld [vmem:[%s10121_s9 + $0x330] sm:$0xff]  ;;  %v6587_v27 = vld [vmem:[%s10121_s9 + $0x340] sm:$0xff] }
 0xb6d   :  { %v4314_v40 = vadd.f32 0.2548296, %v4306_v8  ;;  %v9930_v7 = vsel %vm9890_vm15, %v4145_v14, %v4141_v46  ;;  %v4202_v22 = vand.u32 2147483647, %v9833_v6  ;;  %v4382_v45 = vsub.f32 0.0, %v4366_v55  ;;  %v6595_v33 = vld [vmem:[%s10121_s9 + $0x380] sm:$0xff]  ;;  %4680 = vmatpush.bf16.msrb.mxu3 %v6585_v9 }
 0xb6e   :  { %v4315_v39 = vadd.f32 0.2548296, %v4307_v16  ;;  %v4253_v28 = vmul.f32 1.0614054, %v9930_v7  ;;  %v4120_v21 = vmul.f32 0.3275911, %v9906_v29  ;;  %v4196_v25 = vmul.f32 %v9881_v61, %v4195_v30  ;;  %4714 = vmatpush.bf16.msra.mxu1 %v6595_v33 }
 0xb6f   :  { %v4322_v38 = vmul.f32 %v4314_v40, %v9812_v17  ;;  %v4383_v41 = vsub.f32 0.0, %v4367_v4  ;;  %v4204_v3 = vand.u32 2147483648, %v9833_v6  ;;  %vm4199_vm5 = vweird.f32 %v9881_v61  ;;  %v6584_v30 = vld [vmem:[%s10121_s9 + $0x328] sm:$0xff] }
 0xb70   :  { %v4323_v17 = vmul.f32 %v4315_v39, %v9820_v59  ;;  %v6114_v5 = vadd.f32 -1.4531521, %v4253_v28  ;;  %v9950_v34 = vadd.f32 1.0, %v4120_v21  ;;  %v4197_v14 = vadd.f32 %v9881_v61, %v4196_v25  ;;  %4700 = vmatpush.bf16.msrb.mxu0 %v6587_v27 }
 0xb71   :  { %v4362_v8 = vmul.f32 %v6791_v10, %v4322_v38  ;;  %v4329_v16 = vsub.f32 0.0, %v9786_v23  ;;  %v4390_v10 = vsel %vm4374_vm14, %v4382_v45, %v4366_v55  ;;  %vm4198_vm8 = vweird.f32 %v9833_v6  ;;  %v4090_v55 = vpop.f32.mrf.mxu2  ;;  %4681 = vmatpush.bf16.msrb.mxu3 %v6584_v30  ;;  %v6609_v45 = vld [vmem:[%s10121_s9 + $0x3f0] sm:$0xff] }
 0xb72   :  { %v4363_v50 = vmul.f32 %v6793_v63, %v4323_v17  ;;  %v4269_v59 = vmul.f32 %v6114_v5, %v9930_v7  ;;  %6794 = vrcp.f32 %v9950_v34  ;;  %v4391_v35 = vsel %vm4375_vm1, %v4383_v41, %v4367_v4  ;;  %vm4200_vm9 = vmor %vm4198_vm8, %vm4199_vm5  ;;  %4722 = vmatpush.bf16.msrb.mxu2 %v6609_v45 }
 0xb73   :  { %v4370_v46 = vsub.f32 1.0, %v4362_v8  ;;  %v4205_v57 = vor.u32 1.1754944e-38, %v4204_v3  ;;  %v4341_v28 = vmul.f32 1.442695, %v4333_v49  ;;  %v4201_v6 = vsel %vm4200_vm9, %v9881_v61, %v4197_v14 }
 0xb74   :  { %v4371_v63 = vsub.f32 1.0, %v4363_v50  ;;  %v4277_v40 = vadd.f32 1.4214138, %v4269_v59  ;;  %vm4203_vm10 = vcmp.eq.f32.partialorder %v4202_v22, 8.507059e+37  ;;  %v4398_v38 = vadd.f32 1.0, %v4390_v10  ;;  %v6583_v22 = vld [vmem:[%s10121_s9 + $0x320] sm:$0xff] }
 0xb75   :  { %v4386_v39 = vsub.f32 0.0, %v4370_v46  ;;  %v9976_v21 = vsel %vm4203_vm10, %v4205_v57, %v4201_v6  ;;  %v4399_v25 = vadd.f32 1.0, %v4391_v35  ;;  %v9983_v61 = vadd.f32 %v4090_v55, %v3872_v52  ;;  %4682 = vmatpush.bf16.msrb.mxu3 %v6583_v22 }
 0xb76   :  { %v4387_v48 = vsub.f32 0.0, %v4371_v63  ;;  %v4285_v4 = vmul.f32 %v4277_v40, %v9930_v7  ;;  %v4257_v49 = vmul.f32 1.0614054, %v9976_v21  ;;  %v4337_v17 = vmul.f32 %v4329_v16, %v9786_v23  ;;  %v6608_v23 = vld [vmem:[%s10121_s9 + $0x3e8] sm:$0xff]  ;;  %v6607_v40 = vld [vmem:[%s10121_s9 + $0x3e0] sm:$0xff] }
 0xb77   :  { %v4394_v9 = vsel %vm4378_vm3, %v4386_v39, %v4370_v46  ;;  %6796 = vpow2.f32 %v4341_v28  ;;  %v9992_v15 = vmul.f32 0.70710677, %v9983_v61  ;;  %v4406_v52 = vmul.f32 %v4398_v38, %v9850_v26  ;;  %v6582_v26 = vld [vmem:[%s10121_s9 + $0x318] sm:$0xff]  ;;  %4723 = vmatpush.bf16.msrb.mxu2 %v6608_v23  ;;  %v6581_v38 = vld [vmem:[%s10121_s9 + $0x310] sm:$0xff] }
 0xb78   :  { %v4402_v27 = vadd.f32 1.0, %v4394_v9  ;;  %v4395_v33 = vsel %vm4379_vm7, %v4387_v48, %v4371_v63  ;;  %v6122_v41 = vadd.f32 -0.28449672, %v4285_v4  ;;  %v6795_v43 = vpop.eup %6794  ;;  %v6118_v3 = vadd.f32 -1.4531521, %v4257_v49  ;;  %v6606_v9 = vld [vmem:[%s10121_s9 + $0x3d8] sm:$0xff] }
 0xb79   :  { %v4403_v5 = vadd.f32 1.0, %v4395_v33  ;;  %v4179_v37 = vmul.f32 %v6795_v43, %v9950_v34  ;;  %v4407_v42 = vmul.f32 %v4399_v25, %v9857_v51  ;;  %v10005_v16 = vand.u32 2147483647, %v9992_v15  ;;  %4683 = vmatpush.bf16.msrb.mxu3 %v6582_v26  ;;  %v6604_v26 = vld [vmem:[%s10121_s9 + $0x3c8] sm:$0xff] }
 0xb7a   :  { %v4410_v8 = vmul.f32 %v4402_v27, %v9923_v60  ;;  %v4301_v14 = vmul.f32 %v6122_v41, %v9930_v7  ;;  %v4273_v59 = vmul.f32 %v6118_v3, %v9976_v21  ;;  %v4349_v30 = vmul.f32 1.442695, %v4337_v17 }
 0xb7b   :  { %v4411_v50 = vmul.f32 %v4403_v5, %v9926_v24  ;;  %v4180_v46 = vsub.f32 1.0, %v4179_v37  ;;  %v4189_v63 = vand.u32 2147483648, %v9950_v34  ;;  %v4124_v24 = vmul.f32 0.3275911, %v10005_v16  ;;  %4724 = vmatpush.bf16.msrb.mxu2 %v6607_v40  ;;  %v6605_v5 = vld [vmem:[%s10121_s9 + $0x3d0] sm:$0xff]  ;;  %v6579_v37 = vld [vmem:[%s10121_s9 + $0x300] sm:$0xff] }
 0xb7c   :  { %v4414_v60 = vpack.c.bf16 %v4410_v8, %v4406_v52  ;;  %v4309_v10 = vadd.f32 0.2548296, %v4301_v14  ;;  %v4281_v51 = vadd.f32 1.4214138, %v4273_v59  ;;  %vm4184_vm11 = vweird.f32 %v6795_v43 }
 0xb7d   :  { %v4415_v35 = vpack.c.bf16 %v4411_v50, %v4407_v42  ;;  %v4181_v55 = vmul.f32 %v6795_v43, %v4180_v46  ;;  %v4187_v39 = vand.u32 2147483647, %v9950_v34  ;;  %v6797_v28 = vpop.eup %6796  ;;  %v10018_v45 = vadd.f32 1.0, %v4124_v24  ;;  %4684 = vmatpush.bf16.msrb.mxu3 %v6581_v38 }
 0xb7e   :  { %v4317_v57 = vmul.f32 %v4309_v10, %v9930_v7  ;;  %4701 = vmatmul.bf16.vlgmr.msrb.gmra.mxu0 %v4414_v60  ;;  %v4289_v6 = vmul.f32 %v4281_v51, %v9976_v21  ;;  %vm4183_vm13 = vweird.f32 %v9950_v34  ;;  %v4190_v7 = vor.u32 1.1754944e-38, %v4189_v63  ;;  %v6580_v34 = vld [vmem:[%s10121_s9 + $0x308] sm:$0xff] }
 0xb7f   :  { %4715 = vmatmul.bf16.vlgmr.msra.gmra.mxu1 %v4415_v35  ;;  %v4182_v4 = vadd.f32 %v6795_v43, %v4181_v55  ;;  %vm4185_vm14 = vmor %vm4183_vm13, %vm4184_vm11  ;;  %6798 = vrcp.f32 %v10018_v45  ;;  %vm4188_vm15 = vcmp.eq.f32.partialorder %v4187_v39, 8.507059e+37  ;;  %4725 = vmatpush.bf16.msrb.mxu2 %v6606_v9  ;;  %v4328_v8 = vsub.f32 0.0, %v9906_v29 }
 0xb80   :  { %v4357_v48 = vmul.f32 %v6797_v28, %v4317_v57  ;;  %v6126_v25 = vadd.f32 -0.28449672, %v4289_v6  ;;  %6800 = vpow2.f32 %v4349_v30  ;;  %vm4373_vm1 = vcmp.lt.f32.partialorder %v9751_v58, 0.0  ;;  %v6603_v58 = vld [vmem:[%s10121_s9 + $0x3c0] sm:$0xff] }
 0xb81   :  { %v4186_v49 = vsel %vm4185_vm14, %v6795_v43, %v4182_v4  ;;  %4685 = vmatpush.bf16.msrb.mxu3 %v6580_v34  ;;  %v4336_v46 = vmul.f32 %v4328_v8, %v9906_v29  ;;  %v4249_v35 = vand.u32 2147483648, %v10018_v45  ;;  %v4247_v24 = vand.u32 2147483647, %v10018_v45 }
 0xb82   :  { %v4365_v22 = vsub.f32 1.0, %v4357_v48  ;;  %v4191_v27 = vsel %vm4188_vm15, %v4190_v7, %v4186_v49  ;;  %v4305_v33 = vmul.f32 %v6126_v25, %v9976_v21  ;;  %v4093_v40 = vmul.f32 0.5, %v9729_v44 }
 0xb83   :  { %v4256_v41 = vmul.f32 1.0614054, %v4191_v27  ;;  %4726 = vmatpush.bf16.msrb.mxu2 %v6605_v5  ;;  %vm4377_vm3 = vcmp.lt.f32.partialorder %v9775_v18, 0.0  ;;  %vm4243_vm5 = vweird.f32 %v10018_v45  ;;  %v4347_v28 = vmul.f32 1.442695, %v4336_v46 }
 0xb84   :  { %v4313_v17 = vadd.f32 0.2548296, %v4305_v33  ;;  %v4381_v52 = vsub.f32 0.0, %v4365_v22  ;;  %v4097_v6 = vmul.f32 0.5, %v9759_v19  ;;  %v4250_v48 = vor.u32 1.1754944e-38, %v4249_v35 }
 0xb85   :  { %v6117_v3 = vadd.f32 -1.4531521, %v4256_v41  ;;  %v6799_v43 = vpop.eup %6798  ;;  %4686 = vmatpush.bf16.msrb.mxu3 %v6579_v37  ;;  %vm4248_vm8 = vcmp.eq.f32.partialorder %v4247_v24, 8.507059e+37  ;;  %v4332_v25 = vsub.f32 0.0, %v10005_v16  ;;  %6802 = vpow2.f32 %v4347_v28 }
 0xb86   :  { %v4321_v14 = vmul.f32 %v4313_v17, %v9976_v21  ;;  %v6801_v23 = vpop.eup %6800  ;;  %v4239_v50 = vmul.f32 %v6799_v43, %v10018_v45  ;;  %v4389_v21 = vsel %vm4373_vm1, %v4381_v52, %v4365_v22  ;;  %vm4244_vm2 = vweird.f32 %v6799_v43 }
 0xb87   :  { %v4272_v42 = vmul.f32 %v6117_v3, %v4191_v27  ;;  %4727 = vmatpush.bf16.msrb.mxu2 %v6604_v26  ;;  %v4397_v55 = vadd.f32 1.0, %v4389_v21  ;;  %vm4245_vm7 = vmor %vm4243_vm5, %vm4244_vm2  ;;  %v4340_v19 = vmul.f32 %v4332_v25, %v10005_v16  ;;  %v1034_v26 = vcvt.f32.s32 %v9668_v54 }
 0xb88   :  { %v4361_v59 = vmul.f32 %v6801_v23, %v4321_v14  ;;  %v4240_v10 = vsub.f32 1.0, %v4239_v50  ;;  %vm4376_vm10 = vcmp.lt.f32.partialorder %v9886_v1, 0.0  ;;  %vm4380_vm11 = vcmp.lt.f32.partialorder %v9992_v15, 0.0 }
 0xb89   :  { %v4280_v60 = vadd.f32 1.4214138, %v4272_v42  ;;  %v4405_v9 = vmul.f32 %v4397_v55, %v4093_v40  ;;  %v4096_v54 = vmul.f32 0.5, %v9863_v32  ;;  %v6866_v25 = vmov 1  }
 0xb8a   :  { %v4369_v30 = vsub.f32 1.0, %v4361_v59  ;;  %v4241_v51 = vmul.f32 %v6799_v43, %v4240_v10  ;;  %6625 = vset.pattern.permute.xlu2 %v6866_v25 }
 0xb8b   :  { %v4288_v63 = vmul.f32 %v4280_v60, %v4191_v27  ;;  %4728 = vmatpush.bf16.msrb.mxu2 %v6603_v58  ;;  %v6803_v3 = vpop.eup %6802 }
 0xb8c   :  { %v4385_v57 = vsub.f32 0.0, %v4369_v30  ;;  %v4242_v39 = vadd.f32 %v6799_v43, %v4241_v51 }
 0xb8d   :  { %v6125_v29 = vadd.f32 -0.28449672, %v4288_v63  ;;  %v1035_v63 = vshll.u32 %v1034_v26, 16 }
 0xb8e   :  { %v4393_v38 = vsel %vm4377_vm3, %v4385_v57, %v4369_v30  ;;  %v4246_v7 = vsel %vm4245_vm7, %v6799_v43, %v4242_v39  ;;  %v4355_v43 = vmul.f32 1.442695, %v4340_v19 }
 0xb8f   :  { %v4304_v4 = vmul.f32 %v6125_v29, %v4191_v27  ;;  %v4401_v44 = vadd.f32 1.0, %v4393_v38  ;;  %v4251_v18 = vsel %vm4248_vm8, %v4250_v48, %v4246_v7  ;;  %v4100_v29 = vmul.f32 0.5, %v9983_v61 }
 0xb90   :  { %v4260_v33 = vmul.f32 1.0614054, %v4251_v18  ;;  %6804 = vpow2.f32 %v4355_v43 }
 0xb91   :  { %v4312_v49 = vadd.f32 0.2548296, %v4304_v4  ;;  %v4409_v22 = vmul.f32 %v4401_v44, %v4097_v6 }
 0xb92   :  { %v6121_v34 = vadd.f32 -1.4531521, %v4260_v33 }
 0xb93   :  { %v4413_v45 = vpack.c.bf16 %v4409_v22, %v4405_v9  ;;  %v4320_v41 = vmul.f32 %v4312_v49, %v4191_v27 }
 0xb94   :  { %v4276_v17 = vmul.f32 %v6121_v34, %v4251_v18  ;;  %v6867_v34 = vmov 0.0  }
 0xb95   :  { %4687 = vmatmul.bf16.vlgmr.msrb.gmra.mxu3 %v4413_v45  ;;  %v4360_v52 = vmul.f32 %v6803_v3, %v4320_v41 }
 0xb96   :  { %v4284_v5 = vadd.f32 1.4214138, %v4276_v17  ;;  %v6805_v21 = vpop.eup %6804 }
 0xb97   :  { %v4368_v23 = vsub.f32 1.0, %v4360_v52 }
 0xb98   :  { %v4292_v8 = vmul.f32 %v4284_v5, %v4251_v18 }
 0xb99   :  { %v4384_v60 = vsub.f32 0.0, %v4368_v23 }
 0xb9a   :  { %v6129_v14 = vadd.f32 -0.28449672, %v4292_v8 }
 0xb9b   :  { %v4392_v51 = vsel %vm4376_vm10, %v4384_v60, %v4368_v23 }
 0xb9c   :  { %v4308_v42 = vmul.f32 %v6129_v14, %v4251_v18  ;;  %v4400_v58 = vadd.f32 1.0, %v4392_v51 }
 0xb9e   :  { %v1017_v37 = vpop.xlane.xlu2 %1016  ;;  %v4316_v59 = vadd.f32 0.2548296, %v4308_v42  ;;  %v4408_v15 = vmul.f32 %v4400_v58, %v4096_v54 }
 0xb9f   :  { %vm1019_vm9 = vcmp.eq.f32.partialorder %v9661_v0, %v1017_v37 }
 0xba0   :  { %v1021_v50 = vsel %vm1019_vm9, %v7198_v47, 4  ;;  %v4324_v10 = vmul.f32 %v4316_v59, %v4251_v18 }
 0xba1   :  { %v1037_v16 = vsel %vm945_vm6, %v1021_v50, 2147483647 }
 0xba2   :  { %v1039_v27 = vshra.s32 %v1037_v16, 16  ;;  %v4364_v30 = vmul.f32 %v6805_v21, %v4324_v10  ;;  %v1038_v61 = vand.u32 65535, %v1037_v16 }
 0xba4   :  { %v1041_v46 = vcvt.s32.f32 %v1039_v27  ;;  %v4372_v0 = vsub.f32 1.0, %v4364_v30  ;;  %v1040_v4 = vcvt.s32.f32 %v1038_v61  ;;  %v6637_v27 = vld [vmem:[%s10122_s10 + $0x3] ss:$0 sm:$0xff] }
 0xba6   :  { %1042 = vmin.xlane.f32.xlu0 %v1041_v46  ;;  %v1032_v35 = vpop.xlane.xlu2 %1031  ;;  %v4388_v40 = vsub.f32 0.0, %v4372_v0 }
 0xba7   :  { %v1033_v24 = vcvt.f32.s32 %v1032_v35 }
 0xba8   :  { %v4396_v55 = vsel %vm4380_vm11, %v4388_v40, %v4372_v0 }
 0xba9   :  { %v1036_v57 = vadd.s32 %v1035_v63, %v1033_v24  ;;  %v4404_v39 = vadd.f32 1.0, %v4396_v55 }
 0xbab   :  { %vm1052_vm13 = vcmp.eq.s32.totalorder %v7198_v47, %v1036_v57  ;;  %v4412_v6 = vmul.f32 %v4404_v39, %v4100_v29 }
 0xbac   :  { %vm10069_vm14 = vmor %vm1008_vm0, %vm1052_vm13 }
 0xbad   :  { %v1056_v28 = vsel %vm10069_vm14, %v7661_v2, 0.0  ;;  %v4416_v32 = vpack.c.bf16 %v4412_v6, %v4408_v15  ;;  %v4939_v19 = vsel %vm10069_vm14, 1.0, %v6867_v34 }
 0xbae   :  { %v1058_v38 = vsel %vm945_vm6, %v1056_v28, 0.0  ;;  %v1072_v5 = vsel %vm945_vm6, %v4939_v19, 0.0 }
 0xbaf   :  { %1059 = vadd.xlane.f32.xlu0 %v1058_v38  ;;  %4729 = vmatmul.bf16.vlgmr.msrb.gmra.mxu2 %v4416_v32 }
 0xbfb   :  { %v4702_v63 = vpop.f32.mrf.mxu0 }
 0xbfc   :  { %v4716_v40 = vpop.f32.mrf.mxu1 }
 0xc03   :  { %v4704_v32 = vpop.f32.mrf.mxu0 }
 0xc04   :  { %v4718_v53 = vpop.f32.mrf.mxu1 }
 0xc18   :  { %v4688_v26 = vpop.f32.mrf.mxu3 }
 0xc19   :  { %v1043_v48 = vpop.xlane.xlu0 %1042  ;;  %v4689_v30 = vadd.f32 %v6637_v27, %v4688_v26 }
 0xc1a   :  { %vm1044_vm15 = vcmp.eq.f32.partialorder %v1041_v46, %v1043_v48  ;;  %v1049_v9 = vcvt.f32.s32 %v1043_v48 }
 0xc1b   :  { %v1045_v44 = vsel %vm1044_vm15, %v1040_v4, inf  ;;  %v4703_v51 = vadd.f32 %v4702_v63, %v4689_v30 }
 0xc1c   :  { %1046 = vmin.xlane.f32.xlu1 %v1045_v44  ;;  %v1050_v22 = vshll.u32 %v1049_v9, 16 }
 0xc1d   :  { %v4717_v57 = vadd.f32 %v4716_v40, %v4703_v51 }
 0xc20   :  { %v4690_v15 = vpop.f32.mrf.mxu3 }
 0xc21   :  { %v4691_v38 = vadd.f32 %v6637_v27, %v4690_v15 }
 0xc22   :  { %v1060_v7 = vpop.xlane.xlu0 %1059 }
 0xc23   :  { %6806 = vrcp.f32 %v1060_v7  ;;  %v4705_v61 = vadd.f32 %v4704_v32, %v4691_v38 }
 0xc25   :  { %v4719_v7 = vadd.f32 %v4718_v53, %v4705_v61 }
 0xc29   :  { %v6807_v18 = vpop.eup %6806 }
 0xc2a   :  { %v1066_v2 = vmul.f32 %v6807_v18, %v1056_v28 }
 0xc35   :  { %1993 = vperm.xlu1 %6623, %v1066_v2  }
 0xc3d   :  { %6627 = vset.pattern.permute.xlu1 %v6866_v25 }
 0xc8f   :  { %v1047_v49 = vpop.xlane.xlu1 %1046 }
 0xc90   :  { %v1048_v33 = vcvt.f32.s32 %v1047_v49 }
 0xc92   :  { %v1051_v45 = vadd.s32 %v1050_v22, %v1048_v33 }
 0xc94   :  { %vm1053_vm0 = vcmp.eq.s32.totalorder %v7198_v47, %v1051_v45  ;;  %v6868_v47 = vmov 2  }
 0xc95   :  { %vm1055_vm1 = vmor %vm1009_vm4, %vm1053_vm0 }
 0xc96   :  { %v1057_v41 = vsel %vm1055_vm1, %v8697_v12, 0.0  ;;  %v4940_v17 = vsel %vm1055_vm1, 1.0, %v6867_v34  ;;  %v6869_v12 = vmov 3  }
 0xc97   :  { %v1061_v3 = vsel %vm945_vm6, %v1057_v41, 0.0  ;;  %v1073_v43 = vsel %vm945_vm6, %v4940_v17, 0.0 }
 0xc98   :  { %v1074_v52 = vadd.f32 %v1073_v43, %v1072_v5  ;;  %1062 = vadd.xlane.f32.xlu2 %v1061_v3 }
 0xc9a   :  { %v1075_v8 = vrot.slane %v1074_v52, 4 }
 0xc9c   :  { %v1076_v14 = vadd.f32 %v1075_v8, %v1074_v52 }
 0xc9e   :  { %v1077_v37 = vrot.slane %v1076_v14, 2 }
 0xca0   :  { %v1078_v23 = vadd.f32 %v1077_v37, %v1076_v14 }
 0xca2   :  { %v1079_v42 = vrot.slane %v1078_v23, 1 }
 0xca4   :  { %v1080_v50 = vadd.f32 %v1079_v42, %v1078_v23 }
 0xca6   :  { %1082 = vst.msk [vmem:[%s10125_s13] sm:$0x1] %vm1081_vm12, %v1080_v50 }
 0xca7   :  { %v1994_v59 = vpop.permute.xlu1 %1993 }
 0xca8   :  { %v2001_v21 = vmul.f32 %v1994_v59, %v8381_v56  ;;  %v4730_v56 = vpop.f32.mrf.mxu2 }
 0xcb0   :  { %2908 = vperm.xlu2 %6625, %v1066_v2   ;;  %v4732_v18 = vpop.f32.mrf.mxu2 }
 0xcb8   :  { %6626 = vset.pattern.permute.xlu2 %v6868_v47 }
 0xcb9   :  { %3822 = vperm.xlu2 %6626, %v1066_v2  }
 0xcc1   :  { %6629 = vset.pattern.permute.xlu2 %v6869_v12 }
 0xcc2   :  { %4736 = vperm.xlu2 %6629, %v1066_v2   ;;  %v4733_v2 = vadd.f32 %v4732_v18, %v4719_v7 }
 0xd0b   :  { %v1063_v62 = vpop.xlane.xlu2 %1062 }
 0xd0c   :  { %6808 = vrcp.f32 %v1063_v62 }
 0xd12   :  { %v6809_v16 = vpop.eup %6808 }
 0xd13   :  { %v2909_v60 = vpop.permute.xlu2 %2908  ;;  %v1067_v10 = vmul.f32 %v6809_v16, %v1057_v41 }
 0xd14   :  { %v2915_v46 = vmul.f32 %v2909_v60, %v9047_v11  ;;  %v4731_v11 = vadd.f32 %v4730_v56, %v4717_v57 }
 0xd15   :  { %1998 = vperm.xlu0 %6624, %v1067_v10   ;;  %2912 = vperm.xlu1 %6627, %v1067_v10  }
 0xd16   :  { %v2917_v35 = vadd.f32 %v2915_v46, %v2001_v21 }
 0xd1b   :  { %v3823_v0 = vpop.permute.xlu2 %3822 }
 0xd1c   :  { %v3829_v24 = vmul.f32 %v3823_v0, %v9764_v36 }
 0xd1d   :  { %6628 = vset.pattern.permute.xlu1 %v6868_v47  ;;  %6631 = vset.pattern.permute.xlu0 %v6869_v12 }
 0xd1e   :  { %v3831_v58 = vadd.f32 %v3829_v24, %v2917_v35  ;;  %3826 = vperm.xlu1 %6628, %v1067_v10  }
 0xd23   :  { %v4737_v36 = vpop.permute.xlu2 %4736 }
 0xd24   :  { %v4743_v55 = vmul.f32 %v4737_v36, %v4731_v11 }
 0xd26   :  { %v4745_v54 = vadd.f32 %v4743_v55, %v3831_v58  ;;  %6630 = vset.pattern.permute.xlu1 %v6869_v12 }
 0xd27   :  { %4740 = vperm.xlu1 %6630, %v1067_v10  }
 0xd28   :  { %4747 = vst [vmem:[#allocation4] sm:$0xff] %v4745_v54 }
 0xd87   :  { %v2913_v29 = vpop.permute.xlu1 %2912  ;;  %v1999_v39 = vpop.permute.xlu0 %1998 }
 0xd88   :  { %v2916_v1 = vmul.f32 %v2913_v29, %v9102_v13  ;;  %v2002_v28 = vmul.f32 %v1999_v39, %v8423_v31 }
 0xd8a   :  { %v2918_v6 = vadd.f32 %v2916_v1, %v2002_v28 }
 0xd90   :  { %v3827_v48 = vpop.permute.xlu1 %3826 }
 0xd91   :  { %v3830_v4 = vmul.f32 %v3827_v48, %v9815_v20 }
 0xd93   :  { %v3832_v44 = vadd.f32 %v3830_v4, %v2918_v6 }
 0xd99   :  { %v4741_v25 = vpop.permute.xlu1 %4740 }
 0xd9a   :  { %v4744_v31 = vmul.f32 %v4741_v25, %v4733_v2 }
 0xd9c   :  { %v4746_v13 = vadd.f32 %v4744_v31, %v3832_v44 }
 0xd9e   :  { %4749 = vst [vmem:[#allocation4 + $0x8] sm:$0xff] %v4746_v13 }
 0xd9f   :  { %4775 = dma.vmem_to_hbm [thread:$0]  %s4768_s27, 256, %s4770_s29, [#allocation5], %s6871_s25, %s6871_s25, %s6872_s26  }
 0xda0   :  { %6858 = dma.done.wait [#allocation3], 256  }
 0xda1   :  { %6859 = vsyncadd [#allocation3], 4294967040 }
 0xda2   :  { %6860 = dma.done.wait [#allocation5], 256  }
 0xda3   :  { %6861 = vsyncadd [#allocation5], 4294967040 }
 0xda4   :  { %4792 = vsyncpa [#allocation3], 1 }
 0xda5   :  { %4793 = vsyncpa [#allocation5], 1 }

</bundles_post_ra>
